<compile_context>
chip_gen: v7x
topology: tpu7x:2x2x1
jax: 0.10.0
libtpu: 0.0.40
codegen_flags: <defaults>
</compile_context>

<pallas_src>
import functools

import numpy as np
import jax
import jax.numpy as jnp
from jax.experimental import pallas as pl
from jax.experimental.pallas import tpu as pltpu  # noqa: F401  (TPU target)

# ------------------------- configuration (small, consistent with the module) -------------------------
NET_WIDTH = 32          # d_model; divisible by 8 (encoder heads) and 4 (MAB heads)
ACTION_DIM = 2
S1_DIM = 6
S2_DIM = 10             # >= 4 so the s2[:, :-4] / s2[:, -4:] splits are valid
NUM_ENC = 4             # SmallSetTransformer default num_enc
NUM_DEC = 2             # decoder MAB stack depth
ENC_HEADS = 8
MAB_HEADS = 4
EMB_HIDDEN = 64         # TODO(synk): Embedding_Res default hidden size not in source; assumed.
EMB_HIDDEN_STATE = 128  # SmallSetTransformer.eb uses hidden=128
NUM_EMB = 4             # eb1, eb2, eb3, eb(state)
ENC_SEQ = 3             # tokens fed to the encoder (eb1, eb2, eb3; eb4(action=None) skipped)
DEC_SEQ = 2             # decoder query tokens (learned S token, eb(state))
BETA_BASE = 1.0 + 0.001
OUT_PAD = 128           # lane-dense padded output width; real outputs live in cols [0, 2*ACTION_DIM)

EMB_DIN = (S1_DIM, S2_DIM - 4, 4, S1_DIM + 2)                       # 6, 6, 4, 8
EMB_HID = (EMB_HIDDEN, EMB_HIDDEN, EMB_HIDDEN, EMB_HIDDEN_STATE)    # 64, 64, 64, 128
DIN_TOT = sum(EMB_DIN)                                              # 24
HID_TOT = sum(EMB_HID)                                              # 320


def _round8(n):
    return ((n + 7) // 8) * 8


# row offsets inside the packed 128-lane-wide weight blob
_W128_EMB_W2 = 0                                   # (HID_TOT, 128)
_W128_EMB_WR = HID_TOT                             # (DIN_TOT+1, 128) -- last row = b2 + br
_W128_AB_W = _round8(HID_TOT + DIN_TOT + 1)        # (W, 128) [alpha | beta | 0...]
_W128_AB_B = _W128_AB_W + NET_WIDTH                # (1, 128)
_W128_ROWS = _round8(_W128_AB_B + 1)

# row offsets inside the packed 32-lane-wide weight blob (FcModule + head + s_token)
_W32_FCM_W1 = 0
_W32_FCM_W2 = 2 * NET_WIDTH
_W32_FC1_W = 3 * NET_WIDTH
_W32_FC2A_W = 4 * NET_WIDTH          # (W, W) with cols W/2: zero-padded
_W32_FC2B_W = 5 * NET_WIDTH          # (W, W) with rows W/2: zero-padded
_W32_FCM_B1 = 6 * NET_WIDTH
_W32_FCM_B2 = 6 * NET_WIDTH + 1
_W32_FC1_B = 6 * NET_WIDTH + 2
_W32_FC2A_B = 6 * NET_WIDTH + 3
_W32_FC2B_B = 6 * NET_WIDTH + 4
_W32_STOK = 6 * NET_WIDTH + 5
_W32_ROWS = _round8(6 * NET_WIDTH + 6)


def _fs(shape):
    """Full-array VMEM BlockSpec for a grid-less pallas_call."""
    nd = len(shape)
    return pl.BlockSpec(shape, lambda nd=nd: (0,) * nd)


# ----------------------------------- in-kernel math helpers -----------------------------------
def _mm(a, b):
    return jnp.dot(a, b, preferred_element_type=jnp.float32)


def _softmax_lastdim(s):
    m = jnp.max(s, axis=-1, keepdims=True)
    e = jnp.exp(s - m)
    return e / jnp.sum(e, axis=-1, keepdims=True)


def _layernorm(x, g, b, eps=1e-5):
    mu = jnp.mean(x, axis=-1, keepdims=True)
    xc = x - mu
    var = jnp.mean(xc * xc, axis=-1, keepdims=True)
    return xc * jax.lax.rsqrt(var + eps) * g + b


def _softplus(y):
    # numerically stable log(1 + exp(y)) == F.softplus
    return jnp.maximum(y, 0.0) + jnp.log(1.0 + jnp.exp(-jnp.abs(y)))


# ----------------------------------- the single fused kernel -----------------------------------
def _fused_forward_kernel(
        x_ref, emb_w1_ref, w128_ref, enc_w_ref, enc_wf2_ref, lb_ref,
        mab_w_ref, w32_ref, masks_ref, out_ref, *, B):
    W = NET_WIDTH
    H = ENC_HEADS
    HM = MAB_HEADS
    N = ENC_SEQ * B                      # encoder tokens (all batches, token-major rows)
    NQ = DEC_SEQ * B                     # decoder query tokens
    QP = _round8(N)                      # padded per-head group (sublane aligned)
    QPQ = _round8(NQ)

    # ---- precomputed masks (one input): per-head lane masks + batch block-diagonal biases ----
    r1 = H * QP
    r2 = 2 * H * QP
    r3 = r2 + HM * QPQ
    enc_lmask = masks_ref[0:r1, :]                 # (H*QP, W)
    enc_abias = masks_ref[r1:r2, 0:N]              # (H*QP, N)
    mab_lmask = masks_ref[r2:r3, :]                # (HM*QPQ, W)
    mab_abias = masks_ref[r3:r3 + HM * QPQ, 0:N]   # (HM*QPQ, N)

    # ---------------- Embedding_Res x4, fused block-diagonally (biases folded via ones column) ----------------
    # TODO(synk): Embedding_Res source not provided; assumed out = fc2(relu(fc1(x))) + res(x).
    x_aug = x_ref[...]                                           # (B, DIN_TOT + 1)
    h = jnp.maximum(_mm(x_aug, emb_w1_ref[...]), 0.0)            # (B, HID_TOT)
    emb_w2 = w128_ref[_W128_EMB_W2:_W128_EMB_W2 + HID_TOT, :]
    emb_wr = w128_ref[_W128_EMB_WR:_W128_EMB_WR + DIN_TOT + 1, :]
    emb = _mm(h, emb_w2) + _mm(x_aug, emb_wr)                    # (B, 4W): [eb1 | eb2 | eb3 | eb_state]

    # encoder tokens, token-major: row t*B + b
    x = jnp.concatenate([emb[:, 0:W], emb[:, W:2 * W], emb[:, 2 * W:3 * W]], axis=0)   # (N, W)
    state_p = emb[:, 3 * W:4 * W]                                # (B, W)

    # ---------------- TransformerEncoder: post-LN, relu, dim_ff = 2W, dropout = eval no-op ----------------
    for l in range(NUM_ENC):
        wl = enc_w_ref[l]                                        # (W, 6W): [Wqkv | Wo | Wf1]
        wqkv = wl[:, 0:3 * W]
        wo = wl[:, 3 * W:4 * W]
        wf1 = wl[:, 4 * W:6 * W]
        wf2 = enc_wf2_ref[l]                                     # (2W, W)
        bl = lb_ref[l]                                           # (8, 3W)
        bqkv = bl[0:1, 0:3 * W]
        bf1 = bl[1:2, 0:2 * W]
        bo, bf2 = bl[2:3, 0:W], bl[3:4, 0:W]
        g1, c1 = bl[4:5, 0:W], bl[5:6, 0:W]
        g2, c2 = bl[6:7, 0:W], bl[7:8, 0:W]

        qkv = _mm(x, wqkv) + bqkv                                # (N, 3W); 1/sqrt(hd) folded into Wq/bq
        q, k, v = qkv[:, 0:W], qkv[:, W:2 * W], qkv[:, 2 * W:3 * W]

        # one score matmul + one PV matmul for ALL (batch, head) pairs:
        # heads stacked on the row axis (lane-masked Q), batches separated by the additive mask.
        if QP > N:
            q = jnp.concatenate([q, jnp.zeros((QP - N, W), jnp.float32)], axis=0)
        qs = jnp.concatenate([q] * H, axis=0) * enc_lmask        # (H*QP, W)
        s = jnp.einsum("qd,kd->qk", qs, k,
                       preferred_element_type=jnp.float32) + enc_abias
        p = _softmax_lastdim(s)                                  # (H*QP, N)
        o = _mm(p, v) * enc_lmask                                # (H*QP, W)
        ctx = o[0:QP, :]
        for hh in range(1, H):
            ctx = ctx + o[hh * QP:(hh + 1) * QP, :]              # merge heads back onto lanes
        ctx = ctx[0:N, :]                                        # (N, W)

        y = _layernorm(x + _mm(ctx, wo) + bo, g1, c1)
        ff = _mm(jnp.maximum(_mm(y, wf1) + bf1, 0.0), wf2) + bf2
        x = _layernorm(y + ff, g2, c2)

    # ---------------- decoder query tokens (token-major): rows 0:B learned S, rows B:2B eb(state) ----------------
    stok = w32_ref[_W32_STOK:_W32_STOK + 1, :]                   # (1, W)
    qcur = jnp.concatenate([stok] * B + [state_p], axis=0)       # (NQ, W)

    # ---------------- decoder: Set-Transformer MAB(ln=True) stack, keys/values = encoder output ----------------
    # TODO(synk): MAB source not provided; standard Set-Transformer MAB with ln=True assumed.
    for l in range(NUM_DEC):
        wl = mab_w_ref[l]                                        # (W, 4W): [Wq | Wk | Wv | Wo]
        wq = wl[:, 0:W]
        wkv = wl[:, W:3 * W]
        wo = wl[:, 3 * W:4 * W]
        bl = lb_ref[NUM_ENC + l]                                 # (8, 3W)
        bq = bl[0:1, 0:W]
        bkv = bl[1:2, 0:2 * W]
        bo = bl[2:3, 0:W]
        g0, c0 = bl[3:4, 0:W], bl[4:5, 0:W]
        g1, c1 = bl[5:6, 0:W], bl[6:7, 0:W]

        qp = _mm(qcur, wq) + bq                                  # (NQ, W) projected query (unscaled)
        kv = _mm(x, wkv) + bkv                                   # (N, 2W); 1/sqrt(W) folded into Wk/bk
        k, v = kv[:, 0:W], kv[:, W:2 * W]

        qpad = qp
        if QPQ > NQ:
            qpad = jnp.concatenate([qp, jnp.zeros((QPQ - NQ, W), jnp.float32)], axis=0)
        qs = jnp.concatenate([qpad] * HM, axis=0) * mab_lmask    # (HM*QPQ, W)
        s = jnp.einsum("qd,kd->qk", qs, k,
                       preferred_element_type=jnp.float32) + mab_abias
        p = _softmax_lastdim(s)
        o = (_mm(p, v) + qs) * mab_lmask                         # residual adds the projected query
        acc = o[0:QPQ, :]
        for hh in range(1, HM):
            acc = acc + o[hh * QPQ:(hh + 1) * QPQ, :]
        oc = _layernorm(acc[0:NQ, :], g0, c0)
        oc = oc + jnp.maximum(_mm(oc, wo) + bo, 0.0)
        qcur = _layernorm(oc, g1, c1)

    # ---------------- x7 = query.view(B, 2W) ----------------
    x7 = jnp.concatenate([qcur[0:B, :], qcur[B:2 * B, :]], axis=-1)   # (B, 2W)

    # ---------------- FcModule ----------------
    # TODO(synk): FcModule source not provided; assumed relu(Linear(2W,W)) -> Linear(W,W).
    fcm_w1 = w32_ref[_W32_FCM_W1:_W32_FCM_W1 + 2 * W, :]
    fcm_w2 = w32_ref[_W32_FCM_W2:_W32_FCM_W2 + W, :]
    fcm_b1 = w32_ref[_W32_FCM_B1:_W32_FCM_B1 + 1, :]
    fcm_b2 = w32_ref[_W32_FCM_B2:_W32_FCM_B2 + 1, :]
    merged = _mm(jnp.maximum(_mm(x7, fcm_w1) + fcm_b1, 0.0), fcm_w2) + fcm_b2

    # ---------------- BetaActorMulti head (bn1 is defined in __init__ but unused in forward -> skipped) ----------------
    fc1_w = w32_ref[_W32_FC1_W:_W32_FC1_W + W, :]
    fc2a_w = w32_ref[_W32_FC2A_W:_W32_FC2A_W + W, :]
    fc2b_w = w32_ref[_W32_FC2B_W:_W32_FC2B_W + W, :]
    fc1_b = w32_ref[_W32_FC1_B:_W32_FC1_B + 1, :]
    fc2a_b = w32_ref[_W32_FC2A_B:_W32_FC2A_B + 1, :]
    fc2b_b = w32_ref[_W32_FC2B_B:_W32_FC2B_B + 1, :]
    ab_w = w128_ref[_W128_AB_W:_W128_AB_W + W, :]                # (W, 128): [alpha | beta | 0...]
    ab_b = w128_ref[_W128_AB_B:_W128_AB_B + 1, :]

    xh = jnp.maximum(_mm(merged, fc1_w) + fc1_b, 0.0)
    xa = jnp.maximum(_mm(xh, fc2a_w) + fc2a_b, 0.0)
    xb = jnp.maximum(_mm(xa, fc2b_w) + fc2b_b, 0.0) + xh
    # lane-dense single output: [alpha | beta | pad]
    out_ref[...] = _softplus(_mm(xb, ab_w) + ab_b) + BETA_BASE


# ----------------------------------- masks (host-side, tiny, constant-folded) -----------------------------------
def _build_masks(B):
    W = NET_WIDTH
    N = ENC_SEQ * B
    NQ = DEC_SEQ * B
    QP = _round8(N)
    QPQ = _round8(NQ)
    H, hd = ENC_HEADS, W // ENC_HEADS
    HM, hdm = MAB_HEADS, W // MAB_HEADS

    enc_lmask = np.zeros((H * QP, W), np.float32)
    enc_abias = np.zeros((H * QP, W), np.float32)
    for h in range(H):
        enc_lmask[h * QP:(h + 1) * QP, h * hd:(h + 1) * hd] = 1.0
        for i in range(QP):
            for c in range(N):
                if i < N and (i % B) != (c % B):
                    enc_abias[h * QP + i, c] = -1e30

    mab_lmask = np.zeros((HM * QPQ, W), np.float32)
    mab_abias = np.zeros((HM * QPQ, W), np.float32)
    for h in range(HM):
        mab_lmask[h * QPQ:(h + 1) * QPQ, h * hdm:(h + 1) * hdm] = 1.0
        for i in range(QPQ):
            for c in range(N):
                if i < NQ and (i % B) != (c % B):
                    mab_abias[h * QPQ + i, c] = -1e30

    return np.concatenate([enc_lmask, enc_abias, mab_lmask, mab_abias], axis=0)


# ----------------------------------- parameters (packed) -----------------------------------
def init_params(key):
    keys = iter(jax.random.split(key, 128))

    def dense(din, dout):
        w = jax.random.normal(next(keys), (din, dout), jnp.float32) * (float(din) ** -0.5)
        b = jax.random.normal(next(keys), (1, dout), jnp.float32) * 0.01
        return w, b

    W, A = NET_WIDTH, ACTION_DIM

    # ---- Embedding_Res x4, block-diagonal; biases folded into the ones-column row ----
    emb_w1 = jnp.zeros((DIN_TOT + 1, HID_TOT), jnp.float32)
    emb_wr = jnp.zeros((DIN_TOT + 1, NUM_EMB * W), jnp.float32)
    emb_w2 = jnp.zeros((HID_TOT, NUM_EMB * W), jnp.float32)
    r0 = h0 = 0
    for e, (din, hid) in enumerate(zip(EMB_DIN, EMB_HID)):
        w1, b1 = dense(din, hid)
        w2, b2 = dense(hid, W)
        wr, br = dense(din, W)
        c0 = e * W
        emb_w1 = emb_w1.at[r0:r0 + din, h0:h0 + hid].set(w1)
        emb_w1 = emb_w1.at[DIN_TOT, h0:h0 + hid].set(b1[0])
        emb_w2 = emb_w2.at[h0:h0 + hid, c0:c0 + W].set(w2)
        emb_wr = emb_wr.at[r0:r0 + din, c0:c0 + W].set(wr)
        emb_wr = emb_wr.at[DIN_TOT, c0:c0 + W].set((b2 + br)[0])
        r0 += din
        h0 += hid

    ones = jnp.ones((1, W), jnp.float32)

    # ---- encoder layers (stacked); 1/sqrt(head_dim) folded into Wq / bq ----
    sc_q = float(W // ENC_HEADS) ** -0.5
    enc_w_l, enc_wf2_l, lb_l = [], [], []
    for _ in range(NUM_ENC):
        wq, bq = dense(W, W)
        wk, bk = dense(W, W)
        wv, bv = dense(W, W)
        wo, bo = dense(W, W)
        wf1, bf1 = dense(W, 2 * W)
        wf2, bf2 = dense(2 * W, W)
        wqkv = jnp.concatenate([wq * sc_q, wk, wv], axis=1)
        bqkv = jnp.concatenate([bq * sc_q, bk, bv], axis=1)
        enc_w_l.append(jnp.concatenate([wqkv, wo, wf1], axis=1))          # (W, 6W)
        enc_wf2_l.append(wf2)
        lb = jnp.zeros((8, 3 * W), jnp.float32)
        lb = lb.at[0:1, 0:3 * W].set(bqkv)
        lb = lb.at[1:2, 0:2 * W].set(bf1)
        lb = lb.at[2:3, 0:W].set(bo)
        lb = lb.at[3:4, 0:W].set(bf2)
        lb = lb.at[4:5, 0:W].set(ones)     # ln1 gamma (beta stays 0)
        lb = lb.at[6:7, 0:W].set(ones)     # ln2 gamma
        lb_l.append(lb)

    # ---- decoder MAB layers (stacked); 1/sqrt(dim_V) folded into Wk / bk ----
    sc_k = float(W) ** -0.5
    mab_w_l = []
    for _ in range(NUM_DEC):
        wq, bq = dense(W, W)
        wk, bk = dense(W, W)
        wv, bv = dense(W, W)
        wo, bo = dense(W, W)
        mab_w_l.append(jnp.concatenate([wq, wk * sc_k, wv, wo], axis=1))  # (W, 4W)
        lb = jnp.zeros((8, 3 * W), jnp.float32)
        lb = lb.at[0:1, 0:W].set(bq)
        lb = lb.at[1:2, 0:2 * W].set(jnp.concatenate([bk * sc_k, bv], axis=1))
        lb = lb.at[2:3, 0:W].set(bo)
        lb = lb.at[3:4, 0:W].set(ones)     # ln0 gamma
        lb = lb.at[5:6, 0:W].set(ones)     # ln1 gamma
        lb_l.append(lb)

    # ---- FcModule + BetaActorMulti head + S token, packed into two blobs ----
    fcm_w1, fcm_b1 = dense(2 * W, W)
    fcm_w2, fcm_b2 = dense(W, W)
    fc1_w, fc1_b = dense(W, W)
    fc2a_w, fc2a_b = dense(W, W // 2)
    fc2b_w, fc2b_b = dense(W // 2, W)
    alpha_w, alpha_b = dense(W, A)
    beta_w, beta_b = dense(W, A)
    lim = (6.0 / (1.0 + W)) ** 0.5
    s_tok = jax.random.uniform(next(keys), (1, W), jnp.float32, -lim, lim)

    w32 = jnp.zeros((_W32_ROWS, W), jnp.float32)
    w32 = w32.at[_W32_FCM_W1:_W32_FCM_W1 + 2 * W, :].set(fcm_w1)
    w32 = w32.at[_W32_FCM_W2:_W32_FCM_W2 + W, :].set(fcm_w2)
    w32 = w32.at[_W32_FC1_W:_W32_FC1_W + W, :].set(fc1_w)
    w32 = w32.at[_W32_FC2A_W:_W32_FC2A_W + W, 0:W // 2].set(fc2a_w)
    w32 = w32.at[_W32_FC2B_W:_W32_FC2B_W + W // 2, :].set(fc2b_w)
    w32 = w32.at[_W32_FCM_B1, :].set(fcm_b1[0])
    w32 = w32.at[_W32_FCM_B2, :].set(fcm_b2[0])
    w32 = w32.at[_W32_FC1_B, :].set(fc1_b[0])
    w32 = w32.at[_W32_FC2A_B, 0:W // 2].set(fc2a_b[0])
    w32 = w32.at[_W32_FC2B_B, :].set(fc2b_b[0])
    w32 = w32.at[_W32_STOK, :].set(s_tok[0])

    w128 = jnp.zeros((_W128_ROWS, NUM_EMB * W), jnp.float32)
    w128 = w128.at[_W128_EMB_W2:_W128_EMB_W2 + HID_TOT, :].set(emb_w2)
    w128 = w128.at[_W128_EMB_WR:_W128_EMB_WR + DIN_TOT + 1, :].set(emb_wr)
    w128 = w128.at[_W128_AB_W:_W128_AB_W + W, 0:2 * A].set(
        jnp.concatenate([alpha_w, beta_w], axis=1))
    w128 = w128.at[_W128_AB_B, 0:2 * A].set(
        jnp.concatenate([alpha_b, beta_b], axis=1)[0])

    return dict(emb_w1=emb_w1, w128=w128, enc_w=jnp.stack(enc_w_l),
                enc_wf2=jnp.stack(enc_wf2_l), lb=jnp.stack(lb_l),
                mab_w=jnp.stack(mab_w_l), w32=w32)


# ----------------------------------- forward (one fused pallas_call) -----------------------------------
def beta_actor_forward(params, s1, s2):
    B = s1.shape[0]

    c = s2[:, -3:-1]                                            # corridor (B, 2)
    # TODO(synk): s4_p = eb4(action) skipped — BetaActorMulti calls MergedModel with action=None.
    x_cat = jnp.concatenate(
        [s1, s2[:, :-4], s2[:, -4:], s1, c, jnp.ones((B, 1), jnp.float32)], axis=1)   # (B, DIN_TOT+1)

    masks = jnp.asarray(_build_masks(B), dtype=jnp.float32)

    inputs = (x_cat, params["emb_w1"], params["w128"], params["enc_w"],
              params["enc_wf2"], params["lb"], params["mab_w"], params["w32"], masks)

    out = pl.pallas_call(
        functools.partial(_fused_forward_kernel, B=B),
        out_shape=jax.ShapeDtypeStruct((B, OUT_PAD), jnp.float32),
        in_specs=[_fs(a.shape) for a in inputs],
        out_specs=_fs((B, OUT_PAD)),
    )(*inputs)
    return out[:, :ACTION_DIM], out[:, ACTION_DIM:2 * ACTION_DIM]


if __name__ == "__main__":
    root = jax.random.PRNGKey(0)
    pkey, k1, k2 = jax.random.split(root, 3)
    params = init_params(pkey)

    B = 2
    s1 = jax.random.normal(k1, (B, S1_DIM), jnp.float32)
    s2 = jax.random.normal(k2, (B, S2_DIM), jnp.float32)

    fwd = jax.jit(beta_actor_forward)
    alpha, beta = fwd(params, s1, s2)
    alpha = jax.block_until_ready(alpha)
    beta = jax.block_until_ready(beta)

    assert alpha.shape == (B, ACTION_DIM) and beta.shape == (B, ACTION_DIM)
    assert bool(jnp.all(jnp.isfinite(alpha))) and bool(jnp.all(jnp.isfinite(beta)))
    assert bool(jnp.all(alpha > 1.0)) and bool(jnp.all(beta > 1.0))   # softplus(.) + 1.001
    print("KERNEL_OK")
</pallas_src>

<mosaic_0001>
module attributes {stable_mosaic.version = 11 : i64} {
  func.func @_fused_forward_kernel(%arg0: memref<2x25xf32, #tpu.memory_space<vmem>>, %arg1: memref<25x320xf32, #tpu.memory_space<vmem>>, %arg2: memref<392x128xf32, #tpu.memory_space<vmem>>, %arg3: memref<4x32x192xf32, #tpu.memory_space<vmem>>, %arg4: memref<4x64x32xf32, #tpu.memory_space<vmem>>, %arg5: memref<6x8x96xf32, #tpu.memory_space<vmem>>, %arg6: memref<2x32x128xf32, #tpu.memory_space<vmem>>, %arg7: memref<200x32xf32, #tpu.memory_space<vmem>>, %arg8: memref<192x32xf32, #tpu.memory_space<vmem>>, %arg9: memref<2x128xf32, #tpu.memory_space<vmem>>) attributes {dimension_semantics = [], scalar_prefetch = 0 : i64, scratch_operands = 0 : i64, tpu.core_type = #tpu.core_type<tc>} {
    %c0 = arith.constant 0 : index
    %c0_0 = arith.constant 0 : index
    %0 = vector.load %arg8[%c0, %c0_0] : memref<192x32xf32, #tpu.memory_space<vmem>>, vector<64x32xf32>
    %c64 = arith.constant 64 : index
    %c0_1 = arith.constant 0 : index
    %1 = vector.load %arg8[%c64, %c0_1] : memref<192x32xf32, #tpu.memory_space<vmem>>, vector<64x6xf32>
    %c128 = arith.constant 128 : index
    %c0_2 = arith.constant 0 : index
    %2 = vector.load %arg8[%c128, %c0_2] : memref<192x32xf32, #tpu.memory_space<vmem>>, vector<32x32xf32>
    %c160 = arith.constant 160 : index
    %c0_3 = arith.constant 0 : index
    %3 = vector.load %arg8[%c160, %c0_3] : memref<192x32xf32, #tpu.memory_space<vmem>>, vector<32x6xf32>
    %c0_4 = arith.constant 0 : index
    %c0_5 = arith.constant 0 : index
    %4 = vector.load %arg0[%c0_4, %c0_5] : memref<2x25xf32, #tpu.memory_space<vmem>>, vector<2x25xf32>
    %c0_6 = arith.constant 0 : index
    %c0_7 = arith.constant 0 : index
    %5 = vector.load %arg1[%c0_6, %c0_7] : memref<25x320xf32, #tpu.memory_space<vmem>>, vector<25x320xf32>
    %cst = arith.constant dense<0.000000e+00> : vector<2x320xf32>
    %6 = tpu.matmul %4, %5, %cst {dimension_numbers = #tpu.dot_dimension_numbers<[1], [0], [0], [1], [0, 0, 1, 1], [], []>} : vector<2x25xf32>, vector<25x320xf32>, vector<2x320xf32> -> vector<2x320xf32>
    %cst_8 = arith.constant 0.000000e+00 : f32
    %7 = vector.broadcast %cst_8 : f32 to vector<2x320xf32>
    %8 = arith.maximumf %6, %7 : vector<2x320xf32>
    %c0_9 = arith.constant 0 : index
    %c0_10 = arith.constant 0 : index
    %9 = vector.load %arg2[%c0_9, %c0_10] : memref<392x128xf32, #tpu.memory_space<vmem>>, vector<320x128xf32>
    %c320 = arith.constant 320 : index
    %c0_11 = arith.constant 0 : index
    %10 = vector.load %arg2[%c320, %c0_11] : memref<392x128xf32, #tpu.memory_space<vmem>>, vector<25x128xf32>
    %cst_12 = arith.constant dense<0.000000e+00> : vector<2x128xf32>
    %11 = tpu.matmul %8, %9, %cst_12 {dimension_numbers = #tpu.dot_dimension_numbers<[1], [0], [0], [1], [0, 0, 1, 1], [], []>} : vector<2x320xf32>, vector<320x128xf32>, vector<2x128xf32> -> vector<2x128xf32>
    %cst_13 = arith.constant dense<0.000000e+00> : vector<2x128xf32>
    %12 = tpu.matmul %4, %10, %cst_13 {dimension_numbers = #tpu.dot_dimension_numbers<[1], [0], [0], [1], [0, 0, 1, 1], [], []>} : vector<2x25xf32>, vector<25x128xf32>, vector<2x128xf32> -> vector<2x128xf32>
    %13 = arith.addf %11, %12 : vector<2x128xf32>
    %14 = vector.extract_strided_slice %13 {offsets = [0, 0], sizes = [2, 32], strides = [1, 1]} : vector<2x128xf32> to vector<2x32xf32>
    %15 = vector.extract_strided_slice %13 {offsets = [0, 32], sizes = [2, 32], strides = [1, 1]} : vector<2x128xf32> to vector<2x32xf32>
    %16 = vector.extract_strided_slice %13 {offsets = [0, 64], sizes = [2, 32], strides = [1, 1]} : vector<2x128xf32> to vector<2x32xf32>
    %17 = tpu.concatenate %14, %15, %16 in 0 : vector<2x32xf32>, vector<2x32xf32>, vector<2x32xf32> -> vector<6x32xf32>
    %18 = vector.extract_strided_slice %13 {offsets = [0, 96], sizes = [2, 32], strides = [1, 1]} : vector<2x128xf32> to vector<2x32xf32>
    %c0_14 = arith.constant 0 : index
    %c0_15 = arith.constant 0 : index
    %c0_16 = arith.constant 0 : index
    %19 = vector.load %arg3[%c0_14, %c0_15, %c0_16] : memref<4x32x192xf32, #tpu.memory_space<vmem>>, vector<1x32x192xf32>
    %20 = vector.shape_cast %19 : vector<1x32x192xf32> to vector<32x192xf32>
    %21 = vector.extract_strided_slice %20 {offsets = [0, 0], sizes = [32, 96], strides = [1, 1]} : vector<32x192xf32> to vector<32x96xf32>
    %22 = vector.extract_strided_slice %20 {offsets = [0, 96], sizes = [32, 32], strides = [1, 1]} : vector<32x192xf32> to vector<32x32xf32>
    %23 = vector.extract_strided_slice %20 {offsets = [0, 128], sizes = [32, 64], strides = [1, 1]} : vector<32x192xf32> to vector<32x64xf32>
    %c0_17 = arith.constant 0 : index
    %c0_18 = arith.constant 0 : index
    %c0_19 = arith.constant 0 : index
    %24 = vector.load %arg4[%c0_17, %c0_18, %c0_19] : memref<4x64x32xf32, #tpu.memory_space<vmem>>, vector<1x64x32xf32>
    %25 = vector.shape_cast %24 : vector<1x64x32xf32> to vector<64x32xf32>
    %c0_20 = arith.constant 0 : index
    %c0_21 = arith.constant 0 : index
    %c0_22 = arith.constant 0 : index
    %26 = vector.load %arg5[%c0_20, %c0_21, %c0_22] : memref<6x8x96xf32, #tpu.memory_space<vmem>>, vector<1x8x96xf32>
    %27 = vector.shape_cast %26 : vector<1x8x96xf32> to vector<8x96xf32>
    %28 = vector.extract_strided_slice %27 {offsets = [0, 0], sizes = [1, 96], strides = [1, 1]} : vector<8x96xf32> to vector<1x96xf32>
    %29 = vector.extract_strided_slice %27 {offsets = [1, 0], sizes = [1, 64], strides = [1, 1]} : vector<8x96xf32> to vector<1x64xf32>
    %30 = vector.extract_strided_slice %27 {offsets = [2, 0], sizes = [1, 32], strides = [1, 1]} : vector<8x96xf32> to vector<1x32xf32>
    %31 = vector.extract_strided_slice %27 {offsets = [3, 0], sizes = [1, 32], strides = [1, 1]} : vector<8x96xf32> to vector<1x32xf32>
    %32 = vector.extract_strided_slice %27 {offsets = [4, 0], sizes = [1, 32], strides = [1, 1]} : vector<8x96xf32> to vector<1x32xf32>
    %33 = vector.extract_strided_slice %27 {offsets = [5, 0], sizes = [1, 32], strides = [1, 1]} : vector<8x96xf32> to vector<1x32xf32>
    %34 = vector.extract_strided_slice %27 {offsets = [6, 0], sizes = [1, 32], strides = [1, 1]} : vector<8x96xf32> to vector<1x32xf32>
    %35 = vector.extract_strided_slice %27 {offsets = [7, 0], sizes = [1, 32], strides = [1, 1]} : vector<8x96xf32> to vector<1x32xf32>
    %cst_23 = arith.constant dense<0.000000e+00> : vector<6x96xf32>
    %36 = tpu.matmul %17, %21, %cst_23 {dimension_numbers = #tpu.dot_dimension_numbers<[1], [0], [0], [1], [0, 0, 1, 1], [], []>} : vector<6x32xf32>, vector<32x96xf32>, vector<6x96xf32> -> vector<6x96xf32>
    %37 = vector.broadcast %28 : vector<1x96xf32> to vector<6x96xf32>
    %38 = arith.addf %36, %37 : vector<6x96xf32>
    %39 = vector.extract_strided_slice %38 {offsets = [0, 0], sizes = [6, 32], strides = [1, 1]} : vector<6x96xf32> to vector<6x32xf32>
    %40 = vector.extract_strided_slice %38 {offsets = [0, 32], sizes = [6, 32], strides = [1, 1]} : vector<6x96xf32> to vector<6x32xf32>
    %41 = vector.extract_strided_slice %38 {offsets = [0, 64], sizes = [6, 32], strides = [1, 1]} : vector<6x96xf32> to vector<6x32xf32>
    %cst_24 = arith.constant 0.000000e+00 : f32
    %42 = vector.broadcast %cst_24 : f32 to vector<2x32xf32>
    %43 = tpu.concatenate %39, %42 in 0 : vector<6x32xf32>, vector<2x32xf32> -> vector<8x32xf32>
    %44 = tpu.concatenate %43, %43, %43, %43, %43, %43, %43, %43 in 0 : vector<8x32xf32>, vector<8x32xf32>, vector<8x32xf32>, vector<8x32xf32>, vector<8x32xf32>, vector<8x32xf32>, vector<8x32xf32>, vector<8x32xf32> -> vector<64x32xf32>
    %45 = arith.mulf %44, %0 : vector<64x32xf32>
    "tpu.trace_start"() <{level = 10 : i32, message = "qd,kd->qk"}> : () -> ()
    %cst_25 = arith.constant dense<0.000000e+00> : vector<64x6xf32>
    %46 = tpu.matmul %45, %40, %cst_25 {dimension_numbers = #tpu.dot_dimension_numbers<[1], [1], [0], [0], [0, 0, 1, 0], [], []>} : vector<64x32xf32>, vector<6x32xf32>, vector<64x6xf32> -> vector<64x6xf32>
    "tpu.trace_stop"() : () -> ()
    %47 = arith.addf %46, %1 : vector<64x6xf32>
    %cst_26 = arith.constant dense<0xFF800000> : vector<64xf32>
    %48 = vector.multi_reduction <maximumf>, %47, %cst_26 [1] : vector<64x6xf32> to vector<64xf32>
    %49 = vector.shape_cast %48 : vector<64xf32> to vector<64x1xf32>
    %50 = vector.broadcast %49 : vector<64x1xf32> to vector<64x6xf32>
    %51 = arith.subf %47, %50 : vector<64x6xf32>
    %52 = math.exp %51 : vector<64x6xf32>
    %cst_27 = arith.constant dense<0.000000e+00> : vector<64xf32>
    %53 = vector.multi_reduction <add>, %52, %cst_27 [1] : vector<64x6xf32> to vector<64xf32>
    %54 = vector.shape_cast %53 : vector<64xf32> to vector<64x1xf32>
    %55 = vector.broadcast %54 : vector<64x1xf32> to vector<64x6xf32>
    %56 = arith.divf %52, %55 : vector<64x6xf32>
    %cst_28 = arith.constant dense<0.000000e+00> : vector<64x32xf32>
    %57 = tpu.matmul %56, %41, %cst_28 {dimension_numbers = #tpu.dot_dimension_numbers<[1], [0], [0], [1], [0, 0, 1, 1], [], []>} : vector<64x6xf32>, vector<6x32xf32>, vector<64x32xf32> -> vector<64x32xf32>
    %58 = arith.mulf %57, %0 : vector<64x32xf32>
    %59 = vector.extract_strided_slice %58 {offsets = [0, 0], sizes = [8, 32], strides = [1, 1]} : vector<64x32xf32> to vector<8x32xf32>
    %60 = vector.extract_strided_slice %58 {offsets = [8, 0], sizes = [8, 32], strides = [1, 1]} : vector<64x32xf32> to vector<8x32xf32>
    %61 = arith.addf %59, %60 : vector<8x32xf32>
    %62 = vector.extract_strided_slice %58 {offsets = [16, 0], sizes = [8, 32], strides = [1, 1]} : vector<64x32xf32> to vector<8x32xf32>
    %63 = arith.addf %61, %62 : vector<8x32xf32>
    %64 = vector.extract_strided_slice %58 {offsets = [24, 0], sizes = [8, 32], strides = [1, 1]} : vector<64x32xf32> to vector<8x32xf32>
    %65 = arith.addf %63, %64 : vector<8x32xf32>
    %66 = vector.extract_strided_slice %58 {offsets = [32, 0], sizes = [8, 32], strides = [1, 1]} : vector<64x32xf32> to vector<8x32xf32>
    %67 = arith.addf %65, %66 : vector<8x32xf32>
    %68 = vector.extract_strided_slice %58 {offsets = [40, 0], sizes = [8, 32], strides = [1, 1]} : vector<64x32xf32> to vector<8x32xf32>
    %69 = arith.addf %67, %68 : vector<8x32xf32>
    %70 = vector.extract_strided_slice %58 {offsets = [48, 0], sizes = [8, 32], strides = [1, 1]} : vector<64x32xf32> to vector<8x32xf32>
    %71 = arith.addf %69, %70 : vector<8x32xf32>
    %72 = vector.extract_strided_slice %58 {offsets = [56, 0], sizes = [8, 32], strides = [1, 1]} : vector<64x32xf32> to vector<8x32xf32>
    %73 = arith.addf %71, %72 : vector<8x32xf32>
    %74 = vector.extract_strided_slice %73 {offsets = [0, 0], sizes = [6, 32], strides = [1, 1]} : vector<8x32xf32> to vector<6x32xf32>
    %cst_29 = arith.constant dense<0.000000e+00> : vector<6x32xf32>
    %75 = tpu.matmul %74, %22, %cst_29 {dimension_numbers = #tpu.dot_dimension_numbers<[1], [0], [0], [1], [0, 0, 1, 1], [], []>} : vector<6x32xf32>, vector<32x32xf32>, vector<6x32xf32> -> vector<6x32xf32>
    %76 = arith.addf %17, %75 : vector<6x32xf32>
    %77 = vector.broadcast %30 : vector<1x32xf32> to vector<6x32xf32>
    %78 = arith.addf %76, %77 : vector<6x32xf32>
    %cst_30 = arith.constant dense<0.000000e+00> : vector<6xf32>
    %79 = vector.multi_reduction <add>, %78, %cst_30 [1] : vector<6x32xf32> to vector<6xf32>
    %80 = vector.shape_cast %79 : vector<6xf32> to vector<6x1xf32>
    %cst_31 = arith.constant 3.200000e+01 : f32
    %81 = vector.broadcast %cst_31 : f32 to vector<6x1xf32>
    %82 = arith.divf %80, %81 : vector<6x1xf32>
    %83 = vector.broadcast %82 : vector<6x1xf32> to vector<6x32xf32>
    %84 = arith.subf %78, %83 : vector<6x32xf32>
    %85 = arith.mulf %84, %84 : vector<6x32xf32>
    %cst_32 = arith.constant dense<0.000000e+00> : vector<6xf32>
    %86 = vector.multi_reduction <add>, %85, %cst_32 [1] : vector<6x32xf32> to vector<6xf32>
    %87 = vector.shape_cast %86 : vector<6xf32> to vector<6x1xf32>
    %cst_33 = arith.constant 3.200000e+01 : f32
    %88 = vector.broadcast %cst_33 : f32 to vector<6x1xf32>
    %89 = arith.divf %87, %88 : vector<6x1xf32>
    %cst_34 = arith.constant 9.99999974E-6 : f32
    %90 = vector.broadcast %cst_34 : f32 to vector<6x1xf32>
    %91 = arith.addf %89, %90 : vector<6x1xf32>
    %92 = math.rsqrt %91 : vector<6x1xf32>
    %93 = vector.broadcast %92 : vector<6x1xf32> to vector<6x32xf32>
    %94 = arith.mulf %84, %93 : vector<6x32xf32>
    %95 = vector.broadcast %32 : vector<1x32xf32> to vector<6x32xf32>
    %96 = arith.mulf %94, %95 : vector<6x32xf32>
    %97 = vector.broadcast %33 : vector<1x32xf32> to vector<6x32xf32>
    %98 = arith.addf %96, %97 : vector<6x32xf32>
    %cst_35 = arith.constant dense<0.000000e+00> : vector<6x64xf32>
    %99 = tpu.matmul %98, %23, %cst_35 {dimension_numbers = #tpu.dot_dimension_numbers<[1], [0], [0], [1], [0, 0, 1, 1], [], []>} : vector<6x32xf32>, vector<32x64xf32>, vector<6x64xf32> -> vector<6x64xf32>
    %100 = vector.broadcast %29 : vector<1x64xf32> to vector<6x64xf32>
    %101 = arith.addf %99, %100 : vector<6x64xf32>
    %cst_36 = arith.constant 0.000000e+00 : f32
    %102 = vector.broadcast %cst_36 : f32 to vector<6x64xf32>
    %103 = arith.maximumf %101, %102 : vector<6x64xf32>
    %cst_37 = arith.constant dense<0.000000e+00> : vector<6x32xf32>
    %104 = tpu.matmul %103, %25, %cst_37 {dimension_numbers = #tpu.dot_dimension_numbers<[1], [0], [0], [1], [0, 0, 1, 1], [], []>} : vector<6x64xf32>, vector<64x32xf32>, vector<6x32xf32> -> vector<6x32xf32>
    %105 = vector.broadcast %31 : vector<1x32xf32> to vector<6x32xf32>
    %106 = arith.addf %104, %105 : vector<6x32xf32>
    %107 = arith.addf %98, %106 : vector<6x32xf32>
    %cst_38 = arith.constant dense<0.000000e+00> : vector<6xf32>
    %108 = vector.multi_reduction <add>, %107, %cst_38 [1] : vector<6x32xf32> to vector<6xf32>
    %109 = vector.shape_cast %108 : vector<6xf32> to vector<6x1xf32>
    %cst_39 = arith.constant 3.200000e+01 : f32
    %110 = vector.broadcast %cst_39 : f32 to vector<6x1xf32>
    %111 = arith.divf %109, %110 : vector<6x1xf32>
    %112 = vector.broadcast %111 : vector<6x1xf32> to vector<6x32xf32>
    %113 = arith.subf %107, %112 : vector<6x32xf32>
    %114 = arith.mulf %113, %113 : vector<6x32xf32>
    %cst_40 = arith.constant dense<0.000000e+00> : vector<6xf32>
    %115 = vector.multi_reduction <add>, %114, %cst_40 [1] : vector<6x32xf32> to vector<6xf32>
    %116 = vector.shape_cast %115 : vector<6xf32> to vector<6x1xf32>
    %cst_41 = arith.constant 3.200000e+01 : f32
    %117 = vector.broadcast %cst_41 : f32 to vector<6x1xf32>
    %118 = arith.divf %116, %117 : vector<6x1xf32>
    %cst_42 = arith.constant 9.99999974E-6 : f32
    %119 = vector.broadcast %cst_42 : f32 to vector<6x1xf32>
    %120 = arith.addf %118, %119 : vector<6x1xf32>
    %121 = math.rsqrt %120 : vector<6x1xf32>
    %122 = vector.broadcast %121 : vector<6x1xf32> to vector<6x32xf32>
    %123 = arith.mulf %113, %122 : vector<6x32xf32>
    %124 = vector.broadcast %34 : vector<1x32xf32> to vector<6x32xf32>
    %125 = arith.mulf %123, %124 : vector<6x32xf32>
    %126 = vector.broadcast %35 : vector<1x32xf32> to vector<6x32xf32>
    %127 = arith.addf %125, %126 : vector<6x32xf32>
    %c1 = arith.constant 1 : index
    %c0_43 = arith.constant 0 : index
    %c0_44 = arith.constant 0 : index
    %128 = vector.load %arg3[%c1, %c0_43, %c0_44] : memref<4x32x192xf32, #tpu.memory_space<vmem>>, vector<1x32x192xf32>
    %129 = vector.shape_cast %128 : vector<1x32x192xf32> to vector<32x192xf32>
    %130 = vector.extract_strided_slice %129 {offsets = [0, 0], sizes = [32, 96], strides = [1, 1]} : vector<32x192xf32> to vector<32x96xf32>
    %131 = vector.extract_strided_slice %129 {offsets = [0, 96], sizes = [32, 32], strides = [1, 1]} : vector<32x192xf32> to vector<32x32xf32>
    %132 = vector.extract_strided_slice %129 {offsets = [0, 128], sizes = [32, 64], strides = [1, 1]} : vector<32x192xf32> to vector<32x64xf32>
    %c1_45 = arith.constant 1 : index
    %c0_46 = arith.constant 0 : index
    %c0_47 = arith.constant 0 : index
    %133 = vector.load %arg4[%c1_45, %c0_46, %c0_47] : memref<4x64x32xf32, #tpu.memory_space<vmem>>, vector<1x64x32xf32>
    %134 = vector.shape_cast %133 : vector<1x64x32xf32> to vector<64x32xf32>
    %c1_48 = arith.constant 1 : index
    %c0_49 = arith.constant 0 : index
    %c0_50 = arith.constant 0 : index
    %135 = vector.load %arg5[%c1_48, %c0_49, %c0_50] : memref<6x8x96xf32, #tpu.memory_space<vmem>>, vector<1x8x96xf32>
    %136 = vector.shape_cast %135 : vector<1x8x96xf32> to vector<8x96xf32>
    %137 = vector.extract_strided_slice %136 {offsets = [0, 0], sizes = [1, 96], strides = [1, 1]} : vector<8x96xf32> to vector<1x96xf32>
    %138 = vector.extract_strided_slice %136 {offsets = [1, 0], sizes = [1, 64], strides = [1, 1]} : vector<8x96xf32> to vector<1x64xf32>
    %139 = vector.extract_strided_slice %136 {offsets = [2, 0], sizes = [1, 32], strides = [1, 1]} : vector<8x96xf32> to vector<1x32xf32>
    %140 = vector.extract_strided_slice %136 {offsets = [3, 0], sizes = [1, 32], strides = [1, 1]} : vector<8x96xf32> to vector<1x32xf32>
    %141 = vector.extract_strided_slice %136 {offsets = [4, 0], sizes = [1, 32], strides = [1, 1]} : vector<8x96xf32> to vector<1x32xf32>
    %142 = vector.extract_strided_slice %136 {offsets = [5, 0], sizes = [1, 32], strides = [1, 1]} : vector<8x96xf32> to vector<1x32xf32>
    %143 = vector.extract_strided_slice %136 {offsets = [6, 0], sizes = [1, 32], strides = [1, 1]} : vector<8x96xf32> to vector<1x32xf32>
    %144 = vector.extract_strided_slice %136 {offsets = [7, 0], sizes = [1, 32], strides = [1, 1]} : vector<8x96xf32> to vector<1x32xf32>
    %cst_51 = arith.constant dense<0.000000e+00> : vector<6x96xf32>
    %145 = tpu.matmul %127, %130, %cst_51 {dimension_numbers = #tpu.dot_dimension_numbers<[1], [0], [0], [1], [0, 0, 1, 1], [], []>} : vector<6x32xf32>, vector<32x96xf32>, vector<6x96xf32> -> vector<6x96xf32>
    %146 = vector.broadcast %137 : vector<1x96xf32> to vector<6x96xf32>
    %147 = arith.addf %145, %146 : vector<6x96xf32>
    %148 = vector.extract_strided_slice %147 {offsets = [0, 0], sizes = [6, 32], strides = [1, 1]} : vector<6x96xf32> to vector<6x32xf32>
    %149 = vector.extract_strided_slice %147 {offsets = [0, 32], sizes = [6, 32], strides = [1, 1]} : vector<6x96xf32> to vector<6x32xf32>
    %150 = vector.extract_strided_slice %147 {offsets = [0, 64], sizes = [6, 32], strides = [1, 1]} : vector<6x96xf32> to vector<6x32xf32>
    %cst_52 = arith.constant 0.000000e+00 : f32
    %151 = vector.broadcast %cst_52 : f32 to vector<2x32xf32>
    %152 = tpu.concatenate %148, %151 in 0 : vector<6x32xf32>, vector<2x32xf32> -> vector<8x32xf32>
    %153 = tpu.concatenate %152, %152, %152, %152, %152, %152, %152, %152 in 0 : vector<8x32xf32>, vector<8x32xf32>, vector<8x32xf32>, vector<8x32xf32>, vector<8x32xf32>, vector<8x32xf32>, vector<8x32xf32>, vector<8x32xf32> -> vector<64x32xf32>
    %154 = arith.mulf %153, %0 : vector<64x32xf32>
    "tpu.trace_start"() <{level = 10 : i32, message = "qd,kd->qk"}> : () -> ()
    %cst_53 = arith.constant dense<0.000000e+00> : vector<64x6xf32>
    %155 = tpu.matmul %154, %149, %cst_53 {dimension_numbers = #tpu.dot_dimension_numbers<[1], [1], [0], [0], [0, 0, 1, 0], [], []>} : vector<64x32xf32>, vector<6x32xf32>, vector<64x6xf32> -> vector<64x6xf32>
    "tpu.trace_stop"() : () -> ()
    %156 = arith.addf %155, %1 : vector<64x6xf32>
    %cst_54 = arith.constant dense<0xFF800000> : vector<64xf32>
    %157 = vector.multi_reduction <maximumf>, %156, %cst_54 [1] : vector<64x6xf32> to vector<64xf32>
    %158 = vector.shape_cast %157 : vector<64xf32> to vector<64x1xf32>
    %159 = vector.broadcast %158 : vector<64x1xf32> to vector<64x6xf32>
    %160 = arith.subf %156, %159 : vector<64x6xf32>
    %161 = math.exp %160 : vector<64x6xf32>
    %cst_55 = arith.constant dense<0.000000e+00> : vector<64xf32>
    %162 = vector.multi_reduction <add>, %161, %cst_55 [1] : vector<64x6xf32> to vector<64xf32>
    %163 = vector.shape_cast %162 : vector<64xf32> to vector<64x1xf32>
    %164 = vector.broadcast %163 : vector<64x1xf32> to vector<64x6xf32>
    %165 = arith.divf %161, %164 : vector<64x6xf32>
    %cst_56 = arith.constant dense<0.000000e+00> : vector<64x32xf32>
    %166 = tpu.matmul %165, %150, %cst_56 {dimension_numbers = #tpu.dot_dimension_numbers<[1], [0], [0], [1], [0, 0, 1, 1], [], []>} : vector<64x6xf32>, vector<6x32xf32>, vector<64x32xf32> -> vector<64x32xf32>
    %167 = arith.mulf %166, %0 : vector<64x32xf32>
    %168 = vector.extract_strided_slice %167 {offsets = [0, 0], sizes = [8, 32], strides = [1, 1]} : vector<64x32xf32> to vector<8x32xf32>
    %169 = vector.extract_strided_slice %167 {offsets = [8, 0], sizes = [8, 32], strides = [1, 1]} : vector<64x32xf32> to vector<8x32xf32>
    %170 = arith.addf %168, %169 : vector<8x32xf32>
    %171 = vector.extract_strided_slice %167 {offsets = [16, 0], sizes = [8, 32], strides = [1, 1]} : vector<64x32xf32> to vector<8x32xf32>
    %172 = arith.addf %170, %171 : vector<8x32xf32>
    %173 = vector.extract_strided_slice %167 {offsets = [24, 0], sizes = [8, 32], strides = [1, 1]} : vector<64x32xf32> to vector<8x32xf32>
    %174 = arith.addf %172, %173 : vector<8x32xf32>
    %175 = vector.extract_strided_slice %167 {offsets = [32, 0], sizes = [8, 32], strides = [1, 1]} : vector<64x32xf32> to vector<8x32xf32>
    %176 = arith.addf %174, %175 : vector<8x32xf32>
    %177 = vector.extract_strided_slice %167 {offsets = [40, 0], sizes = [8, 32], strides = [1, 1]} : vector<64x32xf32> to vector<8x32xf32>
    %178 = arith.addf %176, %177 : vector<8x32xf32>
    %179 = vector.extract_strided_slice %167 {offsets = [48, 0], sizes = [8, 32], strides = [1, 1]} : vector<64x32xf32> to vector<8x32xf32>
    %180 = arith.addf %178, %179 : vector<8x32xf32>
    %181 = vector.extract_strided_slice %167 {offsets = [56, 0], sizes = [8, 32], strides = [1, 1]} : vector<64x32xf32> to vector<8x32xf32>
    %182 = arith.addf %180, %181 : vector<8x32xf32>
    %183 = vector.extract_strided_slice %182 {offsets = [0, 0], sizes = [6, 32], strides = [1, 1]} : vector<8x32xf32> to vector<6x32xf32>
    %cst_57 = arith.constant dense<0.000000e+00> : vector<6x32xf32>
    %184 = tpu.matmul %183, %131, %cst_57 {dimension_numbers = #tpu.dot_dimension_numbers<[1], [0], [0], [1], [0, 0, 1, 1], [], []>} : vector<6x32xf32>, vector<32x32xf32>, vector<6x32xf32> -> vector<6x32xf32>
    %185 = arith.addf %127, %184 : vector<6x32xf32>
    %186 = vector.broadcast %139 : vector<1x32xf32> to vector<6x32xf32>
    %187 = arith.addf %185, %186 : vector<6x32xf32>
    %cst_58 = arith.constant dense<0.000000e+00> : vector<6xf32>
    %188 = vector.multi_reduction <add>, %187, %cst_58 [1] : vector<6x32xf32> to vector<6xf32>
    %189 = vector.shape_cast %188 : vector<6xf32> to vector<6x1xf32>
    %cst_59 = arith.constant 3.200000e+01 : f32
    %190 = vector.broadcast %cst_59 : f32 to vector<6x1xf32>
    %191 = arith.divf %189, %190 : vector<6x1xf32>
    %192 = vector.broadcast %191 : vector<6x1xf32> to vector<6x32xf32>
    %193 = arith.subf %187, %192 : vector<6x32xf32>
    %194 = arith.mulf %193, %193 : vector<6x32xf32>
    %cst_60 = arith.constant dense<0.000000e+00> : vector<6xf32>
    %195 = vector.multi_reduction <add>, %194, %cst_60 [1] : vector<6x32xf32> to vector<6xf32>
    %196 = vector.shape_cast %195 : vector<6xf32> to vector<6x1xf32>
    %cst_61 = arith.constant 3.200000e+01 : f32
    %197 = vector.broadcast %cst_61 : f32 to vector<6x1xf32>
    %198 = arith.divf %196, %197 : vector<6x1xf32>
    %cst_62 = arith.constant 9.99999974E-6 : f32
    %199 = vector.broadcast %cst_62 : f32 to vector<6x1xf32>
    %200 = arith.addf %198, %199 : vector<6x1xf32>
    %201 = math.rsqrt %200 : vector<6x1xf32>
    %202 = vector.broadcast %201 : vector<6x1xf32> to vector<6x32xf32>
    %203 = arith.mulf %193, %202 : vector<6x32xf32>
    %204 = vector.broadcast %141 : vector<1x32xf32> to vector<6x32xf32>
    %205 = arith.mulf %203, %204 : vector<6x32xf32>
    %206 = vector.broadcast %142 : vector<1x32xf32> to vector<6x32xf32>
    %207 = arith.addf %205, %206 : vector<6x32xf32>
    %cst_63 = arith.constant dense<0.000000e+00> : vector<6x64xf32>
    %208 = tpu.matmul %207, %132, %cst_63 {dimension_numbers = #tpu.dot_dimension_numbers<[1], [0], [0], [1], [0, 0, 1, 1], [], []>} : vector<6x32xf32>, vector<32x64xf32>, vector<6x64xf32> -> vector<6x64xf32>
    %209 = vector.broadcast %138 : vector<1x64xf32> to vector<6x64xf32>
    %210 = arith.addf %208, %209 : vector<6x64xf32>
    %cst_64 = arith.constant 0.000000e+00 : f32
    %211 = vector.broadcast %cst_64 : f32 to vector<6x64xf32>
    %212 = arith.maximumf %210, %211 : vector<6x64xf32>
    %cst_65 = arith.constant dense<0.000000e+00> : vector<6x32xf32>
    %213 = tpu.matmul %212, %134, %cst_65 {dimension_numbers = #tpu.dot_dimension_numbers<[1], [0], [0], [1], [0, 0, 1, 1], [], []>} : vector<6x64xf32>, vector<64x32xf32>, vector<6x32xf32> -> vector<6x32xf32>
    %214 = vector.broadcast %140 : vector<1x32xf32> to vector<6x32xf32>
    %215 = arith.addf %213, %214 : vector<6x32xf32>
    %216 = arith.addf %207, %215 : vector<6x32xf32>
    %cst_66 = arith.constant dense<0.000000e+00> : vector<6xf32>
    %217 = vector.multi_reduction <add>, %216, %cst_66 [1] : vector<6x32xf32> to vector<6xf32>
    %218 = vector.shape_cast %217 : vector<6xf32> to vector<6x1xf32>
    %cst_67 = arith.constant 3.200000e+01 : f32
    %219 = vector.broadcast %cst_67 : f32 to vector<6x1xf32>
    %220 = arith.divf %218, %219 : vector<6x1xf32>
    %221 = vector.broadcast %220 : vector<6x1xf32> to vector<6x32xf32>
    %222 = arith.subf %216, %221 : vector<6x32xf32>
    %223 = arith.mulf %222, %222 : vector<6x32xf32>
    %cst_68 = arith.constant dense<0.000000e+00> : vector<6xf32>
    %224 = vector.multi_reduction <add>, %223, %cst_68 [1] : vector<6x32xf32> to vector<6xf32>
    %225 = vector.shape_cast %224 : vector<6xf32> to vector<6x1xf32>
    %cst_69 = arith.constant 3.200000e+01 : f32
    %226 = vector.broadcast %cst_69 : f32 to vector<6x1xf32>
    %227 = arith.divf %225, %226 : vector<6x1xf32>
    %cst_70 = arith.constant 9.99999974E-6 : f32
    %228 = vector.broadcast %cst_70 : f32 to vector<6x1xf32>
    %229 = arith.addf %227, %228 : vector<6x1xf32>
    %230 = math.rsqrt %229 : vector<6x1xf32>
    %231 = vector.broadcast %230 : vector<6x1xf32> to vector<6x32xf32>
    %232 = arith.mulf %222, %231 : vector<6x32xf32>
    %233 = vector.broadcast %143 : vector<1x32xf32> to vector<6x32xf32>
    %234 = arith.mulf %232, %233 : vector<6x32xf32>
    %235 = vector.broadcast %144 : vector<1x32xf32> to vector<6x32xf32>
    %236 = arith.addf %234, %235 : vector<6x32xf32>
    %c2 = arith.constant 2 : index
    %c0_71 = arith.constant 0 : index
    %c0_72 = arith.constant 0 : index
    %237 = vector.load %arg3[%c2, %c0_71, %c0_72] : memref<4x32x192xf32, #tpu.memory_space<vmem>>, vector<1x32x192xf32>
    %238 = vector.shape_cast %237 : vector<1x32x192xf32> to vector<32x192xf32>
    %239 = vector.extract_strided_slice %238 {offsets = [0, 0], sizes = [32, 96], strides = [1, 1]} : vector<32x192xf32> to vector<32x96xf32>
    %240 = vector.extract_strided_slice %238 {offsets = [0, 96], sizes = [32, 32], strides = [1, 1]} : vector<32x192xf32> to vector<32x32xf32>
    %241 = vector.extract_strided_slice %238 {offsets = [0, 128], sizes = [32, 64], strides = [1, 1]} : vector<32x192xf32> to vector<32x64xf32>
    %c2_73 = arith.constant 2 : index
    %c0_74 = arith.constant 0 : index
    %c0_75 = arith.constant 0 : index
    %242 = vector.load %arg4[%c2_73, %c0_74, %c0_75] : memref<4x64x32xf32, #tpu.memory_space<vmem>>, vector<1x64x32xf32>
    %243 = vector.shape_cast %242 : vector<1x64x32xf32> to vector<64x32xf32>
    %c2_76 = arith.constant 2 : index
    %c0_77 = arith.constant 0 : index
    %c0_78 = arith.constant 0 : index
    %244 = vector.load %arg5[%c2_76, %c0_77, %c0_78] : memref<6x8x96xf32, #tpu.memory_space<vmem>>, vector<1x8x96xf32>
    %245 = vector.shape_cast %244 : vector<1x8x96xf32> to vector<8x96xf32>
    %246 = vector.extract_strided_slice %245 {offsets = [0, 0], sizes = [1, 96], strides = [1, 1]} : vector<8x96xf32> to vector<1x96xf32>
    %247 = vector.extract_strided_slice %245 {offsets = [1, 0], sizes = [1, 64], strides = [1, 1]} : vector<8x96xf32> to vector<1x64xf32>
    %248 = vector.extract_strided_slice %245 {offsets = [2, 0], sizes = [1, 32], strides = [1, 1]} : vector<8x96xf32> to vector<1x32xf32>
    %249 = vector.extract_strided_slice %245 {offsets = [3, 0], sizes = [1, 32], strides = [1, 1]} : vector<8x96xf32> to vector<1x32xf32>
    %250 = vector.extract_strided_slice %245 {offsets = [4, 0], sizes = [1, 32], strides = [1, 1]} : vector<8x96xf32> to vector<1x32xf32>
    %251 = vector.extract_strided_slice %245 {offsets = [5, 0], sizes = [1, 32], strides = [1, 1]} : vector<8x96xf32> to vector<1x32xf32>
    %252 = vector.extract_strided_slice %245 {offsets = [6, 0], sizes = [1, 32], strides = [1, 1]} : vector<8x96xf32> to vector<1x32xf32>
    %253 = vector.extract_strided_slice %245 {offsets = [7, 0], sizes = [1, 32], strides = [1, 1]} : vector<8x96xf32> to vector<1x32xf32>
    %cst_79 = arith.constant dense<0.000000e+00> : vector<6x96xf32>
    %254 = tpu.matmul %236, %239, %cst_79 {dimension_numbers = #tpu.dot_dimension_numbers<[1], [0], [0], [1], [0, 0, 1, 1], [], []>} : vector<6x32xf32>, vector<32x96xf32>, vector<6x96xf32> -> vector<6x96xf32>
    %255 = vector.broadcast %246 : vector<1x96xf32> to vector<6x96xf32>
    %256 = arith.addf %254, %255 : vector<6x96xf32>
    %257 = vector.extract_strided_slice %256 {offsets = [0, 0], sizes = [6, 32], strides = [1, 1]} : vector<6x96xf32> to vector<6x32xf32>
    %258 = vector.extract_strided_slice %256 {offsets = [0, 32], sizes = [6, 32], strides = [1, 1]} : vector<6x96xf32> to vector<6x32xf32>
    %259 = vector.extract_strided_slice %256 {offsets = [0, 64], sizes = [6, 32], strides = [1, 1]} : vector<6x96xf32> to vector<6x32xf32>
    %cst_80 = arith.constant 0.000000e+00 : f32
    %260 = vector.broadcast %cst_80 : f32 to vector<2x32xf32>
    %261 = tpu.concatenate %257, %260 in 0 : vector<6x32xf32>, vector<2x32xf32> -> vector<8x32xf32>
    %262 = tpu.concatenate %261, %261, %261, %261, %261, %261, %261, %261 in 0 : vector<8x32xf32>, vector<8x32xf32>, vector<8x32xf32>, vector<8x32xf32>, vector<8x32xf32>, vector<8x32xf32>, vector<8x32xf32>, vector<8x32xf32> -> vector<64x32xf32>
    %263 = arith.mulf %262, %0 : vector<64x32xf32>
    "tpu.trace_start"() <{level = 10 : i32, message = "qd,kd->qk"}> : () -> ()
    %cst_81 = arith.constant dense<0.000000e+00> : vector<64x6xf32>
    %264 = tpu.matmul %263, %258, %cst_81 {dimension_numbers = #tpu.dot_dimension_numbers<[1], [1], [0], [0], [0, 0, 1, 0], [], []>} : vector<64x32xf32>, vector<6x32xf32>, vector<64x6xf32> -> vector<64x6xf32>
    "tpu.trace_stop"() : () -> ()
    %265 = arith.addf %264, %1 : vector<64x6xf32>
    %cst_82 = arith.constant dense<0xFF800000> : vector<64xf32>
    %266 = vector.multi_reduction <maximumf>, %265, %cst_82 [1] : vector<64x6xf32> to vector<64xf32>
    %267 = vector.shape_cast %266 : vector<64xf32> to vector<64x1xf32>
    %268 = vector.broadcast %267 : vector<64x1xf32> to vector<64x6xf32>
    %269 = arith.subf %265, %268 : vector<64x6xf32>
    %270 = math.exp %269 : vector<64x6xf32>
    %cst_83 = arith.constant dense<0.000000e+00> : vector<64xf32>
    %271 = vector.multi_reduction <add>, %270, %cst_83 [1] : vector<64x6xf32> to vector<64xf32>
    %272 = vector.shape_cast %271 : vector<64xf32> to vector<64x1xf32>
    %273 = vector.broadcast %272 : vector<64x1xf32> to vector<64x6xf32>
    %274 = arith.divf %270, %273 : vector<64x6xf32>
    %cst_84 = arith.constant dense<0.000000e+00> : vector<64x32xf32>
    %275 = tpu.matmul %274, %259, %cst_84 {dimension_numbers = #tpu.dot_dimension_numbers<[1], [0], [0], [1], [0, 0, 1, 1], [], []>} : vector<64x6xf32>, vector<6x32xf32>, vector<64x32xf32> -> vector<64x32xf32>
    %276 = arith.mulf %275, %0 : vector<64x32xf32>
    %277 = vector.extract_strided_slice %276 {offsets = [0, 0], sizes = [8, 32], strides = [1, 1]} : vector<64x32xf32> to vector<8x32xf32>
    %278 = vector.extract_strided_slice %276 {offsets = [8, 0], sizes = [8, 32], strides = [1, 1]} : vector<64x32xf32> to vector<8x32xf32>
    %279 = arith.addf %277, %278 : vector<8x32xf32>
    %280 = vector.extract_strided_slice %276 {offsets = [16, 0], sizes = [8, 32], strides = [1, 1]} : vector<64x32xf32> to vector<8x32xf32>
    %281 = arith.addf %279, %280 : vector<8x32xf32>
    %282 = vector.extract_strided_slice %276 {offsets = [24, 0], sizes = [8, 32], strides = [1, 1]} : vector<64x32xf32> to vector<8x32xf32>
    %283 = arith.addf %281, %282 : vector<8x32xf32>
    %284 = vector.extract_strided_slice %276 {offsets = [32, 0], sizes = [8, 32], strides = [1, 1]} : vector<64x32xf32> to vector<8x32xf32>
    %285 = arith.addf %283, %284 : vector<8x32xf32>
    %286 = vector.extract_strided_slice %276 {offsets = [40, 0], sizes = [8, 32], strides = [1, 1]} : vector<64x32xf32> to vector<8x32xf32>
    %287 = arith.addf %285, %286 : vector<8x32xf32>
    %288 = vector.extract_strided_slice %276 {offsets = [48, 0], sizes = [8, 32], strides = [1, 1]} : vector<64x32xf32> to vector<8x32xf32>
    %289 = arith.addf %287, %288 : vector<8x32xf32>
    %290 = vector.extract_strided_slice %276 {offsets = [56, 0], sizes = [8, 32], strides = [1, 1]} : vector<64x32xf32> to vector<8x32xf32>
    %291 = arith.addf %289, %290 : vector<8x32xf32>
    %292 = vector.extract_strided_slice %291 {offsets = [0, 0], sizes = [6, 32], strides = [1, 1]} : vector<8x32xf32> to vector<6x32xf32>
    %cst_85 = arith.constant dense<0.000000e+00> : vector<6x32xf32>
    %293 = tpu.matmul %292, %240, %cst_85 {dimension_numbers = #tpu.dot_dimension_numbers<[1], [0], [0], [1], [0, 0, 1, 1], [], []>} : vector<6x32xf32>, vector<32x32xf32>, vector<6x32xf32> -> vector<6x32xf32>
    %294 = arith.addf %236, %293 : vector<6x32xf32>
    %295 = vector.broadcast %248 : vector<1x32xf32> to vector<6x32xf32>
    %296 = arith.addf %294, %295 : vector<6x32xf32>
    %cst_86 = arith.constant dense<0.000000e+00> : vector<6xf32>
    %297 = vector.multi_reduction <add>, %296, %cst_86 [1] : vector<6x32xf32> to vector<6xf32>
    %298 = vector.shape_cast %297 : vector<6xf32> to vector<6x1xf32>
    %cst_87 = arith.constant 3.200000e+01 : f32
    %299 = vector.broadcast %cst_87 : f32 to vector<6x1xf32>
    %300 = arith.divf %298, %299 : vector<6x1xf32>
    %301 = vector.broadcast %300 : vector<6x1xf32> to vector<6x32xf32>
    %302 = arith.subf %296, %301 : vector<6x32xf32>
    %303 = arith.mulf %302, %302 : vector<6x32xf32>
    %cst_88 = arith.constant dense<0.000000e+00> : vector<6xf32>
    %304 = vector.multi_reduction <add>, %303, %cst_88 [1] : vector<6x32xf32> to vector<6xf32>
    %305 = vector.shape_cast %304 : vector<6xf32> to vector<6x1xf32>
    %cst_89 = arith.constant 3.200000e+01 : f32
    %306 = vector.broadcast %cst_89 : f32 to vector<6x1xf32>
    %307 = arith.divf %305, %306 : vector<6x1xf32>
    %cst_90 = arith.constant 9.99999974E-6 : f32
    %308 = vector.broadcast %cst_90 : f32 to vector<6x1xf32>
    %309 = arith.addf %307, %308 : vector<6x1xf32>
    %310 = math.rsqrt %309 : vector<6x1xf32>
    %311 = vector.broadcast %310 : vector<6x1xf32> to vector<6x32xf32>
    %312 = arith.mulf %302, %311 : vector<6x32xf32>
    %313 = vector.broadcast %250 : vector<1x32xf32> to vector<6x32xf32>
    %314 = arith.mulf %312, %313 : vector<6x32xf32>
    %315 = vector.broadcast %251 : vector<1x32xf32> to vector<6x32xf32>
    %316 = arith.addf %314, %315 : vector<6x32xf32>
    %cst_91 = arith.constant dense<0.000000e+00> : vector<6x64xf32>
    %317 = tpu.matmul %316, %241, %cst_91 {dimension_numbers = #tpu.dot_dimension_numbers<[1], [0], [0], [1], [0, 0, 1, 1], [], []>} : vector<6x32xf32>, vector<32x64xf32>, vector<6x64xf32> -> vector<6x64xf32>
    %318 = vector.broadcast %247 : vector<1x64xf32> to vector<6x64xf32>
    %319 = arith.addf %317, %318 : vector<6x64xf32>
    %cst_92 = arith.constant 0.000000e+00 : f32
    %320 = vector.broadcast %cst_92 : f32 to vector<6x64xf32>
    %321 = arith.maximumf %319, %320 : vector<6x64xf32>
    %cst_93 = arith.constant dense<0.000000e+00> : vector<6x32xf32>
    %322 = tpu.matmul %321, %243, %cst_93 {dimension_numbers = #tpu.dot_dimension_numbers<[1], [0], [0], [1], [0, 0, 1, 1], [], []>} : vector<6x64xf32>, vector<64x32xf32>, vector<6x32xf32> -> vector<6x32xf32>
    %323 = vector.broadcast %249 : vector<1x32xf32> to vector<6x32xf32>
    %324 = arith.addf %322, %323 : vector<6x32xf32>
    %325 = arith.addf %316, %324 : vector<6x32xf32>
    %cst_94 = arith.constant dense<0.000000e+00> : vector<6xf32>
    %326 = vector.multi_reduction <add>, %325, %cst_94 [1] : vector<6x32xf32> to vector<6xf32>
    %327 = vector.shape_cast %326 : vector<6xf32> to vector<6x1xf32>
    %cst_95 = arith.constant 3.200000e+01 : f32
    %328 = vector.broadcast %cst_95 : f32 to vector<6x1xf32>
    %329 = arith.divf %327, %328 : vector<6x1xf32>
    %330 = vector.broadcast %329 : vector<6x1xf32> to vector<6x32xf32>
    %331 = arith.subf %325, %330 : vector<6x32xf32>
    %332 = arith.mulf %331, %331 : vector<6x32xf32>
    %cst_96 = arith.constant dense<0.000000e+00> : vector<6xf32>
    %333 = vector.multi_reduction <add>, %332, %cst_96 [1] : vector<6x32xf32> to vector<6xf32>
    %334 = vector.shape_cast %333 : vector<6xf32> to vector<6x1xf32>
    %cst_97 = arith.constant 3.200000e+01 : f32
    %335 = vector.broadcast %cst_97 : f32 to vector<6x1xf32>
    %336 = arith.divf %334, %335 : vector<6x1xf32>
    %cst_98 = arith.constant 9.99999974E-6 : f32
    %337 = vector.broadcast %cst_98 : f32 to vector<6x1xf32>
    %338 = arith.addf %336, %337 : vector<6x1xf32>
    %339 = math.rsqrt %338 : vector<6x1xf32>
    %340 = vector.broadcast %339 : vector<6x1xf32> to vector<6x32xf32>
    %341 = arith.mulf %331, %340 : vector<6x32xf32>
    %342 = vector.broadcast %252 : vector<1x32xf32> to vector<6x32xf32>
    %343 = arith.mulf %341, %342 : vector<6x32xf32>
    %344 = vector.broadcast %253 : vector<1x32xf32> to vector<6x32xf32>
    %345 = arith.addf %343, %344 : vector<6x32xf32>
    %c3 = arith.constant 3 : index
    %c0_99 = arith.constant 0 : index
    %c0_100 = arith.constant 0 : index
    %346 = vector.load %arg3[%c3, %c0_99, %c0_100] : memref<4x32x192xf32, #tpu.memory_space<vmem>>, vector<1x32x192xf32>
    %347 = vector.shape_cast %346 : vector<1x32x192xf32> to vector<32x192xf32>
    %348 = vector.extract_strided_slice %347 {offsets = [0, 0], sizes = [32, 96], strides = [1, 1]} : vector<32x192xf32> to vector<32x96xf32>
    %349 = vector.extract_strided_slice %347 {offsets = [0, 96], sizes = [32, 32], strides = [1, 1]} : vector<32x192xf32> to vector<32x32xf32>
    %350 = vector.extract_strided_slice %347 {offsets = [0, 128], sizes = [32, 64], strides = [1, 1]} : vector<32x192xf32> to vector<32x64xf32>
    %c3_101 = arith.constant 3 : index
    %c0_102 = arith.constant 0 : index
    %c0_103 = arith.constant 0 : index
    %351 = vector.load %arg4[%c3_101, %c0_102, %c0_103] : memref<4x64x32xf32, #tpu.memory_space<vmem>>, vector<1x64x32xf32>
    %352 = vector.shape_cast %351 : vector<1x64x32xf32> to vector<64x32xf32>
    %c3_104 = arith.constant 3 : index
    %c0_105 = arith.constant 0 : index
    %c0_106 = arith.constant 0 : index
    %353 = vector.load %arg5[%c3_104, %c0_105, %c0_106] : memref<6x8x96xf32, #tpu.memory_space<vmem>>, vector<1x8x96xf32>
    %354 = vector.shape_cast %353 : vector<1x8x96xf32> to vector<8x96xf32>
    %355 = vector.extract_strided_slice %354 {offsets = [0, 0], sizes = [1, 96], strides = [1, 1]} : vector<8x96xf32> to vector<1x96xf32>
    %356 = vector.extract_strided_slice %354 {offsets = [1, 0], sizes = [1, 64], strides = [1, 1]} : vector<8x96xf32> to vector<1x64xf32>
    %357 = vector.extract_strided_slice %354 {offsets = [2, 0], sizes = [1, 32], strides = [1, 1]} : vector<8x96xf32> to vector<1x32xf32>
    %358 = vector.extract_strided_slice %354 {offsets = [3, 0], sizes = [1, 32], strides = [1, 1]} : vector<8x96xf32> to vector<1x32xf32>
    %359 = vector.extract_strided_slice %354 {offsets = [4, 0], sizes = [1, 32], strides = [1, 1]} : vector<8x96xf32> to vector<1x32xf32>
    %360 = vector.extract_strided_slice %354 {offsets = [5, 0], sizes = [1, 32], strides = [1, 1]} : vector<8x96xf32> to vector<1x32xf32>
    %361 = vector.extract_strided_slice %354 {offsets = [6, 0], sizes = [1, 32], strides = [1, 1]} : vector<8x96xf32> to vector<1x32xf32>
    %362 = vector.extract_strided_slice %354 {offsets = [7, 0], sizes = [1, 32], strides = [1, 1]} : vector<8x96xf32> to vector<1x32xf32>
    %cst_107 = arith.constant dense<0.000000e+00> : vector<6x96xf32>
    %363 = tpu.matmul %345, %348, %cst_107 {dimension_numbers = #tpu.dot_dimension_numbers<[1], [0], [0], [1], [0, 0, 1, 1], [], []>} : vector<6x32xf32>, vector<32x96xf32>, vector<6x96xf32> -> vector<6x96xf32>
    %364 = vector.broadcast %355 : vector<1x96xf32> to vector<6x96xf32>
    %365 = arith.addf %363, %364 : vector<6x96xf32>
    %366 = vector.extract_strided_slice %365 {offsets = [0, 0], sizes = [6, 32], strides = [1, 1]} : vector<6x96xf32> to vector<6x32xf32>
    %367 = vector.extract_strided_slice %365 {offsets = [0, 32], sizes = [6, 32], strides = [1, 1]} : vector<6x96xf32> to vector<6x32xf32>
    %368 = vector.extract_strided_slice %365 {offsets = [0, 64], sizes = [6, 32], strides = [1, 1]} : vector<6x96xf32> to vector<6x32xf32>
    %cst_108 = arith.constant 0.000000e+00 : f32
    %369 = vector.broadcast %cst_108 : f32 to vector<2x32xf32>
    %370 = tpu.concatenate %366, %369 in 0 : vector<6x32xf32>, vector<2x32xf32> -> vector<8x32xf32>
    %371 = tpu.concatenate %370, %370, %370, %370, %370, %370, %370, %370 in 0 : vector<8x32xf32>, vector<8x32xf32>, vector<8x32xf32>, vector<8x32xf32>, vector<8x32xf32>, vector<8x32xf32>, vector<8x32xf32>, vector<8x32xf32> -> vector<64x32xf32>
    %372 = arith.mulf %371, %0 : vector<64x32xf32>
    "tpu.trace_start"() <{level = 10 : i32, message = "qd,kd->qk"}> : () -> ()
    %cst_109 = arith.constant dense<0.000000e+00> : vector<64x6xf32>
    %373 = tpu.matmul %372, %367, %cst_109 {dimension_numbers = #tpu.dot_dimension_numbers<[1], [1], [0], [0], [0, 0, 1, 0], [], []>} : vector<64x32xf32>, vector<6x32xf32>, vector<64x6xf32> -> vector<64x6xf32>
    "tpu.trace_stop"() : () -> ()
    %374 = arith.addf %373, %1 : vector<64x6xf32>
    %cst_110 = arith.constant dense<0xFF800000> : vector<64xf32>
    %375 = vector.multi_reduction <maximumf>, %374, %cst_110 [1] : vector<64x6xf32> to vector<64xf32>
    %376 = vector.shape_cast %375 : vector<64xf32> to vector<64x1xf32>
    %377 = vector.broadcast %376 : vector<64x1xf32> to vector<64x6xf32>
    %378 = arith.subf %374, %377 : vector<64x6xf32>
    %379 = math.exp %378 : vector<64x6xf32>
    %cst_111 = arith.constant dense<0.000000e+00> : vector<64xf32>
    %380 = vector.multi_reduction <add>, %379, %cst_111 [1] : vector<64x6xf32> to vector<64xf32>
    %381 = vector.shape_cast %380 : vector<64xf32> to vector<64x1xf32>
    %382 = vector.broadcast %381 : vector<64x1xf32> to vector<64x6xf32>
    %383 = arith.divf %379, %382 : vector<64x6xf32>
    %cst_112 = arith.constant dense<0.000000e+00> : vector<64x32xf32>
    %384 = tpu.matmul %383, %368, %cst_112 {dimension_numbers = #tpu.dot_dimension_numbers<[1], [0], [0], [1], [0, 0, 1, 1], [], []>} : vector<64x6xf32>, vector<6x32xf32>, vector<64x32xf32> -> vector<64x32xf32>
    %385 = arith.mulf %384, %0 : vector<64x32xf32>
    %386 = vector.extract_strided_slice %385 {offsets = [0, 0], sizes = [8, 32], strides = [1, 1]} : vector<64x32xf32> to vector<8x32xf32>
    %387 = vector.extract_strided_slice %385 {offsets = [8, 0], sizes = [8, 32], strides = [1, 1]} : vector<64x32xf32> to vector<8x32xf32>
    %388 = arith.addf %386, %387 : vector<8x32xf32>
    %389 = vector.extract_strided_slice %385 {offsets = [16, 0], sizes = [8, 32], strides = [1, 1]} : vector<64x32xf32> to vector<8x32xf32>
    %390 = arith.addf %388, %389 : vector<8x32xf32>
    %391 = vector.extract_strided_slice %385 {offsets = [24, 0], sizes = [8, 32], strides = [1, 1]} : vector<64x32xf32> to vector<8x32xf32>
    %392 = arith.addf %390, %391 : vector<8x32xf32>
    %393 = vector.extract_strided_slice %385 {offsets = [32, 0], sizes = [8, 32], strides = [1, 1]} : vector<64x32xf32> to vector<8x32xf32>
    %394 = arith.addf %392, %393 : vector<8x32xf32>
    %395 = vector.extract_strided_slice %385 {offsets = [40, 0], sizes = [8, 32], strides = [1, 1]} : vector<64x32xf32> to vector<8x32xf32>
    %396 = arith.addf %394, %395 : vector<8x32xf32>
    %397 = vector.extract_strided_slice %385 {offsets = [48, 0], sizes = [8, 32], strides = [1, 1]} : vector<64x32xf32> to vector<8x32xf32>
    %398 = arith.addf %396, %397 : vector<8x32xf32>
    %399 = vector.extract_strided_slice %385 {offsets = [56, 0], sizes = [8, 32], strides = [1, 1]} : vector<64x32xf32> to vector<8x32xf32>
    %400 = arith.addf %398, %399 : vector<8x32xf32>
    %401 = vector.extract_strided_slice %400 {offsets = [0, 0], sizes = [6, 32], strides = [1, 1]} : vector<8x32xf32> to vector<6x32xf32>
    %cst_113 = arith.constant dense<0.000000e+00> : vector<6x32xf32>
    %402 = tpu.matmul %401, %349, %cst_113 {dimension_numbers = #tpu.dot_dimension_numbers<[1], [0], [0], [1], [0, 0, 1, 1], [], []>} : vector<6x32xf32>, vector<32x32xf32>, vector<6x32xf32> -> vector<6x32xf32>
    %403 = arith.addf %345, %402 : vector<6x32xf32>
    %404 = vector.broadcast %357 : vector<1x32xf32> to vector<6x32xf32>
    %405 = arith.addf %403, %404 : vector<6x32xf32>
    %cst_114 = arith.constant dense<0.000000e+00> : vector<6xf32>
    %406 = vector.multi_reduction <add>, %405, %cst_114 [1] : vector<6x32xf32> to vector<6xf32>
    %407 = vector.shape_cast %406 : vector<6xf32> to vector<6x1xf32>
    %cst_115 = arith.constant 3.200000e+01 : f32
    %408 = vector.broadcast %cst_115 : f32 to vector<6x1xf32>
    %409 = arith.divf %407, %408 : vector<6x1xf32>
    %410 = vector.broadcast %409 : vector<6x1xf32> to vector<6x32xf32>
    %411 = arith.subf %405, %410 : vector<6x32xf32>
    %412 = arith.mulf %411, %411 : vector<6x32xf32>
    %cst_116 = arith.constant dense<0.000000e+00> : vector<6xf32>
    %413 = vector.multi_reduction <add>, %412, %cst_116 [1] : vector<6x32xf32> to vector<6xf32>
    %414 = vector.shape_cast %413 : vector<6xf32> to vector<6x1xf32>
    %cst_117 = arith.constant 3.200000e+01 : f32
    %415 = vector.broadcast %cst_117 : f32 to vector<6x1xf32>
    %416 = arith.divf %414, %415 : vector<6x1xf32>
    %cst_118 = arith.constant 9.99999974E-6 : f32
    %417 = vector.broadcast %cst_118 : f32 to vector<6x1xf32>
    %418 = arith.addf %416, %417 : vector<6x1xf32>
    %419 = math.rsqrt %418 : vector<6x1xf32>
    %420 = vector.broadcast %419 : vector<6x1xf32> to vector<6x32xf32>
    %421 = arith.mulf %411, %420 : vector<6x32xf32>
    %422 = vector.broadcast %359 : vector<1x32xf32> to vector<6x32xf32>
    %423 = arith.mulf %421, %422 : vector<6x32xf32>
    %424 = vector.broadcast %360 : vector<1x32xf32> to vector<6x32xf32>
    %425 = arith.addf %423, %424 : vector<6x32xf32>
    %cst_119 = arith.constant dense<0.000000e+00> : vector<6x64xf32>
    %426 = tpu.matmul %425, %350, %cst_119 {dimension_numbers = #tpu.dot_dimension_numbers<[1], [0], [0], [1], [0, 0, 1, 1], [], []>} : vector<6x32xf32>, vector<32x64xf32>, vector<6x64xf32> -> vector<6x64xf32>
    %427 = vector.broadcast %356 : vector<1x64xf32> to vector<6x64xf32>
    %428 = arith.addf %426, %427 : vector<6x64xf32>
    %cst_120 = arith.constant 0.000000e+00 : f32
    %429 = vector.broadcast %cst_120 : f32 to vector<6x64xf32>
    %430 = arith.maximumf %428, %429 : vector<6x64xf32>
    %cst_121 = arith.constant dense<0.000000e+00> : vector<6x32xf32>
    %431 = tpu.matmul %430, %352, %cst_121 {dimension_numbers = #tpu.dot_dimension_numbers<[1], [0], [0], [1], [0, 0, 1, 1], [], []>} : vector<6x64xf32>, vector<64x32xf32>, vector<6x32xf32> -> vector<6x32xf32>
    %432 = vector.broadcast %358 : vector<1x32xf32> to vector<6x32xf32>
    %433 = arith.addf %431, %432 : vector<6x32xf32>
    %434 = arith.addf %425, %433 : vector<6x32xf32>
    %cst_122 = arith.constant dense<0.000000e+00> : vector<6xf32>
    %435 = vector.multi_reduction <add>, %434, %cst_122 [1] : vector<6x32xf32> to vector<6xf32>
    %436 = vector.shape_cast %435 : vector<6xf32> to vector<6x1xf32>
    %cst_123 = arith.constant 3.200000e+01 : f32
    %437 = vector.broadcast %cst_123 : f32 to vector<6x1xf32>
    %438 = arith.divf %436, %437 : vector<6x1xf32>
    %439 = vector.broadcast %438 : vector<6x1xf32> to vector<6x32xf32>
    %440 = arith.subf %434, %439 : vector<6x32xf32>
    %441 = arith.mulf %440, %440 : vector<6x32xf32>
    %cst_124 = arith.constant dense<0.000000e+00> : vector<6xf32>
    %442 = vector.multi_reduction <add>, %441, %cst_124 [1] : vector<6x32xf32> to vector<6xf32>
    %443 = vector.shape_cast %442 : vector<6xf32> to vector<6x1xf32>
    %cst_125 = arith.constant 3.200000e+01 : f32
    %444 = vector.broadcast %cst_125 : f32 to vector<6x1xf32>
    %445 = arith.divf %443, %444 : vector<6x1xf32>
    %cst_126 = arith.constant 9.99999974E-6 : f32
    %446 = vector.broadcast %cst_126 : f32 to vector<6x1xf32>
    %447 = arith.addf %445, %446 : vector<6x1xf32>
    %448 = math.rsqrt %447 : vector<6x1xf32>
    %449 = vector.broadcast %448 : vector<6x1xf32> to vector<6x32xf32>
    %450 = arith.mulf %440, %449 : vector<6x32xf32>
    %451 = vector.broadcast %361 : vector<1x32xf32> to vector<6x32xf32>
    %452 = arith.mulf %450, %451 : vector<6x32xf32>
    %453 = vector.broadcast %362 : vector<1x32xf32> to vector<6x32xf32>
    %454 = arith.addf %452, %453 : vector<6x32xf32>
    %c197 = arith.constant 197 : index
    %c0_127 = arith.constant 0 : index
    %455 = vector.load %arg7[%c197, %c0_127] : memref<200x32xf32, #tpu.memory_space<vmem>>, vector<1x32xf32>
    %456 = tpu.concatenate %455, %455, %18 in 0 : vector<1x32xf32>, vector<1x32xf32>, vector<2x32xf32> -> vector<4x32xf32>
    %c0_128 = arith.constant 0 : index
    %c0_129 = arith.constant 0 : index
    %c0_130 = arith.constant 0 : index
    %457 = vector.load %arg6[%c0_128, %c0_129, %c0_130] : memref<2x32x128xf32, #tpu.memory_space<vmem>>, vector<1x32x128xf32>
    %458 = vector.shape_cast %457 : vector<1x32x128xf32> to vector<32x128xf32>
    %459 = vector.extract_strided_slice %458 {offsets = [0, 0], sizes = [32, 32], strides = [1, 1]} : vector<32x128xf32> to vector<32x32xf32>
    %460 = vector.extract_strided_slice %458 {offsets = [0, 32], sizes = [32, 64], strides = [1, 1]} : vector<32x128xf32> to vector<32x64xf32>
    %461 = vector.extract_strided_slice %458 {offsets = [0, 96], sizes = [32, 32], strides = [1, 1]} : vector<32x128xf32> to vector<32x32xf32>
    %c4 = arith.constant 4 : index
    %c0_131 = arith.constant 0 : index
    %c0_132 = arith.constant 0 : index
    %462 = vector.load %arg5[%c4, %c0_131, %c0_132] : memref<6x8x96xf32, #tpu.memory_space<vmem>>, vector<1x8x96xf32>
    %463 = vector.shape_cast %462 : vector<1x8x96xf32> to vector<8x96xf32>
    %464 = vector.extract_strided_slice %463 {offsets = [0, 0], sizes = [1, 32], strides = [1, 1]} : vector<8x96xf32> to vector<1x32xf32>
    %465 = vector.extract_strided_slice %463 {offsets = [1, 0], sizes = [1, 64], strides = [1, 1]} : vector<8x96xf32> to vector<1x64xf32>
    %466 = vector.extract_strided_slice %463 {offsets = [2, 0], sizes = [1, 32], strides = [1, 1]} : vector<8x96xf32> to vector<1x32xf32>
    %467 = vector.extract_strided_slice %463 {offsets = [3, 0], sizes = [1, 32], strides = [1, 1]} : vector<8x96xf32> to vector<1x32xf32>
    %468 = vector.extract_strided_slice %463 {offsets = [4, 0], sizes = [1, 32], strides = [1, 1]} : vector<8x96xf32> to vector<1x32xf32>
    %469 = vector.extract_strided_slice %463 {offsets = [5, 0], sizes = [1, 32], strides = [1, 1]} : vector<8x96xf32> to vector<1x32xf32>
    %470 = vector.extract_strided_slice %463 {offsets = [6, 0], sizes = [1, 32], strides = [1, 1]} : vector<8x96xf32> to vector<1x32xf32>
    %cst_133 = arith.constant dense<0.000000e+00> : vector<4x32xf32>
    %471 = tpu.matmul %456, %459, %cst_133 {dimension_numbers = #tpu.dot_dimension_numbers<[1], [0], [0], [1], [0, 0, 1, 1], [], []>} : vector<4x32xf32>, vector<32x32xf32>, vector<4x32xf32> -> vector<4x32xf32>
    %472 = vector.broadcast %464 : vector<1x32xf32> to vector<4x32xf32>
    %473 = arith.addf %471, %472 : vector<4x32xf32>
    %cst_134 = arith.constant dense<0.000000e+00> : vector<6x64xf32>
    %474 = tpu.matmul %454, %460, %cst_134 {dimension_numbers = #tpu.dot_dimension_numbers<[1], [0], [0], [1], [0, 0, 1, 1], [], []>} : vector<6x32xf32>, vector<32x64xf32>, vector<6x64xf32> -> vector<6x64xf32>
    %475 = vector.broadcast %465 : vector<1x64xf32> to vector<6x64xf32>
    %476 = arith.addf %474, %475 : vector<6x64xf32>
    %477 = vector.extract_strided_slice %476 {offsets = [0, 0], sizes = [6, 32], strides = [1, 1]} : vector<6x64xf32> to vector<6x32xf32>
    %478 = vector.extract_strided_slice %476 {offsets = [0, 32], sizes = [6, 32], strides = [1, 1]} : vector<6x64xf32> to vector<6x32xf32>
    %cst_135 = arith.constant 0.000000e+00 : f32
    %479 = vector.broadcast %cst_135 : f32 to vector<4x32xf32>
    %480 = tpu.concatenate %473, %479 in 0 : vector<4x32xf32>, vector<4x32xf32> -> vector<8x32xf32>
    %481 = tpu.concatenate %480, %480, %480, %480 in 0 : vector<8x32xf32>, vector<8x32xf32>, vector<8x32xf32>, vector<8x32xf32> -> vector<32x32xf32>
    %482 = arith.mulf %481, %2 : vector<32x32xf32>
    "tpu.trace_start"() <{level = 10 : i32, message = "qd,kd->qk"}> : () -> ()
    %cst_136 = arith.constant dense<0.000000e+00> : vector<32x6xf32>
    %483 = tpu.matmul %482, %477, %cst_136 {dimension_numbers = #tpu.dot_dimension_numbers<[1], [1], [0], [0], [0, 0, 1, 0], [], []>} : vector<32x32xf32>, vector<6x32xf32>, vector<32x6xf32> -> vector<32x6xf32>
    "tpu.trace_stop"() : () -> ()
    %484 = arith.addf %483, %3 : vector<32x6xf32>
    %cst_137 = arith.constant dense<0xFF800000> : vector<32xf32>
    %485 = vector.multi_reduction <maximumf>, %484, %cst_137 [1] : vector<32x6xf32> to vector<32xf32>
    %486 = vector.shape_cast %485 : vector<32xf32> to vector<32x1xf32>
    %487 = vector.broadcast %486 : vector<32x1xf32> to vector<32x6xf32>
    %488 = arith.subf %484, %487 : vector<32x6xf32>
    %489 = math.exp %488 : vector<32x6xf32>
    %cst_138 = arith.constant dense<0.000000e+00> : vector<32xf32>
    %490 = vector.multi_reduction <add>, %489, %cst_138 [1] : vector<32x6xf32> to vector<32xf32>
    %491 = vector.shape_cast %490 : vector<32xf32> to vector<32x1xf32>
    %492 = vector.broadcast %491 : vector<32x1xf32> to vector<32x6xf32>
    %493 = arith.divf %489, %492 : vector<32x6xf32>
    %cst_139 = arith.constant dense<0.000000e+00> : vector<32x32xf32>
    %494 = tpu.matmul %493, %478, %cst_139 {dimension_numbers = #tpu.dot_dimension_numbers<[1], [0], [0], [1], [0, 0, 1, 1], [], []>} : vector<32x6xf32>, vector<6x32xf32>, vector<32x32xf32> -> vector<32x32xf32>
    %495 = arith.addf %494, %482 : vector<32x32xf32>
    %496 = arith.mulf %495, %2 : vector<32x32xf32>
    %497 = vector.extract_strided_slice %496 {offsets = [0, 0], sizes = [8, 32], strides = [1, 1]} : vector<32x32xf32> to vector<8x32xf32>
    %498 = vector.extract_strided_slice %496 {offsets = [8, 0], sizes = [8, 32], strides = [1, 1]} : vector<32x32xf32> to vector<8x32xf32>
    %499 = arith.addf %497, %498 : vector<8x32xf32>
    %500 = vector.extract_strided_slice %496 {offsets = [16, 0], sizes = [8, 32], strides = [1, 1]} : vector<32x32xf32> to vector<8x32xf32>
    %501 = arith.addf %499, %500 : vector<8x32xf32>
    %502 = vector.extract_strided_slice %496 {offsets = [24, 0], sizes = [8, 32], strides = [1, 1]} : vector<32x32xf32> to vector<8x32xf32>
    %503 = arith.addf %501, %502 : vector<8x32xf32>
    %504 = vector.extract_strided_slice %503 {offsets = [0, 0], sizes = [4, 32], strides = [1, 1]} : vector<8x32xf32> to vector<4x32xf32>
    %cst_140 = arith.constant dense<0.000000e+00> : vector<4xf32>
    %505 = vector.multi_reduction <add>, %504, %cst_140 [1] : vector<4x32xf32> to vector<4xf32>
    %506 = vector.shape_cast %505 : vector<4xf32> to vector<4x1xf32>
    %cst_141 = arith.constant 3.200000e+01 : f32
    %507 = vector.broadcast %cst_141 : f32 to vector<4x1xf32>
    %508 = arith.divf %506, %507 : vector<4x1xf32>
    %509 = vector.broadcast %508 : vector<4x1xf32> to vector<4x32xf32>
    %510 = arith.subf %504, %509 : vector<4x32xf32>
    %511 = arith.mulf %510, %510 : vector<4x32xf32>
    %cst_142 = arith.constant dense<0.000000e+00> : vector<4xf32>
    %512 = vector.multi_reduction <add>, %511, %cst_142 [1] : vector<4x32xf32> to vector<4xf32>
    %513 = vector.shape_cast %512 : vector<4xf32> to vector<4x1xf32>
    %cst_143 = arith.constant 3.200000e+01 : f32
    %514 = vector.broadcast %cst_143 : f32 to vector<4x1xf32>
    %515 = arith.divf %513, %514 : vector<4x1xf32>
    %cst_144 = arith.constant 9.99999974E-6 : f32
    %516 = vector.broadcast %cst_144 : f32 to vector<4x1xf32>
    %517 = arith.addf %515, %516 : vector<4x1xf32>
    %518 = math.rsqrt %517 : vector<4x1xf32>
    %519 = vector.broadcast %518 : vector<4x1xf32> to vector<4x32xf32>
    %520 = arith.mulf %510, %519 : vector<4x32xf32>
    %521 = vector.broadcast %467 : vector<1x32xf32> to vector<4x32xf32>
    %522 = arith.mulf %520, %521 : vector<4x32xf32>
    %523 = vector.broadcast %468 : vector<1x32xf32> to vector<4x32xf32>
    %524 = arith.addf %522, %523 : vector<4x32xf32>
    %cst_145 = arith.constant dense<0.000000e+00> : vector<4x32xf32>
    %525 = tpu.matmul %524, %461, %cst_145 {dimension_numbers = #tpu.dot_dimension_numbers<[1], [0], [0], [1], [0, 0, 1, 1], [], []>} : vector<4x32xf32>, vector<32x32xf32>, vector<4x32xf32> -> vector<4x32xf32>
    %526 = vector.broadcast %466 : vector<1x32xf32> to vector<4x32xf32>
    %527 = arith.addf %525, %526 : vector<4x32xf32>
    %cst_146 = arith.constant 0.000000e+00 : f32
    %528 = vector.broadcast %cst_146 : f32 to vector<4x32xf32>
    %529 = arith.maximumf %527, %528 : vector<4x32xf32>
    %530 = arith.addf %524, %529 : vector<4x32xf32>
    %cst_147 = arith.constant dense<0.000000e+00> : vector<4xf32>
    %531 = vector.multi_reduction <add>, %530, %cst_147 [1] : vector<4x32xf32> to vector<4xf32>
    %532 = vector.shape_cast %531 : vector<4xf32> to vector<4x1xf32>
    %cst_148 = arith.constant 3.200000e+01 : f32
    %533 = vector.broadcast %cst_148 : f32 to vector<4x1xf32>
    %534 = arith.divf %532, %533 : vector<4x1xf32>
    %535 = vector.broadcast %534 : vector<4x1xf32> to vector<4x32xf32>
    %536 = arith.subf %530, %535 : vector<4x32xf32>
    %537 = arith.mulf %536, %536 : vector<4x32xf32>
    %cst_149 = arith.constant dense<0.000000e+00> : vector<4xf32>
    %538 = vector.multi_reduction <add>, %537, %cst_149 [1] : vector<4x32xf32> to vector<4xf32>
    %539 = vector.shape_cast %538 : vector<4xf32> to vector<4x1xf32>
    %cst_150 = arith.constant 3.200000e+01 : f32
    %540 = vector.broadcast %cst_150 : f32 to vector<4x1xf32>
    %541 = arith.divf %539, %540 : vector<4x1xf32>
    %cst_151 = arith.constant 9.99999974E-6 : f32
    %542 = vector.broadcast %cst_151 : f32 to vector<4x1xf32>
    %543 = arith.addf %541, %542 : vector<4x1xf32>
    %544 = math.rsqrt %543 : vector<4x1xf32>
    %545 = vector.broadcast %544 : vector<4x1xf32> to vector<4x32xf32>
    %546 = arith.mulf %536, %545 : vector<4x32xf32>
    %547 = vector.broadcast %469 : vector<1x32xf32> to vector<4x32xf32>
    %548 = arith.mulf %546, %547 : vector<4x32xf32>
    %549 = vector.broadcast %470 : vector<1x32xf32> to vector<4x32xf32>
    %550 = arith.addf %548, %549 : vector<4x32xf32>
    %c1_152 = arith.constant 1 : index
    %c0_153 = arith.constant 0 : index
    %c0_154 = arith.constant 0 : index
    %551 = vector.load %arg6[%c1_152, %c0_153, %c0_154] : memref<2x32x128xf32, #tpu.memory_space<vmem>>, vector<1x32x128xf32>
    %552 = vector.shape_cast %551 : vector<1x32x128xf32> to vector<32x128xf32>
    %553 = vector.extract_strided_slice %552 {offsets = [0, 0], sizes = [32, 32], strides = [1, 1]} : vector<32x128xf32> to vector<32x32xf32>
    %554 = vector.extract_strided_slice %552 {offsets = [0, 32], sizes = [32, 64], strides = [1, 1]} : vector<32x128xf32> to vector<32x64xf32>
    %555 = vector.extract_strided_slice %552 {offsets = [0, 96], sizes = [32, 32], strides = [1, 1]} : vector<32x128xf32> to vector<32x32xf32>
    %c5 = arith.constant 5 : index
    %c0_155 = arith.constant 0 : index
    %c0_156 = arith.constant 0 : index
    %556 = vector.load %arg5[%c5, %c0_155, %c0_156] : memref<6x8x96xf32, #tpu.memory_space<vmem>>, vector<1x8x96xf32>
    %557 = vector.shape_cast %556 : vector<1x8x96xf32> to vector<8x96xf32>
    %558 = vector.extract_strided_slice %557 {offsets = [0, 0], sizes = [1, 32], strides = [1, 1]} : vector<8x96xf32> to vector<1x32xf32>
    %559 = vector.extract_strided_slice %557 {offsets = [1, 0], sizes = [1, 64], strides = [1, 1]} : vector<8x96xf32> to vector<1x64xf32>
    %560 = vector.extract_strided_slice %557 {offsets = [2, 0], sizes = [1, 32], strides = [1, 1]} : vector<8x96xf32> to vector<1x32xf32>
    %561 = vector.extract_strided_slice %557 {offsets = [3, 0], sizes = [1, 32], strides = [1, 1]} : vector<8x96xf32> to vector<1x32xf32>
    %562 = vector.extract_strided_slice %557 {offsets = [4, 0], sizes = [1, 32], strides = [1, 1]} : vector<8x96xf32> to vector<1x32xf32>
    %563 = vector.extract_strided_slice %557 {offsets = [5, 0], sizes = [1, 32], strides = [1, 1]} : vector<8x96xf32> to vector<1x32xf32>
    %564 = vector.extract_strided_slice %557 {offsets = [6, 0], sizes = [1, 32], strides = [1, 1]} : vector<8x96xf32> to vector<1x32xf32>
    %cst_157 = arith.constant dense<0.000000e+00> : vector<4x32xf32>
    %565 = tpu.matmul %550, %553, %cst_157 {dimension_numbers = #tpu.dot_dimension_numbers<[1], [0], [0], [1], [0, 0, 1, 1], [], []>} : vector<4x32xf32>, vector<32x32xf32>, vector<4x32xf32> -> vector<4x32xf32>
    %566 = vector.broadcast %558 : vector<1x32xf32> to vector<4x32xf32>
    %567 = arith.addf %565, %566 : vector<4x32xf32>
    %cst_158 = arith.constant dense<0.000000e+00> : vector<6x64xf32>
    %568 = tpu.matmul %454, %554, %cst_158 {dimension_numbers = #tpu.dot_dimension_numbers<[1], [0], [0], [1], [0, 0, 1, 1], [], []>} : vector<6x32xf32>, vector<32x64xf32>, vector<6x64xf32> -> vector<6x64xf32>
    %569 = vector.broadcast %559 : vector<1x64xf32> to vector<6x64xf32>
    %570 = arith.addf %568, %569 : vector<6x64xf32>
    %571 = vector.extract_strided_slice %570 {offsets = [0, 0], sizes = [6, 32], strides = [1, 1]} : vector<6x64xf32> to vector<6x32xf32>
    %572 = vector.extract_strided_slice %570 {offsets = [0, 32], sizes = [6, 32], strides = [1, 1]} : vector<6x64xf32> to vector<6x32xf32>
    %cst_159 = arith.constant 0.000000e+00 : f32
    %573 = vector.broadcast %cst_159 : f32 to vector<4x32xf32>
    %574 = tpu.concatenate %567, %573 in 0 : vector<4x32xf32>, vector<4x32xf32> -> vector<8x32xf32>
    %575 = tpu.concatenate %574, %574, %574, %574 in 0 : vector<8x32xf32>, vector<8x32xf32>, vector<8x32xf32>, vector<8x32xf32> -> vector<32x32xf32>
    %576 = arith.mulf %575, %2 : vector<32x32xf32>
    "tpu.trace_start"() <{level = 10 : i32, message = "qd,kd->qk"}> : () -> ()
    %cst_160 = arith.constant dense<0.000000e+00> : vector<32x6xf32>
    %577 = tpu.matmul %576, %571, %cst_160 {dimension_numbers = #tpu.dot_dimension_numbers<[1], [1], [0], [0], [0, 0, 1, 0], [], []>} : vector<32x32xf32>, vector<6x32xf32>, vector<32x6xf32> -> vector<32x6xf32>
    "tpu.trace_stop"() : () -> ()
    %578 = arith.addf %577, %3 : vector<32x6xf32>
    %cst_161 = arith.constant dense<0xFF800000> : vector<32xf32>
    %579 = vector.multi_reduction <maximumf>, %578, %cst_161 [1] : vector<32x6xf32> to vector<32xf32>
    %580 = vector.shape_cast %579 : vector<32xf32> to vector<32x1xf32>
    %581 = vector.broadcast %580 : vector<32x1xf32> to vector<32x6xf32>
    %582 = arith.subf %578, %581 : vector<32x6xf32>
    %583 = math.exp %582 : vector<32x6xf32>
    %cst_162 = arith.constant dense<0.000000e+00> : vector<32xf32>
    %584 = vector.multi_reduction <add>, %583, %cst_162 [1] : vector<32x6xf32> to vector<32xf32>
    %585 = vector.shape_cast %584 : vector<32xf32> to vector<32x1xf32>
    %586 = vector.broadcast %585 : vector<32x1xf32> to vector<32x6xf32>
    %587 = arith.divf %583, %586 : vector<32x6xf32>
    %cst_163 = arith.constant dense<0.000000e+00> : vector<32x32xf32>
    %588 = tpu.matmul %587, %572, %cst_163 {dimension_numbers = #tpu.dot_dimension_numbers<[1], [0], [0], [1], [0, 0, 1, 1], [], []>} : vector<32x6xf32>, vector<6x32xf32>, vector<32x32xf32> -> vector<32x32xf32>
    %589 = arith.addf %588, %576 : vector<32x32xf32>
    %590 = arith.mulf %589, %2 : vector<32x32xf32>
    %591 = vector.extract_strided_slice %590 {offsets = [0, 0], sizes = [8, 32], strides = [1, 1]} : vector<32x32xf32> to vector<8x32xf32>
    %592 = vector.extract_strided_slice %590 {offsets = [8, 0], sizes = [8, 32], strides = [1, 1]} : vector<32x32xf32> to vector<8x32xf32>
    %593 = arith.addf %591, %592 : vector<8x32xf32>
    %594 = vector.extract_strided_slice %590 {offsets = [16, 0], sizes = [8, 32], strides = [1, 1]} : vector<32x32xf32> to vector<8x32xf32>
    %595 = arith.addf %593, %594 : vector<8x32xf32>
    %596 = vector.extract_strided_slice %590 {offsets = [24, 0], sizes = [8, 32], strides = [1, 1]} : vector<32x32xf32> to vector<8x32xf32>
    %597 = arith.addf %595, %596 : vector<8x32xf32>
    %598 = vector.extract_strided_slice %597 {offsets = [0, 0], sizes = [4, 32], strides = [1, 1]} : vector<8x32xf32> to vector<4x32xf32>
    %cst_164 = arith.constant dense<0.000000e+00> : vector<4xf32>
    %599 = vector.multi_reduction <add>, %598, %cst_164 [1] : vector<4x32xf32> to vector<4xf32>
    %600 = vector.shape_cast %599 : vector<4xf32> to vector<4x1xf32>
    %cst_165 = arith.constant 3.200000e+01 : f32
    %601 = vector.broadcast %cst_165 : f32 to vector<4x1xf32>
    %602 = arith.divf %600, %601 : vector<4x1xf32>
    %603 = vector.broadcast %602 : vector<4x1xf32> to vector<4x32xf32>
    %604 = arith.subf %598, %603 : vector<4x32xf32>
    %605 = arith.mulf %604, %604 : vector<4x32xf32>
    %cst_166 = arith.constant dense<0.000000e+00> : vector<4xf32>
    %606 = vector.multi_reduction <add>, %605, %cst_166 [1] : vector<4x32xf32> to vector<4xf32>
    %607 = vector.shape_cast %606 : vector<4xf32> to vector<4x1xf32>
    %cst_167 = arith.constant 3.200000e+01 : f32
    %608 = vector.broadcast %cst_167 : f32 to vector<4x1xf32>
    %609 = arith.divf %607, %608 : vector<4x1xf32>
    %cst_168 = arith.constant 9.99999974E-6 : f32
    %610 = vector.broadcast %cst_168 : f32 to vector<4x1xf32>
    %611 = arith.addf %609, %610 : vector<4x1xf32>
    %612 = math.rsqrt %611 : vector<4x1xf32>
    %613 = vector.broadcast %612 : vector<4x1xf32> to vector<4x32xf32>
    %614 = arith.mulf %604, %613 : vector<4x32xf32>
    %615 = vector.broadcast %561 : vector<1x32xf32> to vector<4x32xf32>
    %616 = arith.mulf %614, %615 : vector<4x32xf32>
    %617 = vector.broadcast %562 : vector<1x32xf32> to vector<4x32xf32>
    %618 = arith.addf %616, %617 : vector<4x32xf32>
    %cst_169 = arith.constant dense<0.000000e+00> : vector<4x32xf32>
    %619 = tpu.matmul %618, %555, %cst_169 {dimension_numbers = #tpu.dot_dimension_numbers<[1], [0], [0], [1], [0, 0, 1, 1], [], []>} : vector<4x32xf32>, vector<32x32xf32>, vector<4x32xf32> -> vector<4x32xf32>
    %620 = vector.broadcast %560 : vector<1x32xf32> to vector<4x32xf32>
    %621 = arith.addf %619, %620 : vector<4x32xf32>
    %cst_170 = arith.constant 0.000000e+00 : f32
    %622 = vector.broadcast %cst_170 : f32 to vector<4x32xf32>
    %623 = arith.maximumf %621, %622 : vector<4x32xf32>
    %624 = arith.addf %618, %623 : vector<4x32xf32>
    %cst_171 = arith.constant dense<0.000000e+00> : vector<4xf32>
    %625 = vector.multi_reduction <add>, %624, %cst_171 [1] : vector<4x32xf32> to vector<4xf32>
    %626 = vector.shape_cast %625 : vector<4xf32> to vector<4x1xf32>
    %cst_172 = arith.constant 3.200000e+01 : f32
    %627 = vector.broadcast %cst_172 : f32 to vector<4x1xf32>
    %628 = arith.divf %626, %627 : vector<4x1xf32>
    %629 = vector.broadcast %628 : vector<4x1xf32> to vector<4x32xf32>
    %630 = arith.subf %624, %629 : vector<4x32xf32>
    %631 = arith.mulf %630, %630 : vector<4x32xf32>
    %cst_173 = arith.constant dense<0.000000e+00> : vector<4xf32>
    %632 = vector.multi_reduction <add>, %631, %cst_173 [1] : vector<4x32xf32> to vector<4xf32>
    %633 = vector.shape_cast %632 : vector<4xf32> to vector<4x1xf32>
    %cst_174 = arith.constant 3.200000e+01 : f32
    %634 = vector.broadcast %cst_174 : f32 to vector<4x1xf32>
    %635 = arith.divf %633, %634 : vector<4x1xf32>
    %cst_175 = arith.constant 9.99999974E-6 : f32
    %636 = vector.broadcast %cst_175 : f32 to vector<4x1xf32>
    %637 = arith.addf %635, %636 : vector<4x1xf32>
    %638 = math.rsqrt %637 : vector<4x1xf32>
    %639 = vector.broadcast %638 : vector<4x1xf32> to vector<4x32xf32>
    %640 = arith.mulf %630, %639 : vector<4x32xf32>
    %641 = vector.broadcast %563 : vector<1x32xf32> to vector<4x32xf32>
    %642 = arith.mulf %640, %641 : vector<4x32xf32>
    %643 = vector.broadcast %564 : vector<1x32xf32> to vector<4x32xf32>
    %644 = arith.addf %642, %643 : vector<4x32xf32>
    %645 = vector.extract_strided_slice %644 {offsets = [0, 0], sizes = [2, 32], strides = [1, 1]} : vector<4x32xf32> to vector<2x32xf32>
    %646 = vector.extract_strided_slice %644 {offsets = [2, 0], sizes = [2, 32], strides = [1, 1]} : vector<4x32xf32> to vector<2x32xf32>
    %647 = tpu.concatenate %645, %646 in 1 : vector<2x32xf32>, vector<2x32xf32> -> vector<2x64xf32>
    %c0_176 = arith.constant 0 : index
    %c0_177 = arith.constant 0 : index
    %648 = vector.load %arg7[%c0_176, %c0_177] : memref<200x32xf32, #tpu.memory_space<vmem>>, vector<64x32xf32>
    %c64_178 = arith.constant 64 : index
    %c0_179 = arith.constant 0 : index
    %649 = vector.load %arg7[%c64_178, %c0_179] : memref<200x32xf32, #tpu.memory_space<vmem>>, vector<32x32xf32>
    %c192 = arith.constant 192 : index
    %c0_180 = arith.constant 0 : index
    %650 = vector.load %arg7[%c192, %c0_180] : memref<200x32xf32, #tpu.memory_space<vmem>>, vector<1x32xf32>
    %c193 = arith.constant 193 : index
    %c0_181 = arith.constant 0 : index
    %651 = vector.load %arg7[%c193, %c0_181] : memref<200x32xf32, #tpu.memory_space<vmem>>, vector<1x32xf32>
    %cst_182 = arith.constant dense<0.000000e+00> : vector<2x32xf32>
    %652 = tpu.matmul %647, %648, %cst_182 {dimension_numbers = #tpu.dot_dimension_numbers<[1], [0], [0], [1], [0, 0, 1, 1], [], []>} : vector<2x64xf32>, vector<64x32xf32>, vector<2x32xf32> -> vector<2x32xf32>
    %653 = vector.broadcast %650 : vector<1x32xf32> to vector<2x32xf32>
    %654 = arith.addf %652, %653 : vector<2x32xf32>
    %cst_183 = arith.constant 0.000000e+00 : f32
    %655 = vector.broadcast %cst_183 : f32 to vector<2x32xf32>
    %656 = arith.maximumf %654, %655 : vector<2x32xf32>
    %cst_184 = arith.constant dense<0.000000e+00> : vector<2x32xf32>
    %657 = tpu.matmul %656, %649, %cst_184 {dimension_numbers = #tpu.dot_dimension_numbers<[1], [0], [0], [1], [0, 0, 1, 1], [], []>} : vector<2x32xf32>, vector<32x32xf32>, vector<2x32xf32> -> vector<2x32xf32>
    %658 = vector.broadcast %651 : vector<1x32xf32> to vector<2x32xf32>
    %659 = arith.addf %657, %658 : vector<2x32xf32>
    %c96 = arith.constant 96 : index
    %c0_185 = arith.constant 0 : index
    %660 = vector.load %arg7[%c96, %c0_185] : memref<200x32xf32, #tpu.memory_space<vmem>>, vector<32x32xf32>
    %c128_186 = arith.constant 128 : index
    %c0_187 = arith.constant 0 : index
    %661 = vector.load %arg7[%c128_186, %c0_187] : memref<200x32xf32, #tpu.memory_space<vmem>>, vector<32x32xf32>
    %c160_188 = arith.constant 160 : index
    %c0_189 = arith.constant 0 : index
    %662 = vector.load %arg7[%c160_188, %c0_189] : memref<200x32xf32, #tpu.memory_space<vmem>>, vector<32x32xf32>
    %c194 = arith.constant 194 : index
    %c0_190 = arith.constant 0 : index
    %663 = vector.load %arg7[%c194, %c0_190] : memref<200x32xf32, #tpu.memory_space<vmem>>, vector<1x32xf32>
    %c195 = arith.constant 195 : index
    %c0_191 = arith.constant 0 : index
    %664 = vector.load %arg7[%c195, %c0_191] : memref<200x32xf32, #tpu.memory_space<vmem>>, vector<1x32xf32>
    %c196 = arith.constant 196 : index
    %c0_192 = arith.constant 0 : index
    %665 = vector.load %arg7[%c196, %c0_192] : memref<200x32xf32, #tpu.memory_space<vmem>>, vector<1x32xf32>
    %c352 = arith.constant 352 : index
    %c0_193 = arith.constant 0 : index
    %666 = vector.load %arg2[%c352, %c0_193] : memref<392x128xf32, #tpu.memory_space<vmem>>, vector<32x128xf32>
    %c384 = arith.constant 384 : index
    %c0_194 = arith.constant 0 : index
    %667 = vector.load %arg2[%c384, %c0_194] : memref<392x128xf32, #tpu.memory_space<vmem>>, vector<1x128xf32>
    %cst_195 = arith.constant dense<0.000000e+00> : vector<2x32xf32>
    %668 = tpu.matmul %659, %660, %cst_195 {dimension_numbers = #tpu.dot_dimension_numbers<[1], [0], [0], [1], [0, 0, 1, 1], [], []>} : vector<2x32xf32>, vector<32x32xf32>, vector<2x32xf32> -> vector<2x32xf32>
    %669 = vector.broadcast %663 : vector<1x32xf32> to vector<2x32xf32>
    %670 = arith.addf %668, %669 : vector<2x32xf32>
    %cst_196 = arith.constant 0.000000e+00 : f32
    %671 = vector.broadcast %cst_196 : f32 to vector<2x32xf32>
    %672 = arith.maximumf %670, %671 : vector<2x32xf32>
    %cst_197 = arith.constant dense<0.000000e+00> : vector<2x32xf32>
    %673 = tpu.matmul %672, %661, %cst_197 {dimension_numbers = #tpu.dot_dimension_numbers<[1], [0], [0], [1], [0, 0, 1, 1], [], []>} : vector<2x32xf32>, vector<32x32xf32>, vector<2x32xf32> -> vector<2x32xf32>
    %674 = vector.broadcast %664 : vector<1x32xf32> to vector<2x32xf32>
    %675 = arith.addf %673, %674 : vector<2x32xf32>
    %cst_198 = arith.constant 0.000000e+00 : f32
    %676 = vector.broadcast %cst_198 : f32 to vector<2x32xf32>
    %677 = arith.maximumf %675, %676 : vector<2x32xf32>
    %cst_199 = arith.constant dense<0.000000e+00> : vector<2x32xf32>
    %678 = tpu.matmul %677, %662, %cst_199 {dimension_numbers = #tpu.dot_dimension_numbers<[1], [0], [0], [1], [0, 0, 1, 1], [], []>} : vector<2x32xf32>, vector<32x32xf32>, vector<2x32xf32> -> vector<2x32xf32>
    %679 = vector.broadcast %665 : vector<1x32xf32> to vector<2x32xf32>
    %680 = arith.addf %678, %679 : vector<2x32xf32>
    %cst_200 = arith.constant 0.000000e+00 : f32
    %681 = vector.broadcast %cst_200 : f32 to vector<2x32xf32>
    %682 = arith.maximumf %680, %681 : vector<2x32xf32>
    %683 = arith.addf %682, %672 : vector<2x32xf32>
    %cst_201 = arith.constant dense<0.000000e+00> : vector<2x128xf32>
    %684 = tpu.matmul %683, %666, %cst_201 {dimension_numbers = #tpu.dot_dimension_numbers<[1], [0], [0], [1], [0, 0, 1, 1], [], []>} : vector<2x32xf32>, vector<32x128xf32>, vector<2x128xf32> -> vector<2x128xf32>
    %685 = vector.broadcast %667 : vector<1x128xf32> to vector<2x128xf32>
    %686 = arith.addf %684, %685 : vector<2x128xf32>
    %cst_202 = arith.constant 0.000000e+00 : f32
    %687 = vector.broadcast %cst_202 : f32 to vector<2x128xf32>
    %688 = arith.maximumf %686, %687 : vector<2x128xf32>
    %689 = math.absf %686 : vector<2x128xf32>
    %cst_203 = arith.constant 0.000000e+00 : f32
    %690 = vector.broadcast %cst_203 : f32 to vector<2x128xf32>
    %691 = arith.subf %690, %689 : vector<2x128xf32>
    %692 = math.exp %691 : vector<2x128xf32>
    %cst_204 = arith.constant 1.000000e+00 : f32
    %693 = vector.broadcast %cst_204 : f32 to vector<2x128xf32>
    %694 = arith.addf %693, %692 : vector<2x128xf32>
    %695 = math.log %694 : vector<2x128xf32>
    %696 = arith.addf %688, %695 : vector<2x128xf32>
    %cst_205 = arith.constant 1.001000e+00 : f32
    %697 = vector.broadcast %cst_205 : f32 to vector<2x128xf32>
    %698 = arith.addf %696, %697 : vector<2x128xf32>
    %c0_206 = arith.constant 0 : index
    %c0_207 = arith.constant 0 : index
    %699 = vector.load %arg9[%c0_206, %c0_207] : memref<2x128xf32, #tpu.memory_space<vmem>>, vector<2x128xf32>
    tpu.vector_store %arg9[%c0_206, %c0_207], %698 {strides = array<i32>} : memref<2x128xf32, #tpu.memory_space<vmem>>, vector<2x128xf32>,
    return
  }
}

</mosaic_0001>

<bundles_post_ra>
// kernel: beta_actor_forward.1
= control target key start
LH: loop header
LB: loop body
LE: loop exit
PB: predicated region body
PF: predicated region fallthrough
CT: control target
= control target key end

     0   :  { %14 = vsyncpa [#allocation3], 0  ;;  %s8504_s0 = inlined_call_operand.vmem [shape: f32[2,25], index: 0, kind: input, shape index: {}]   ;;  %s8505_s1 = inlined_call_operand.hbm [shape: f32[25,320], index: 1, kind: input, shape index: {}]   ;;  %s8506_s2 = inlined_call_operand.vmem [shape: f32[392,128], index: 2, kind: input, shape index: {}]   ;;  %s8507_s3 = inlined_call_operand.vmem [shape: f32[4,32,192], index: 3, kind: input, shape index: {}]   ;;  %s8508_s4 = inlined_call_operand.vmem [shape: f32[4,64,32], index: 4, kind: input, shape index: {}]   ;;  %s8509_s5 = inlined_call_operand.hbm [shape: f32[6,8,96], index: 5, kind: input, shape index: {}]   ;;  %s8510_s6 = inlined_call_operand.hbm [shape: f32[2,32,128], index: 6, kind: input, shape index: {}]   ;;  %s8511_s7 = inlined_call_operand.vmem [shape: f32[200,32], index: 7, kind: input, shape index: {}]   ;;  %s8512_s8 = inlined_call_operand.hbm [shape: f32[192,32], index: 8, kind: input, shape index: {}]   ;;  %s8513_s9 = inlined_call_operand.vmem [shape: f32[2,128], index: 9, kind: output, shape index: {}]  }
   0x1   :  { %15 = vsyncpa [#allocation5], 0 }
   0x2   :  { %16 = vsyncpa [#allocation8], 0  ;;  %s7006_s30 = smov [#allocation4]   ;;  %s6912_s13 = scalar_lea.hbm %s8509_s5, 768 }
   0x3   :  { %s42_s10 = sshll.u32 %s7006_s30, 4  ;;  %p6913_p0 = scmp.ne.s32.totalorder %s8509_s5, %s6912_s13  ;;  %s43_s10 = int_to_ptr.vmem [resolvable:$true] %s42_s10 }
   0x4   :  { %p6916_p1 = scmp.lt.u32.totalorder %s6912_s13, %s8509_s5 }
   0x6   :  { %p6918_p2 = pnand %p6916_p1, %p6913_p0 }
   0x8   :  { %6921 = shalt.err (!%p6918_p2)
}
   0x9   :  { %s6922_s18 = scalar_lea.vmem %s43_s10, 768  ;;  %p6927_p4 = scmp.lt.s32.totalorder %s43_s10, %s43_s10 }
   0xa   :  { %p6923_p3 = scmp.ne.s32.totalorder %s43_s10, %s6922_s18  ;;  %p6928_p5 = scmp.lt.s32.totalorder %s6922_s18, %s6922_s18 }
   0xc   :  { %p6929_p6 = por %p6928_p5, %p6927_p4 }
   0xe   :  { %p6930_p7 = pnand %p6929_p6, %p6923_p3 }
  0x10   :  { %6933 = shalt.err (!%p6930_p7)
}
  0x11   :  { %s7007_s19 = smov 128   ;;  %s7008_s20 = smov 8  }
  0x12   :  { %48 = dma.hbm_to_vmem [thread:$0]  %s8509_s5, 768, %s43_s10, [#allocation5], %s7007_s19, %s7007_s19, %s7008_s20  }
  0x13   :  { %s7009_s23 = smov [#allocation2]   ;;  %s6934_s27 = scalar_lea.hbm %s8505_s1, 1536 }
  0x14   :  { %s24_s24 = sshll.u32 %s7009_s23, 4  ;;  %p6935_p8 = scmp.ne.s32.totalorder %s8505_s1, %s6934_s27  ;;  %s25_s24 = int_to_ptr.vmem [resolvable:$true] %s24_s24 }
  0x15   :  { %p6938_p9 = scmp.lt.u32.totalorder %s6934_s27, %s8505_s1 }
  0x17   :  { %p6940_p10 = pnand %p6938_p9, %p6935_p8 }
  0x19   :  { %6943 = shalt.err (!%p6940_p10)
}
  0x1a   :  { %s6944_s12 = scalar_lea.vmem %s25_s24, 1536  ;;  %p6949_p12 = scmp.lt.s32.totalorder %s25_s24, %s25_s24 }
  0x1b   :  { %p6945_p11 = scmp.ne.s32.totalorder %s25_s24, %s6944_s12  ;;  %p6950_p13 = scmp.lt.s32.totalorder %s6944_s12, %s6944_s12 }
  0x1d   :  { %p6951_p0 = por %p6950_p13, %p6949_p12 }
  0x1f   :  { %p6952_p1 = pnand %p6951_p0, %p6945_p11 }
  0x21   :  { %6955 = shalt.err (!%p6952_p1)
}
  0x22   :  { %s7010_s5 = smov 384   ;;  %s7011_s10 = smov 24  }
  0x23   :  { %30 = dma.hbm_to_vmem [thread:$0]  %s8505_s1, 1536, %s25_s24, [#allocation3], %s7010_s5, %s7010_s5, %s7011_s10  }
  0x24   :  { %s7012_s15 = smov [#allocation6]   ;;  %s7013_s17 = smov [#allocation7]  }
  0x25   :  { %s54_s16 = sshll.u32 %s7012_s15, 4  ;;  %s68_s18 = sshll.u32 %s7013_s17, 4  ;;  %s55_s16 = int_to_ptr.vmem [resolvable:$true] %s54_s16  ;;  %s7098_s18 = int_to_ptr.vmem [resolvable:$true] %s68_s18 }
  0x26   :  { %s6956_s23 = scalar_lea.hbm %s8510_s6, 1024 }
  0x27   :  { %p6957_p2 = scmp.ne.s32.totalorder %s8510_s6, %s6956_s23  ;;  %p6960_p3 = scmp.lt.u32.totalorder %s6956_s23, %s8510_s6 }
  0x29   :  { %p6962_p4 = pnand %p6960_p3, %p6957_p2 }
  0x2b   :  { %6965 = shalt.err (!%p6962_p4)
}
  0x2c   :  { %s6966_s1 = scalar_lea.vmem %s55_s16, 1024  ;;  %p6971_p6 = scmp.lt.s32.totalorder %s55_s16, %s55_s16 }
  0x2d   :  { %p6967_p5 = scmp.ne.s32.totalorder %s55_s16, %s6966_s1  ;;  %p6972_p7 = scmp.lt.s32.totalorder %s6966_s1, %s6966_s1 }
  0x2f   :  { %p6973_p8 = por %p6972_p7, %p6971_p6 }
  0x31   :  { %p6974_p9 = pnand %p6973_p8, %p6967_p5 }
  0x33   :  { %6977 = shalt.err (!%p6974_p9)
}
  0x34   :  { %60 = dma.hbm_to_vmem [thread:$0]  %s8510_s6, 1024, %s55_s16, [#allocation5], %s7007_s19, %s7007_s19, %s7008_s20  }
  0x35   :  { %s6978_s12 = scalar_lea.hbm %s8512_s8, 3072 }
  0x36   :  { %p6979_p10 = scmp.ne.s32.totalorder %s8512_s8, %s6978_s12  ;;  %p6982_p11 = scmp.lt.u32.totalorder %s6978_s12, %s8512_s8 }
  0x38   :  { %p6984_p12 = pnand %p6982_p11, %p6979_p10 }
  0x3a   :  { %6987 = shalt.err (!%p6984_p12)
}
  0x3b   :  { %s6988_s15 = scalar_lea.vmem %s7098_s18, 3072  ;;  %p6993_p0 = scmp.lt.s32.totalorder %s7098_s18, %s7098_s18 }
  0x3c   :  { %p6989_p13 = scmp.ne.s32.totalorder %s7098_s18, %s6988_s15  ;;  %p6994_p1 = scmp.lt.s32.totalorder %s6988_s15, %s6988_s15 }
  0x3e   :  { %p6995_p2 = por %p6994_p1, %p6993_p0 }
  0x40   :  { %p6996_p3 = pnand %p6995_p2, %p6989_p13 }
  0x42   :  { %6999 = shalt.err (!%p6996_p3)
}
  0x43   :  { %74 = dma.hbm_to_vmem [thread:$0]  %s8512_s8, 3072, %s7098_s18, [#allocation8], %s7007_s19, %s7007_s19, %s7008_s20  }
  0x44   :  { %7000 = dma.done.wait [#allocation3], 1536  }
  0x45   :  { %7001 = vsyncadd [#allocation3], 4294965760 }
  0x46   :  { %7002 = dma.done.wait [#allocation5], 1792  }
  0x47   :  { %7003 = vsyncadd [#allocation5], 4294965504 }
  0x48   :  { %7004 = dma.done.wait [#allocation8], 3072  }
  0x49   :  { %7005 = vsyncadd [#allocation8], 4294964224  ;;  %v7014_v0 = vmov 0.0|0.0   ;;  %v7015_v1 = vmov 0.0   ;;  %vm7016_vm0 = vmmov 0   ;;  %vm128_vm1 = vcmask 1040384  }
  0x4a   :  { %6354 = vmatprep.subr.bf16.mxu1 %v7014_v0  ;;  %202 = vmatprep.mubr.f32.mxu0 %v7015_v1  ;;  %vm7017_vm2 = vmmov 1   ;;  %v113_v3 = vld [vmem:[#allocation2 + $0x8] sm:$0xff]  ;;  %v116_v4 = vld [vmem:[#allocation2 + $0x20] sm:$0xff]  ;;  %v114_v5 = vld [vmem:[#allocation2 + $0x10] sm:$0xff]  ;;  %vm124_vm4 = vcmask 203776   ;;  %vm399_vm5 = vcmask 523264  }
  0x4b   :  { %5819 = vmatprep.mubr.msk.f32.mxu1 %vm7016_vm0, %v7015_v1  ;;  %vm7140_vm3 = vmpackc.low %vm128_vm1, %vm7017_vm2  ;;  %v6344_v6 = vpack.c.bf16 %v116_v4, %v113_v3  ;;  %v117_v7 = vld [vmem:[#allocation2 + $0x28] sm:$0xff]  ;;  %v112_v8 = vld [vmem:[#allocation2] sm:$0xff]  ;;  %s7018_s13 = smov 96   ;;  %s7019_s14 = smov 64   ;;  %vm552_vm6 = vcmask 1041408   ;;  %vm554_vm7 = vcmask 1043456  }
  0x4c   :  { %v115_v9 = vld [vmem:[#allocation2 + $0x18] sm:$0xff]  ;;  %v6355_v10 = vpack.c.bf16 %v117_v7, %v114_v5  ;;  %v122_v13 = vld [vmem:[#allocation2 + $0x50] sm:$0x1]  ;;  %v120_v14 = vld [vmem:[#allocation2 + $0x40] sm:$0xff]  ;;  %vm577_vm8 = vcmask 261120   ;;  %vm651_vm9 = vcmask 1045504  }
  0x4d   :  { %v6346_v11 = vpack.c.bf16 %v115_v9, %v112_v8  ;;  %v119_v12 = vld [vmem:[#allocation2 + $0x38] sm:$0xff]  ;;  %6345 = vmatprep.subr.bf16.mxu0 %v6344_v6  ;;  %v118_v17 = vld [vmem:[#allocation2 + $0x30] sm:$0xff]  ;;  %v121_v18 = vld [vmem:[#allocation2 + $0x48] sm:$0x1]  ;;  %vm795_vm10 = vcmask 48128   ;;  %s7020_s15 = smov 32  }
  0x4e   :  { %v6348_v15 = vpack.c.bf16 %v122_v13, %v119_v12  ;;  %v123_v16 = vld [vmem:[#allocation2 + $0x58] sm:$0x1]  ;;  %6356 = vmatpush3.bf16.msra.mxu1 %v6355_v10  ;;  %v6351_v20 = vpack.c.bf16 %v121_v18, %v118_v17  ;;  %v298_v21 = vld [vmem:[%s8506_s2 + $0x80] sm:$0xff]  ;;  %v299_v22 = vld [vmem:[%s8506_s2 + $0x88] sm:$0xff]  ;;  %vm1127_vm11 = vcmask 259072   ;;  %vm4092_vm12 = vcmask 257024  }
  0x4f   :  { %6347 = vmatpush1.bf16.msra.mxu0 %v6346_v11  ;;  %v6358_v19 = vpack.c.bf16 %v123_v16, %v120_v14  ;;  %6357 = vmatprep.subr.bf16.mxu1 %v7014_v0  ;;  %v6368_v23 = vpack.c.bf16 %v299_v22, %v298_v21  ;;  %v282_v24 = vld [vmem:[%s8506_s2] sm:$0xff]  ;;  %v283_v25 = vld [vmem:[%s8506_s2 + $0x8] sm:$0xff]  ;;  %v300_v26 = vld [vmem:[%s8506_s2 + $0x90] sm:$0xff] }
  0x50   :  { %6350 = vmatprep.subr.msk.bf16.mxu0 %vm7140_vm3, %v6348_v15  ;;  %v301_v27 = vld [vmem:[%s8506_s2 + $0x98] sm:$0xff]  ;;  %v322_v28 = vld [vmem:[%s8506_s2 + $0x140] sm:$0xff]  ;;  %v323_v29 = vld [vmem:[%s8506_s2 + $0x148] sm:$0xff]  ;;  %v6370_v31 = vpack.c.bf16 %v283_v25, %v282_v24 }
  0x51   :  { %v111_v30 = vld [vmem:[%s8504_s0] sm:$0x3]  ;;  %v284_v32 = vld [vmem:[%s8506_s2 + $0x10] sm:$0xff]  ;;  %v6362_v33 = vpack.c.bf16 %v323_v29, %v322_v28  ;;  %v6372_v34 = vpack.c.bf16 %v301_v27, %v300_v26  ;;  %v285_v35 = vld [vmem:[%s8506_s2 + $0x18] sm:$0xff] }
  0x52   :  { %6360 = vmatpush3.bf16.msk.msra.mxu1 %vm7140_vm3, %v6358_v19  ;;  %v324_v36 = vld [vmem:[%s8506_s2 + $0x150] sm:$0xff]  ;;  %v325_v37 = vld [vmem:[%s8506_s2 + $0x158] sm:$0x1]  ;;  %v302_v38 = vld [vmem:[%s8506_s2 + $0xa0] sm:$0xff]  ;;  %v6374_v40 = vpack.c.bf16 %v285_v35, %v284_v32 }
  0x53   :  { %6353 = vmatpush1.bf16.msk.msra.mxu0 %vm7140_vm3, %v6351_v20  ;;  %6369 = vmatprep.subr.bf16.mxu1 %v6368_v23  ;;  %v303_v39 = vld [vmem:[%s8506_s2 + $0xa8] sm:$0xff]  ;;  %v286_v41 = vld [vmem:[%s8506_s2 + $0x20] sm:$0xff]  ;;  %v6365_v42 = vpack.c.bf16 %v325_v37, %v324_v36  ;;  %v304_v47 = vld [vmem:[%s8506_s2 + $0xb0] sm:$0xff] }
  0x54   :  { %6361 = vmatprep.subr.bf16.mxu0 %v7014_v0  ;;  %v6376_v43 = vpack.c.bf16 %v303_v39, %v302_v38  ;;  %v287_v44 = vld [vmem:[%s8506_s2 + $0x28] sm:$0xff]  ;;  %v314_v45 = vld [vmem:[%s8506_s2 + $0x100] sm:$0xff]  ;;  %v305_v48 = vld [vmem:[%s8506_s2 + $0xb8] sm:$0xff] }
  0x55   :  { %5820 = vmatmul.mubr.msk.f32.vlgmr.msra.gmra.mrb[0].mxu1 %vm124_vm4, %v111_v30  ;;  %v315_v46 = vld [vmem:[%s8506_s2 + $0x108] sm:$0xff]  ;;  %v6378_v49 = vpack.c.bf16 %v287_v44, %v286_v41  ;;  %v288_v50 = vld [vmem:[%s8506_s2 + $0x30] sm:$0xff]  ;;  %v6380_v52 = vpack.c.bf16 %v305_v48, %v304_v47  ;;  %v289_v53 = vld [vmem:[%s8506_s2 + $0x38] sm:$0xff] }
  0x56   :  { %5325 = vmatmul.mubr.msk.f32.vlgmr.msra.gmra.mrb[0].mxu0 %vm124_vm4, %v111_v30  ;;  %6371 = vmatpush3.bf16.msra.mxu1 %v6370_v31  ;;  %v6401_v51 = vpack.c.bf16 %v315_v46, %v314_v45  ;;  %v316_v54 = vld [vmem:[%s8506_s2 + $0x110] sm:$0xff]  ;;  %v317_v55 = vld [vmem:[%s8506_s2 + $0x118] sm:$0xff]  ;;  %v306_v56 = vld [vmem:[%s8506_s2 + $0xc0] sm:$0xff]  ;;  %v6382_v58 = vpack.c.bf16 %v289_v53, %v288_v50 }
  0x57   :  { %6363 = vmatpush3.bf16.msra.mxu0 %v6362_v33  ;;  %6373 = vmatprep.subr.bf16.mxu1 %v6372_v34  ;;  %v307_v57 = vld [vmem:[%s8506_s2 + $0xc8] sm:$0xff]  ;;  %v290_v59 = vld [vmem:[%s8506_s2 + $0x40] sm:$0xff]  ;;  %v6404_v60 = vpack.c.bf16 %v317_v55, %v316_v54  ;;  %v308_v3 = vld [vmem:[%s8506_s2 + $0xd0] sm:$0xff] }
  0x58   :  { %6364 = vmatprep.subr.bf16.mxu0 %v7014_v0  ;;  %5830 = vmatprep.mubr.msk.f32.mxu0 %vm7016_vm0, %v7015_v1  ;;  %v6384_v61 = vpack.c.bf16 %v307_v57, %v306_v56  ;;  %v291_v62 = vld [vmem:[%s8506_s2 + $0x48] sm:$0xff]  ;;  %v318_v63 = vld [vmem:[%s8506_s2 + $0x120] sm:$0xff]  ;;  %v309_v4 = vld [vmem:[%s8506_s2 + $0xd8] sm:$0xff] }
  0x59   :  { %v319_v2 = vld [vmem:[%s8506_s2 + $0x128] sm:$0xff]  ;;  %v6386_v5 = vpack.c.bf16 %v291_v62, %v290_v59  ;;  %v6388_v7 = vpack.c.bf16 %v309_v4, %v308_v3  ;;  %v292_v8 = vld [vmem:[%s8506_s2 + $0x50] sm:$0xff]  ;;  %v293_v9 = vld [vmem:[%s8506_s2 + $0x58] sm:$0xff] }
  0x5a   :  { %6375 = vmatpush3.bf16.msra.mxu1 %v6374_v40  ;;  %v6407_v6 = vpack.c.bf16 %v319_v2, %v318_v63  ;;  %v310_v10 = vld [vmem:[%s8506_s2 + $0xe0] sm:$0xff]  ;;  %v311_v11 = vld [vmem:[%s8506_s2 + $0xe8] sm:$0xff]  ;;  %v6390_v12 = vpack.c.bf16 %v293_v9, %v292_v8  ;;  %v320_v17 = vld [vmem:[%s8506_s2 + $0x130] sm:$0xff] }
  0x5b   :  { %6367 = vmatpush3.bf16.msk.msra.mxu0 %vm7140_vm3, %v6365_v42  ;;  %6377 = vmatprep.subr.bf16.mxu1 %v6376_v43  ;;  %v6392_v13 = vpack.c.bf16 %v311_v11, %v310_v10  ;;  %v294_v14 = vld [vmem:[%s8506_s2 + $0x60] sm:$0xff]  ;;  %v295_v15 = vld [vmem:[%s8506_s2 + $0x68] sm:$0xff]  ;;  %v321_v18 = vld [vmem:[%s8506_s2 + $0x138] sm:$0xff] }
  0x5c   :  { %6400 = vmatprep.subr.bf16.mxu0 %v7014_v0  ;;  %v6394_v16 = vpack.c.bf16 %v295_v15, %v294_v14  ;;  %v6410_v19 = vpack.c.bf16 %v321_v18, %v320_v17  ;;  %v312_v20 = vld [vmem:[%s8506_s2 + $0xf0] sm:$0xff]  ;;  %v313_v21 = vld [vmem:[%s8506_s2 + $0xf8] sm:$0xff]  ;;  %v7308_v33 = vld [vmem:[%s8507_s3] sm:$0xff] }
  0x5d   :  { %v6396_v22 = vpack.c.bf16 %v313_v21, %v312_v20  ;;  %v296_v23 = vld [vmem:[%s8506_s2 + $0x70] sm:$0xff]  ;;  %v297_v24 = vld [vmem:[%s8506_s2 + $0x78] sm:$0xff]  ;;  %v7321_v36 = vld [vmem:[%s8507_s3 + $0x20] sm:$0xff] }
  0x5e   :  { %5831 = vmatmul.mubr.msk.f32.vlgmr.msra.gmra.mrb[2].mxu0 %vm124_vm4, %v111_v30  ;;  %6379 = vmatpush3.bf16.msra.mxu1 %v6378_v49  ;;  %v6398_v25 = vpack.c.bf16 %v297_v24, %v296_v23  ;;  %v7313_v34 = vld [vmem:[%s8507_s3 + $0x10] sm:$0xff]  ;;  %v7350_v54 = vld [vmem:[#allocation4] sm:$0xff]  ;;  %v7364_v63 = vld [vmem:[#allocation7 + $0x8] sm:$0xff] }
  0x5f   :  { %6402 = vmatpush3.bf16.msra.mxu0 %v6401_v51  ;;  %6381 = vmatprep.subr.bf16.mxu1 %v6380_v52  ;;  %v6413_v35 = vpack.c.bf16 %v7313_v34, %v7308_v33  ;;  %v7326_v37 = vld [vmem:[%s8507_s3 + $0x30] sm:$0xff]  ;;  %v573_v51 = vlaneseq  ;;  %v7367_v2 = vld [vmem:[#allocation7 + $0x10] sm:$0xff]  ;;  %v7381_v9 = vld [vmem:[#allocation7 + $0x28] sm:$0xff] }
  0x60   :  { %6403 = vmatprep.subr.bf16.mxu0 %v7014_v0  ;;  %5849 = vmatprep.mubr.msk.f32.mxu0 %vm7016_vm0, %v7015_v1  ;;  %v6416_v38 = vpack.c.bf16 %v7326_v37, %v7321_v36  ;;  %v7356_v59 = vld [vmem:[#allocation7] sm:$0xff]  ;;  %v7384_v10 = vld [vmem:[#allocation7 + $0x30] sm:$0xff]  ;;  %v7397_v15 = vld [vmem:[#allocation7 + $0x48] sm:$0xff] }
  0x61   :  { %v7345_v52 = vshrl.u32 %v573_v51, 7  ;;  %v7403_v21 = vld [vmem:[#allocation7 + $0x58] sm:$0xff]  ;;  %v7406_v23 = vld [vmem:[#allocation7 + $0x50] sm:$0xff] }
  0x62   :  { %6383 = vmatpush3.bf16.msra.mxu1 %v6382_v58 }
  0x63   :  { %6405 = vmatpush3.bf16.msra.mxu0 %v6404_v60  ;;  %6385 = vmatprep.subr.bf16.mxu1 %v6384_v61  ;;  %v7348_v53 = vsub.s32 0, %v7345_v52 }
  0x64   :  { %6406 = vmatprep.subr.bf16.mxu0 %v7014_v0 }
  0x65   :  { %v576_v55 = vrot.slane %v7350_v54, %v7348_v53 }
  0x66   :  { %6387 = vmatpush3.bf16.msra.mxu1 %v6386_v5  ;;  %v7373_v5 = vld [vmem:[#allocation7 + $0x18] sm:$0xff] }
  0x67   :  { %6408 = vmatpush3.bf16.msra.mxu0 %v6407_v6  ;;  %6389 = vmatprep.subr.bf16.mxu1 %v6388_v7  ;;  %v7376_v6 = vld [vmem:[#allocation7 + $0x20] sm:$0xff] }
  0x68   :  { %6409 = vmatprep.subr.bf16.mxu0 %v7014_v0 }
  0x6a   :  { %6391 = vmatpush3.bf16.msra.mxu1 %v6390_v12 }
  0x6b   :  { %6393 = vmatprep.subr.bf16.mxu1 %v6392_v13  ;;  %6411 = vmatpush3.bf16.msra.mxu0 %v6410_v19  ;;  %v7389_v13 = vld [vmem:[#allocation7 + $0x38] sm:$0xff] }
  0x6c   :  { %6412 = vmatprep.subr.bf16.mxu0 %v7014_v0 }
  0x6e   :  { %6395 = vmatpush3.bf16.msra.mxu1 %v6394_v16  ;;  %v7399_v16 = vld [vmem:[#allocation7 + $0x40] sm:$0xff] }
  0x6f   :  { %6397 = vmatprep.subr.bf16.mxu1 %v6396_v22 }
  0x72   :  { %6399 = vmatpush3.bf16.msra.mxu1 %v6398_v25 }
 0x128   :  { %v275_v26 = vpop.f32.mrb[0].mxu1 }
 0x129   :  { %v204_v27 = vpop.f32.mrb[0].mxu0  ;;  %v281_v28 = vmax.f32 %v275_v26, 0.0  ;;  %v5821_v30 = vpop.f32.mrb[1].mxu1 }
 0x12a   :  { %v206_v29 = vpop.f32.mrb[1].mxu0  ;;  %v279_v32 = vmax.f32 %v204_v27, 0.0  ;;  %v7413_v30 = vld [vmem:[#allocation7 + $0x60] sm:$0xff] }
 0x12b   :  { %v280_v31 = vmax.f32 %v206_v29, 0.0  ;;  %5850 = vmatmul.mubr.msk.f32.vlgmr.msra.gmra.mrb[2].mxu0 %vm399_vm5, %v281_v28  ;;  %v7411_v29 = vld [vmem:[#allocation7 + $0x68] sm:$0xff] }
 0x12c   :  { %5860 = vmatprep.mubr.msk.f32.mxu0 %vm7016_vm0, %v7015_v1  ;;  %6414 = vmatpush3.bf16.msra.mxu0 %v6413_v35 }
 0x12d   :  { %467 = vmatprep.mubr.f32.mxu1 %v280_v31  ;;  %6415 = vmatprep.subr.bf16.mxu0 %v7014_v0 }
 0x12e   :  { %468 = vmatmul.mubr.f32.vlgmr.msra.gmra.mrb[2].mxu1 %v279_v32 }
 0x130   :  { %6417 = vmatpush3.bf16.msra.mxu0 %v6416_v38 }
 0x1fe   :  { %v539_v39 = vpop.f32.mrb[2].mxu0 }
 0x1ff   :  { %v5851_v40 = vpop.f32.mrb[3].mxu0 }
 0x201   :  { %v5547_v41 = vpop.f32.mrb[2].mxu1 }
 0x202   :  { %v5548_v42 = vpop.f32.mrb[3].mxu1 }
 0x203   :  { %v5549_v43 = vadd.f32 %v5548_v42, %v5547_v41  ;;  %v7419_v41 = vld [vmem:[#allocation7 + $0x78] sm:$0xff]  ;;  %v7421_v42 = vld [vmem:[#allocation7 + $0x70] sm:$0xff] }
 0x205   :  { %v7330_v44 = vadd.f32 %v5549_v43, %v539_v39 }
 0x207   :  { %v544_v45 = vrot.slane %v7330_v44, 6  ;;  %v548_v46 = vrot.slane %v7330_v44, 4 }
 0x209   :  { %545 = vrot.lane.b32.xlu0 %v544_v45, %s7018_s13 }
 0x20d   :  { %549 = vrot.lane.b32.xlu0 %v548_v46, %s7019_s14 }
 0x27b   :  { %v546_v47 = vpop.permute.xlu0 %545 }
 0x27c   :  { %v553_v48 = vsel %vm552_vm6, %v7330_v44, %v546_v47  ;;  %v5434_v44 = vld [vmem:[%s8507_s3 + $0xe8] sm:$0xff] }
 0x27f   :  { %v550_v49 = vpop.permute.xlu0 %549 }
 0x280   :  { %v7341_v50 = vsel %vm554_vm7, %v553_v48, %v550_v49 }
 0x281   :  { %5861 = vmatmul.mubr.msk.f32.vlgmr.msra.gmra.mrb[4].mxu0 %vm577_vm8, %v7341_v50 }
 0x354   :  { %v647_v56 = vpop.f32.mrb[4].mxu0 }
 0x355   :  { %v7354_v57 = vadd.f32 %v647_v56, %v576_v55  ;;  %v5862_v58 = vpop.f32.mrb[5].mxu0 }
 0x357   :  { %v652_v60 = vsel %vm651_vm9, %v7354_v57, 0.0  ;;  %662 = vrot.lane.b32.xlu1 %v7354_v57, %s7018_s13 }
 0x358   :  { %v653_v61 = vmul.f32 %v652_v60, %v7356_v59  ;;  %v654_v3 = vmul.f32 %v652_v60, %v7364_v63  ;;  %v655_v4 = vmul.f32 %v652_v60, %v7367_v2  ;;  %v656_v7 = vmul.f32 %v652_v60, %v7373_v5 }
 0x359   :  { %v657_v8 = vmul.f32 %v652_v60, %v7376_v6  ;;  %v658_v11 = vmul.f32 %v652_v60, %v7381_v9  ;;  %v659_v12 = vmul.f32 %v652_v60, %v7384_v10  ;;  %v660_v14 = vmul.f32 %v652_v60, %v7389_v13 }
 0x35a   :  { %5865 = vmatprep.mubr.msk.f32.mxu0 %vm577_vm8, %v653_v61 }
 0x3c9   :  { %v663_v62 = vpop.permute.xlu1 %662 }
 0x3ca   :  { %5863 = vmatprep.subr.msk.mxu0 %vm577_vm8, %v663_v62 }
 0x3cb   :  { %5864 = vmatpush3.xpose.msk.msra.mxu0 %vm577_vm8, %v663_v62 }
 0x3cc   :  { %6418 = vmatprep.subr.bf16.mxu0 %v7014_v0 }
 0x3ce   :  { %5866 = vmatmul.mubr.msk.f32.vlgmr.msra.gmra.mrb[6].mxu0 %vm577_vm8, %v654_v3 }
 0x3cf   :  { %5868 = vmatprep.mubr.msk.f32.mxu0 %vm577_vm8, %v655_v4 }
 0x3d2   :  { %5869 = vmatmul.mubr.msk.f32.gmra.mrb[8].mxu0 %vm577_vm8, %v656_v7 }
 0x3d3   :  { %5871 = vmatprep.mubr.msk.f32.mxu0 %vm577_vm8, %v657_v8 }
 0x3d6   :  { %5872 = vmatmul.mubr.msk.f32.gmra.mrb[10].mxu0 %vm577_vm8, %v658_v11 }
 0x3d7   :  { %5874 = vmatprep.mubr.msk.f32.mxu0 %vm577_vm8, %v659_v12 }
 0x3da   :  { %5875 = vmatmul.mubr.msk.f32.gmra.mrb[12].mxu0 %vm577_vm8, %v660_v14 }
 0x3db   :  { %5899 = vmatprep.mubr.msk.f32.mxu0 %vm7016_vm0, %v7015_v1 }
 0x4a1   :  { %v5867_v17 = vpop.f32.mrb[6].mxu0 }
 0x4a2   :  { %v762_v18 = vadd.f32 %v5867_v17, %v7397_v15  ;;  %v756_v19 = vpop.f32.mrb[7].mxu0 }
 0x4a3   :  { %v757_v20 = vadd.f32 %v756_v19, %v7399_v16 }
 0x4a4   :  { %v799_v22 = vsel %vm795_vm10, %v762_v18, -inf }
 0x4a5   :  { %800 = vmax.xlane.f32.xlu0 %v799_v22  ;;  %v5870_v24 = vpop.f32.mrb[8].mxu0  ;;  %v796_v25 = vsel %vm795_vm10, %v757_v20, -inf }
 0x4a6   :  { %v772_v26 = vadd.f32 %v5870_v24, %v7403_v21  ;;  %v766_v27 = vpop.f32.mrb[9].mxu0  ;;  %797 = vmax.xlane.f32.xlu1 %v796_v25 }
 0x4a7   :  { %v767_v28 = vadd.f32 %v766_v27, %v7406_v23 }
 0x4a8   :  { %v805_v31 = vsel %vm795_vm10, %v772_v26, -inf }
 0x4a9   :  { %v5873_v32 = vpop.f32.mrb[10].mxu0  ;;  %v802_v35 = vsel %vm795_vm10, %v767_v28, -inf }
 0x4aa   :  { %v782_v38 = vadd.f32 %v5873_v32, %v7411_v29  ;;  %v776_v39 = vpop.f32.mrb[11].mxu0  ;;  %803 = vmax.xlane.f32.xlu0 %v802_v35  ;;  %806 = vmax.xlane.f32.xlu1 %v805_v31 }
 0x4ab   :  { %v777_v40 = vadd.f32 %v776_v39, %v7413_v30 }
 0x4ac   :  { %v811_v43 = vsel %vm795_vm10, %v782_v38, -inf }
 0x4ad   :  { %v5876_v46 = vpop.f32.mrb[12].mxu0  ;;  %v808_v47 = vsel %vm795_vm10, %v777_v40, -inf }
 0x4ae   :  { %v792_v48 = vadd.f32 %v5876_v46, %v7419_v41  ;;  %v786_v49 = vpop.f32.mrb[13].mxu0  ;;  %809 = vmax.xlane.f32.xlu0 %v808_v47  ;;  %812 = vmax.xlane.f32.xlu1 %v811_v43 }
 0x4af   :  { %v787_v51 = vadd.f32 %v786_v49, %v7421_v42 }
 0x4b0   :  { %v817_v55 = vsel %vm795_vm10, %v792_v48, -inf }
 0x4b1   :  { %v814_v56 = vsel %vm795_vm10, %v787_v51, -inf }
 0x4b2   :  { %815 = vmax.xlane.f32.xlu0 %v814_v56  ;;  %818 = vmax.xlane.f32.xlu1 %v817_v55 }
 0x532   :  { %v801_v58 = vpop.xlane.xlu0 %800 }
 0x533   :  { %v821_v60 = vsub.f32 %v762_v18, %v801_v58  ;;  %v798_v61 = vpop.xlane.xlu1 %797 }
 0x534   :  { %v820_v62 = vsub.f32 %v757_v20, %v798_v61 }
 0x535   :  { %v830_v3 = vmul.f32 1.442695, %v821_v60 }
 0x536   :  { %v828_v4 = vmul.f32 1.442695, %v820_v62 }
 0x537   :  { %6708 = vpow2.f32 %v830_v3  ;;  %v804_v7 = vpop.xlane.xlu0 %803  ;;  %v807_v8 = vpop.xlane.xlu1 %806 }
 0x538   :  { %6710 = vpow2.f32 %v828_v4  ;;  %v822_v11 = vsub.f32 %v767_v28, %v804_v7  ;;  %v823_v12 = vsub.f32 %v772_v26, %v807_v8  ;;  %v6628_v4 = vpack.i.bf16 %v7313_v34, %v7308_v33 }
 0x539   :  { %v6633_v7 = vpack.i.bf16 %v7326_v37, %v7321_v36 }
 0x53a   :  { %v832_v14 = vmul.f32 1.442695, %v822_v11  ;;  %v834_v17 = vmul.f32 1.442695, %v823_v12 }
 0x53b   :  { %v810_v19 = vpop.xlane.xlu0 %809  ;;  %v813_v22 = vpop.xlane.xlu1 %812 }
 0x53c   :  { %6712 = vpow2.f32 %v832_v14  ;;  %v824_v24 = vsub.f32 %v777_v40, %v810_v19  ;;  %v825_v25 = vsub.f32 %v782_v38, %v813_v22 }
 0x53d   :  { %6714 = vpow2.f32 %v834_v17 }
 0x53e   :  { %v836_v27 = vmul.f32 1.442695, %v824_v24  ;;  %v838_v18 = vmul.f32 1.442695, %v825_v25 }
 0x53f   :  { %v816_v31 = vpop.xlane.xlu0 %815  ;;  %v819_v20 = vpop.xlane.xlu1 %818 }
 0x540   :  { %6716 = vpow2.f32 %v836_v27  ;;  %v826_v32 = vsub.f32 %v787_v51, %v816_v31  ;;  %v827_v35 = vsub.f32 %v792_v48, %v819_v20 }
 0x541   :  { %v6709_v39 = vpop.eup %6708  ;;  %6718 = vpow2.f32 %v838_v18 }
 0x542   :  { %v6711_v43 = vpop.eup %6710  ;;  %v840_v28 = vmul.f32 1.442695, %v826_v32  ;;  %v842_v26 = vmul.f32 1.442695, %v827_v35  ;;  %v847_v46 = vsel %vm795_vm10, %v6709_v39, 0.0 }
 0x543   :  { %848 = vadd.xlane.f32.xlu1 %v847_v46  ;;  %v844_v47 = vsel %vm795_vm10, %v6711_v43, 0.0 }
 0x544   :  { %6720 = vpow2.f32 %v840_v28  ;;  %845 = vadd.xlane.f32.xlu0 %v844_v47 }
 0x545   :  { %6722 = vpow2.f32 %v842_v26 }
 0x546   :  { %v6713_v38 = vpop.eup %6712 }
 0x547   :  { %v6715_v40 = vpop.eup %6714  ;;  %v850_v49 = vsel %vm795_vm10, %v6713_v38, 0.0 }
 0x548   :  { %851 = vadd.xlane.f32.xlu0 %v850_v49  ;;  %v853_v48 = vsel %vm795_vm10, %v6715_v40, 0.0 }
 0x549   :  { %854 = vadd.xlane.f32.xlu1 %v853_v48 }
 0x54a   :  { %v6717_v51 = vpop.eup %6716 }
 0x54b   :  { %v6719_v55 = vpop.eup %6718  ;;  %v856_v56 = vsel %vm795_vm10, %v6717_v51, 0.0 }
 0x54c   :  { %857 = vadd.xlane.f32.xlu0 %v856_v56  ;;  %v859_v58 = vsel %vm795_vm10, %v6719_v55, 0.0 }
 0x54d   :  { %860 = vadd.xlane.f32.xlu1 %v859_v58 }
 0x54e   :  { %v6721_v60 = vpop.eup %6720 }
 0x54f   :  { %v6723_v61 = vpop.eup %6722  ;;  %v862_v62 = vsel %vm795_vm10, %v6721_v60, 0.0 }
 0x550   :  { %863 = vadd.xlane.f32.xlu0 %v862_v62  ;;  %v865_v3 = vsel %vm795_vm10, %v6723_v61, 0.0 }
 0x551   :  { %866 = vadd.xlane.f32.xlu1 %v865_v3 }
 0x562   :  { %6629 = vrot.lane.b32.xlu1 %v6628_v4, %s7020_s15 }
 0x566   :  { %884 = vrot.lane.b32.xlu0 %v7354_v57, %s7019_s14  ;;  %6634 = vrot.lane.b32.xlu1 %v6633_v7, %s7020_s15 }
 0x5d0   :  { %v849_v8 = vpop.xlane.xlu1 %848 }
 0x5d1   :  { %v846_v11 = vpop.xlane.xlu0 %845 }
 0x5d2   :  { %6724 = vrcp.f32 %v846_v11 }
 0x5d3   :  { %6726 = vrcp.f32 %v849_v8 }
 0x5d5   :  { %v852_v12 = vpop.xlane.xlu0 %851 }
 0x5d6   :  { %6728 = vrcp.f32 %v852_v12  ;;  %v855_v14 = vpop.xlane.xlu1 %854 }
 0x5d7   :  { %6730 = vrcp.f32 %v855_v14 }
 0x5d9   :  { %v858_v57 = vpop.xlane.xlu0 %857 }
 0x5da   :  { %6732 = vrcp.f32 %v858_v57  ;;  %v861_v17 = vpop.xlane.xlu1 %860 }
 0x5db   :  { %6734 = vrcp.f32 %v861_v17 }
 0x5dc   :  { %v6725_v33 = vpop.eup %6724 }
 0x5dd   :  { %v864_v34 = vpop.xlane.xlu0 %863  ;;  %v869_v19 = vmul.f32 %v6725_v33, %v6711_v43  ;;  %v6727_v36 = vpop.eup %6726 }
 0x5de   :  { %6736 = vrcp.f32 %v864_v34  ;;  %v867_v22 = vpop.xlane.xlu1 %866  ;;  %v871_v25 = vmul.f32 %v6727_v36, %v6709_v39 }
 0x5df   :  { %5879 = vmatprep.mubr.msk.f32.mxu1 %vm795_vm10, %v869_v19  ;;  %6738 = vrcp.f32 %v867_v22 }
 0x5e0   :  { %v6729_v37 = vpop.eup %6728 }
 0x5e1   :  { %v885_v24 = vpop.permute.xlu0 %884  ;;  %v6731_v27 = vpop.eup %6730  ;;  %v873_v18 = vmul.f32 %v6729_v37, %v6713_v38 }
 0x5e2   :  { %5877 = vmatprep.subr.msk.mxu1 %vm651_vm9, %v885_v24  ;;  %v875_v20 = vmul.f32 %v6731_v27, %v6715_v40  ;;  %v6630_v47 = vpop.permute.xlu1 %6629 }
 0x5e3   :  { %5878 = vmatpush3.msk.msra.mxu1 %vm651_vm9, %v885_v24  ;;  %v6632_v38 = vunpack.i.h.bf16 %v6630_v47  ;;  %v6631_v40 = vunpack.i.l.bf16 %v6630_v47 }
 0x5e4   :  { %v6733_v31 = vpop.eup %6732  ;;  %5880 = vmatmul.mubr.msk.f32.vlgmr.msra.gmra.mrb[4].mxu1 %vm795_vm10, %v871_v25  ;;  %6424 = vmatprep.subr.bf16.mxu1 %v7014_v0 }
 0x5e5   :  { %5882 = vmatprep.mubr.msk.f32.mxu1 %vm795_vm10, %v873_v18  ;;  %v6735_v32 = vpop.eup %6734  ;;  %v877_v35 = vmul.f32 %v6733_v31, %v6717_v51  ;;  %v6419_v49 = vpack.c.bf16 %v6632_v38, %v6631_v40  ;;  %v7472_v31 = vsub.s32 2, %v7345_v52 }
 0x5e6   :  { %v879_v39 = vmul.f32 %v6735_v32, %v6719_v55  ;;  %v6635_v48 = vpop.permute.xlu1 %6634 }
 0x5e7   :  { %6420 = vmatpush3.bf16.msra.mxu0 %v6419_v49  ;;  %v6637_v51 = vunpack.i.h.bf16 %v6635_v48  ;;  %v6636_v55 = vunpack.i.l.bf16 %v6635_v48  ;;  %v557_v49 = vld [vmem:[%s8507_s3 + $0x8] sm:$0xff] }
 0x5e8   :  { %v6737_v43 = vpop.eup %6736  ;;  %5883 = vmatmul.mubr.msk.f32.gmra.mrb[6].mxu1 %vm795_vm10, %v875_v20  ;;  %6421 = vmatprep.subr.bf16.mxu0 %v7014_v0  ;;  %v1125_v20 = vrot.slane %v7350_v54, %v7472_v31 }
 0x5e9   :  { %5885 = vmatprep.mubr.msk.f32.mxu1 %vm795_vm10, %v877_v35  ;;  %v6739_v28 = vpop.eup %6738  ;;  %v881_v26 = vmul.f32 %v6737_v43, %v6721_v60  ;;  %v6422_v56 = vpack.c.bf16 %v6637_v51, %v6636_v55  ;;  %v561_v51 = vld [vmem:[%s8507_s3 + $0x28] sm:$0xff]  ;;  %v563_v55 = vld [vmem:[%s8507_s3 + $0x38] sm:$0xff] }
 0x5ea   :  { %v883_v46 = vmul.f32 %v6739_v28, %v6723_v61 }
 0x5eb   :  { %6423 = vmatpush3.bf16.msra.mxu0 %v6422_v56  ;;  %v6428_v56 = vpack.c.bf16 %v563_v55, %v561_v51 }
 0x5ec   :  { %5886 = vmatmul.mubr.msk.f32.gmra.mrb[8].mxu1 %vm795_vm10, %v879_v39  ;;  %6430 = vmatprep.subr.bf16.mxu0 %v7014_v0 }
 0x5ed   :  { %5888 = vmatprep.mubr.msk.f32.mxu1 %vm795_vm10, %v881_v26 }
 0x5f0   :  { %5889 = vmatmul.mubr.msk.f32.gmra.mrb[10].mxu1 %vm795_vm10, %v883_v46 }
 0x5f1   :  { %5910 = vmatprep.mubr.msk.f32.mxu1 %vm7016_vm0, %v7015_v1 }
 0x6b7   :  { %v5881_v58 = vpop.f32.mrb[4].mxu1 }
 0x6b8   :  { %v1018_v60 = vmul.f32 %v5881_v58, %v7364_v63  ;;  %v978_v61 = vpop.f32.mrb[5].mxu1  ;;  %v564_v58 = vld [vmem:[%s8508_s4] sm:$0xff] }
 0x6b9   :  { %v1017_v62 = vmul.f32 %v978_v61, %v7356_v59  ;;  %v566_v61 = vld [vmem:[%s8508_s4 + $0x10] sm:$0xff] }
 0x6bb   :  { %v1025_v3 = vadd.f32 %v1018_v60, %v1017_v62  ;;  %v5884_v4 = vpop.f32.mrb[6].mxu1  ;;  %v565_v60 = vld [vmem:[%s8508_s4 + $0x8] sm:$0xff] }
 0x6bc   :  { %v988_v7 = vpop.f32.mrb[7].mxu1  ;;  %v1020_v11 = vmul.f32 %v5884_v4, %v7373_v5  ;;  %v6431_v62 = vpack.c.bf16 %v565_v60, %v564_v58  ;;  %v7549_v60 = vld [vmem:[%s8507_s3 + $0x40] sm:$0xff] }
 0x6bd   :  { %v1019_v8 = vmul.f32 %v988_v7, %v7367_v2  ;;  %v568_v7 = vld [vmem:[%s8508_s4 + $0x20] sm:$0xff] }
 0x6bf   :  { %v1026_v12 = vadd.f32 %v1025_v3, %v1019_v8  ;;  %v5887_v14 = vpop.f32.mrb[8].mxu1  ;;  %v567_v3 = vld [vmem:[%s8508_s4 + $0x18] sm:$0xff]  ;;  %v569_v8 = vld [vmem:[%s8508_s4 + $0x28] sm:$0xff] }
 0x6c0   :  { %v998_v57 = vpop.f32.mrb[9].mxu1  ;;  %v1022_v34 = vmul.f32 %v5887_v14, %v7381_v9  ;;  %v6434_v4 = vpack.c.bf16 %v567_v3, %v566_v61  ;;  %v7554_v61 = vld [vmem:[%s8507_s3 + $0x50] sm:$0xff]  ;;  %v7561_v3 = vld [vmem:[%s8507_s3 + $0x60] sm:$0xff] }
 0x6c1   :  { %v1021_v17 = vmul.f32 %v998_v57, %v7376_v6  ;;  %v1027_v33 = vadd.f32 %v1026_v12, %v1020_v11  ;;  %v6437_v11 = vpack.c.bf16 %v569_v8, %v568_v7 }
 0x6c3   :  { %v1028_v19 = vadd.f32 %v1027_v33, %v1021_v17  ;;  %v5890_v22 = vpop.f32.mrb[10].mxu1  ;;  %v7515_v17 = vsub.s32 4, %v7345_v52  ;;  %v7518_v33 = vsub.s32 5, %v7345_v52 }
 0x6c4   :  { %v1008_v36 = vpop.f32.mrb[11].mxu1  ;;  %v1024_v25 = vmul.f32 %v5890_v22, %v7389_v13 }
 0x6c5   :  { %v1023_v37 = vmul.f32 %v1008_v36, %v7384_v10  ;;  %v1029_v24 = vadd.f32 %v1028_v19, %v1022_v34  ;;  %v1145_v34 = vrot.slane %v7350_v54, %v7515_v17  ;;  %v1150_v36 = vrot.slane %v7350_v54, %v7518_v33 }
 0x6c7   :  { %v1030_v27 = vadd.f32 %v1029_v24, %v1023_v37 }
 0x6c9   :  { %v1031_v18 = vadd.f32 %v1030_v27, %v1024_v25  ;;  %v570_v25 = vld [vmem:[%s8508_s4 + $0x30] sm:$0xff]  ;;  %v571_v27 = vld [vmem:[%s8508_s4 + $0x38] sm:$0xff] }
 0x6cb   :  { %5900 = vmatmul.mubr.msk.f32.vlgmr.msra.gmra.mrb[14].mxu0 %vm577_vm8, %v1031_v18  ;;  %v6440_v18 = vpack.c.bf16 %v571_v27, %v570_v25  ;;  %v7585_v25 = vld [vmem:[#allocation4 + $0x8] sm:$0xff] }
 0x6cc   :  { %5929 = vmatprep.mubr.msk.f32.mxu0 %vm7016_vm0, %v7015_v1  ;;  %6432 = vmatpush3.bf16.msra.mxu0 %v6431_v62  ;;  %v6443_v62 = vpack.c.bf16 %v7554_v61, %v7549_v60 }
 0x6cd   :  { %6433 = vmatprep.subr.bf16.mxu0 %v7014_v0 }
 0x6d0   :  { %6435 = vmatpush3.bf16.msra.mxu0 %v6434_v4  ;;  %v7566_v4 = vld [vmem:[%s8507_s3 + $0x70] sm:$0xff] }
 0x6d1   :  { %6436 = vmatprep.subr.bf16.mxu0 %v7014_v0  ;;  %v6446_v7 = vpack.c.bf16 %v7566_v4, %v7561_v3 }
 0x6d4   :  { %6438 = vmatpush3.bf16.msra.mxu0 %v6437_v11 }
 0x6d5   :  { %6439 = vmatprep.subr.bf16.mxu0 %v7014_v0 }
 0x6d8   :  { %6441 = vmatpush3.bf16.msra.mxu0 %v6440_v18 }
 0x79e   :  { %v1117_v32 = vpop.f32.mrb[14].mxu0 }
 0x79f   :  { %v1121_v35 = vadd.f32 %v1117_v32, %v7341_v50  ;;  %v5901_v43 = vpop.f32.mrb[15].mxu0  ;;  %v559_v50 = vld [vmem:[%s8507_s3 + $0x18] sm:$0xff] }
 0x7a0   :  { %v6425_v48 = vpack.c.bf16 %v559_v50, %v557_v49 }
 0x7a1   :  { %v1126_v39 = vadd.f32 %v1125_v20, %v1121_v35  ;;  %v7534_v20 = vsub.s32 1, %v7345_v52 }
 0x7a2   :  { %6426 = vmatpush3.bf16.msra.mxu1 %v6425_v48 }
 0x7a3   :  { %v1128_v28 = vsel %vm1127_vm11, %v1126_v39, 0.0  ;;  %6427 = vmatprep.subr.bf16.mxu1 %v7014_v0  ;;  %v1155_v32 = vrot.slane %v7350_v54, %v7534_v20 }
 0x7a4   :  { %1129 = vadd.xlane.f32.xlu0 %v1128_v28 }
 0x7a6   :  { %6429 = vmatpush3.bf16.msra.mxu1 %v6428_v56 }
 0x7a7   :  { %6442 = vmatprep.subr.bf16.mxu1 %v7014_v0 }
 0x831   :  { %v1130_v26 = vpop.xlane.xlu0 %1129 }
 0x832   :  { %v1132_v46 = vmul.f32 0.03125, %v1130_v26  ;;  %v7540_v26 = vsub.s32 3, %v7345_v52 }
 0x834   :  { %v1133_v47 = vsub.f32 %v1126_v39, %v1132_v46  ;;  %v1233_v46 = vrot.slane %v7350_v54, %v7540_v26 }
 0x836   :  { %v1134_v38 = vmul.f32 %v1133_v47, %v1133_v47 }
 0x838   :  { %v1135_v40 = vsel %vm1127_vm11, %v1134_v38, 0.0 }
 0x839   :  { %1136 = vadd.xlane.f32.xlu1 %v1135_v40 }
 0x8c6   :  { %v1137_v12 = vpop.xlane.xlu1 %1136 }
 0x8c7   :  { %v1138_v14 = vmul.f32 0.03125, %v1137_v12 }
 0x8c9   :  { %v1139_v57 = vadd.f32 1e-05, %v1138_v14  ;;  %v7572_v14 = vsub.s32 6, %v7345_v52 }
 0x8cb   :  { %6740 = vrsqrt.f32 %v1139_v57  ;;  %v7575_v57 = vsub.s32 7, %v7345_v52  ;;  %v1354_v52 = vrot.slane %v7585_v25, %v7348_v53 }
 0x8d5   :  { %v6741_v19 = vpop.eup %6740 }
 0x8d6   :  { %v1141_v22 = vmul.f32 %v6741_v19, %v1133_v47 }
 0x8d8   :  { %v1146_v37 = vmul.f32 %v1145_v34, %v1141_v22  ;;  %v1324_v34 = vrot.slane %v7350_v54, %v7572_v14 }
 0x8da   :  { %v1151_v24 = vadd.f32 %v1150_v36, %v1146_v37  ;;  %v1329_v36 = vrot.slane %v7350_v54, %v7575_v57 }
 0x8dc   :  { %5911 = vmatmul.mubr.msk.f32.vlgmr.msra.gmra.mrb[12].mxu1 %vm577_vm8, %v1151_v24 }
 0x8dd   :  { %5940 = vmatprep.mubr.msk.f32.mxu1 %vm7016_vm0, %v7015_v1  ;;  %6444 = vmatpush3.bf16.msra.mxu1 %v6443_v62 }
 0x8de   :  { %6445 = vmatprep.subr.bf16.mxu1 %v7014_v0 }
 0x8e1   :  { %6447 = vmatpush3.bf16.msra.mxu1 %v6446_v7 }
 0x9af   :  { %v1225_v35 = vpop.f32.mrb[12].mxu1 }
 0x9b0   :  { %v1226_v43 = vadd.f32 %v1225_v35, %v1155_v32  ;;  %v5912_v39 = vpop.f32.mrb[13].mxu1 }
 0x9b2   :  { %v1229_v28 = vmax.f32 %v1226_v43, 0.0 }
 0x9b4   :  { %5930 = vmatmul.mubr.msk.f32.vlgmr.msra.gmra.mrb[16].mxu0 %vm399_vm5, %v1229_v28 }
 0xa87   :  { %v1303_v47 = vpop.f32.mrb[16].mxu0 }
 0xa88   :  { %v1304_v38 = vadd.f32 %v1303_v47, %v1233_v46  ;;  %v5931_v40 = vpop.f32.mrb[17].mxu0 }
 0xa8a   :  { %v1307_v49 = vadd.f32 %v1304_v38, %v1151_v24 }
 0xa8c   :  { %v1308_v50 = vsel %vm1127_vm11, %v1307_v49, 0.0 }
 0xa8d   :  { %1309 = vadd.xlane.f32.xlu0 %v1308_v50 }
 0xb1a   :  { %v1310_v48 = vpop.xlane.xlu0 %1309 }
 0xb1b   :  { %v1311_v51 = vmul.f32 0.03125, %v1310_v48 }
 0xb1d   :  { %v1312_v55 = vsub.f32 %v1307_v49, %v1311_v51 }
 0xb1f   :  { %v1313_v56 = vmul.f32 %v1312_v55, %v1312_v55 }
 0xb21   :  { %v1314_v58 = vsel %vm1127_vm11, %v1313_v56, 0.0 }
 0xb22   :  { %1315 = vadd.xlane.f32.xlu0 %v1314_v58 }
 0xbaf   :  { %v1316_v8 = vpop.xlane.xlu0 %1315 }
 0xbb0   :  { %v1317_v11 = vmul.f32 0.03125, %v1316_v8 }
 0xbb2   :  { %v1318_v12 = vadd.f32 1e-05, %v1317_v11 }
 0xbb4   :  { %6742 = vrsqrt.f32 %v1318_v12 }
 0xbbe   :  { %v6743_v19 = vpop.eup %6742 }
 0xbbf   :  { %v1320_v22 = vmul.f32 %v6743_v19, %v1312_v55 }
 0xbc1   :  { %v1325_v37 = vmul.f32 %v1324_v34, %v1320_v22 }
 0xbc3   :  { %v7581_v24 = vadd.f32 %v1329_v36, %v1325_v37 }
 0xbc5   :  { %5941 = vmatmul.mubr.msk.f32.vlgmr.msra.gmra.mrb[14].mxu1 %vm577_vm8, %v7581_v24 }
 0xc98   :  { %v1424_v27 = vpop.f32.mrb[14].mxu1 }
 0xc99   :  { %v7589_v18 = vadd.f32 %v1424_v27, %v1354_v52  ;;  %v5942_v32 = vpop.f32.mrb[15].mxu1 }
 0xc9b   :  { %v1428_v35 = vsel %vm651_vm9, %v7589_v18, 0.0  ;;  %1438 = vrot.lane.b32.xlu1 %v7589_v18, %s7018_s13 }
 0xc9c   :  { %v1429_v54 = vmul.f32 %v1428_v35, %v7356_v59  ;;  %v1430_v39 = vmul.f32 %v1428_v35, %v7364_v63  ;;  %v1431_v28 = vmul.f32 %v1428_v35, %v7367_v2  ;;  %v1432_v46 = vmul.f32 %v1428_v35, %v7373_v5 }
 0xc9d   :  { %v1433_v47 = vmul.f32 %v1428_v35, %v7376_v6  ;;  %v1434_v38 = vmul.f32 %v1428_v35, %v7381_v9  ;;  %v1435_v40 = vmul.f32 %v1428_v35, %v7384_v10  ;;  %v1436_v49 = vmul.f32 %v1428_v35, %v7389_v13 }
 0xc9e   :  { %5945 = vmatprep.mubr.msk.f32.mxu1 %vm577_vm8, %v1429_v54 }
 0xd0d   :  { %v1439_v43 = vpop.permute.xlu1 %1438 }
 0xd0e   :  { %5943 = vmatprep.subr.msk.mxu1 %vm577_vm8, %v1439_v43 }
 0xd0f   :  { %5944 = vmatpush3.xpose.msk.msra.mxu1 %vm577_vm8, %v1439_v43 }
 0xd10   :  { %6448 = vmatprep.subr.bf16.mxu1 %v7014_v0 }
 0xd12   :  { %5946 = vmatmul.mubr.msk.f32.vlgmr.msra.gmra.mrb[16].mxu1 %vm577_vm8, %v1430_v39 }
 0xd13   :  { %5948 = vmatprep.mubr.msk.f32.mxu1 %vm577_vm8, %v1431_v28 }
 0xd16   :  { %5949 = vmatmul.mubr.msk.f32.gmra.mrb[18].mxu1 %vm577_vm8, %v1432_v46 }
 0xd17   :  { %5951 = vmatprep.mubr.msk.f32.mxu1 %vm577_vm8, %v1433_v47 }
 0xd1a   :  { %5952 = vmatmul.mubr.msk.f32.gmra.mrb[20].mxu1 %vm577_vm8, %v1434_v38 }
 0xd1b   :  { %5954 = vmatprep.mubr.msk.f32.mxu1 %vm577_vm8, %v1435_v40 }
 0xd1e   :  { %5955 = vmatmul.mubr.msk.f32.gmra.mrb[22].mxu1 %vm577_vm8, %v1436_v49 }
 0xd1f   :  { %5979 = vmatprep.mubr.msk.f32.mxu1 %vm7016_vm0, %v7015_v1 }
 0xde5   :  { %v5947_v50 = vpop.f32.mrb[16].mxu1 }
 0xde6   :  { %v1538_v48 = vadd.f32 %v5947_v50, %v7397_v15  ;;  %v1532_v51 = vpop.f32.mrb[17].mxu1 }
 0xde7   :  { %v1533_v55 = vadd.f32 %v1532_v51, %v7399_v16 }
 0xde8   :  { %v1574_v56 = vsel %vm795_vm10, %v1538_v48, -inf }
 0xde9   :  { %1575 = vmax.xlane.f32.xlu0 %v1574_v56  ;;  %v5950_v58 = vpop.f32.mrb[18].mxu1  ;;  %v1571_v8 = vsel %vm795_vm10, %v1533_v55, -inf }
 0xdea   :  { %v1542_v62 = vpop.f32.mrb[19].mxu1  ;;  %v1548_v7 = vadd.f32 %v5950_v58, %v7403_v21 }
 0xdeb   :  { %v1543_v19 = vadd.f32 %v1542_v62, %v7406_v23 }
 0xdec   :  { %v1580_v15 = vsel %vm795_vm10, %v1548_v7, -inf }
 0xded   :  { %v5953_v11 = vpop.f32.mrb[20].mxu1  ;;  %1572 = vmax.xlane.f32.xlu0 %v1571_v8  ;;  %v1577_v21 = vsel %vm795_vm10, %v1543_v19, -inf }
 0xdee   :  { %v1552_v12 = vpop.f32.mrb[21].mxu1  ;;  %v1558_v37 = vadd.f32 %v5953_v11, %v7411_v29 }
 0xdef   :  { %v1553_v34 = vadd.f32 %v1552_v12, %v7413_v30 }
 0xdf0   :  { %v1586_v27 = vsel %vm795_vm10, %v1558_v37, -inf }
 0xdf1   :  { %v5956_v22 = vpop.f32.mrb[22].mxu1  ;;  %1581 = vmax.xlane.f32.xlu0 %v1580_v15  ;;  %v1583_v16 = vsel %vm795_vm10, %v1553_v34, -inf }
 0xdf2   :  { %v1562_v36 = vpop.f32.mrb[23].mxu1  ;;  %1584 = vmax.xlane.f32.xlu1 %v1583_v16  ;;  %v1568_v23 = vadd.f32 %v5956_v22, %v7419_v41 }
 0xdf3   :  { %v1563_v52 = vadd.f32 %v1562_v36, %v7421_v42 }
 0xdf4   :  { %v1592_v32 = vsel %vm795_vm10, %v1568_v23, -inf }
 0xdf5   :  { %1578 = vmax.xlane.f32.xlu0 %v1577_v21  ;;  %v1589_v30 = vsel %vm795_vm10, %v1563_v52, -inf }
 0xdf9   :  { %1587 = vmax.xlane.f32.xlu0 %v1586_v27 }
 0xdfd   :  { %1590 = vmax.xlane.f32.xlu0 %v1589_v30 }
 0xe01   :  { %1593 = vmax.xlane.f32.xlu0 %v1592_v32 }
 0xe76   :  { %v1576_v35 = vpop.xlane.xlu0 %1575 }
 0xe77   :  { %v1596_v54 = vsub.f32 %v1538_v48, %v1576_v35 }
 0xe79   :  { %v1605_v43 = vmul.f32 1.442695, %v1596_v54 }
 0xe7a   :  { %v1573_v29 = vpop.xlane.xlu0 %1572 }
 0xe7b   :  { %6744 = vpow2.f32 %v1605_v43  ;;  %v1595_v39 = vsub.f32 %v1533_v55, %v1573_v29  ;;  %v6638_v29 = vpack.i.bf16 %v7554_v61, %v7549_v60 }
 0xe7d   :  { %v1603_v28 = vmul.f32 1.442695, %v1595_v39  ;;  %v6643_v39 = vpack.i.bf16 %v7566_v4, %v7561_v3 }
 0xe7e   :  { %v1582_v46 = vpop.xlane.xlu0 %1581 }
 0xe7f   :  { %6746 = vpow2.f32 %v1603_v28  ;;  %v1598_v42 = vsub.f32 %v1548_v7, %v1582_v46  ;;  %v1585_v47 = vpop.xlane.xlu1 %1584 }
 0xe80   :  { %v1599_v40 = vsub.f32 %v1553_v34, %v1585_v47 }
 0xe81   :  { %v1609_v38 = vmul.f32 1.442695, %v1598_v42 }
 0xe82   :  { %v1579_v41 = vpop.xlane.xlu0 %1578  ;;  %v1611_v51 = vmul.f32 1.442695, %v1599_v40 }
 0xe83   :  { %6748 = vpow2.f32 %v1609_v38  ;;  %v1597_v49 = vsub.f32 %v1543_v19, %v1579_v41 }
 0xe85   :  { %v7632_v50 = vpop.eup %6744  ;;  %v1607_v56 = vmul.f32 1.442695, %v1597_v49 }
 0xe86   :  { %v1588_v58 = vpop.xlane.xlu0 %1587  ;;  %v1622_v48 = vsel %vm795_vm10, %v7632_v50, 0.0 }
 0xe87   :  { %6750 = vpow2.f32 %v1607_v56  ;;  %v1600_v55 = vsub.f32 %v1558_v37, %v1588_v58  ;;  %1623 = vadd.xlane.f32.xlu0 %v1622_v48 }
 0xe88   :  { %6752 = vpow2.f32 %v1611_v51 }
 0xe89   :  { %v6747_v62 = vpop.eup %6746  ;;  %v1613_v7 = vmul.f32 1.442695, %v1600_v55 }
 0xe8a   :  { %v1591_v8 = vpop.xlane.xlu0 %1590  ;;  %v1619_v11 = vsel %vm795_vm10, %v6747_v62, 0.0 }
 0xe8b   :  { %v1601_v12 = vsub.f32 %v1563_v52, %v1591_v8  ;;  %1620 = vadd.xlane.f32.xlu0 %v1619_v11  ;;  %6754 = vpow2.f32 %v1613_v7 }
 0xe8d   :  { %v6749_v34 = vpop.eup %6748  ;;  %v1615_v19 = vmul.f32 1.442695, %v1601_v12 }
 0xe8e   :  { %v1594_v15 = vpop.xlane.xlu0 %1593  ;;  %v1628_v22 = vsel %vm795_vm10, %v6749_v34, 0.0 }
 0xe8f   :  { %6756 = vpow2.f32 %v1615_v19  ;;  %v1602_v16 = vsub.f32 %v1568_v23, %v1594_v15  ;;  %1629 = vadd.xlane.f32.xlu0 %v1628_v22 }
 0xe91   :  { %v6751_v36 = vpop.eup %6750  ;;  %v1617_v37 = vmul.f32 1.442695, %v1602_v16 }
 0xe92   :  { %v1625_v21 = vsel %vm795_vm10, %v6751_v36, 0.0  ;;  %v6753_v27 = vpop.eup %6752 }
 0xe93   :  { %6758 = vpow2.f32 %v1617_v37  ;;  %1626 = vadd.xlane.f32.xlu0 %v1625_v21  ;;  %v1631_v30 = vsel %vm795_vm10, %v6753_v27, 0.0 }
 0xe95   :  { %v6755_v52 = vpop.eup %6754 }
 0xe96   :  { %v1634_v35 = vsel %vm795_vm10, %v6755_v52, 0.0 }
 0xe97   :  { %1632 = vadd.xlane.f32.xlu0 %v1631_v30 }
 0xe99   :  { %v6757_v32 = vpop.eup %6756 }
 0xe9a   :  { %v1637_v54 = vsel %vm795_vm10, %v6757_v32, 0.0 }
 0xe9b   :  { %1635 = vadd.xlane.f32.xlu0 %v1634_v35  ;;  %1638 = vadd.xlane.f32.xlu1 %v1637_v54 }
 0xe9d   :  { %v6759_v23 = vpop.eup %6758 }
 0xe9e   :  { %v1640_v43 = vsel %vm795_vm10, %v6759_v23, 0.0 }
 0xe9f   :  { %1641 = vadd.xlane.f32.xlu0 %v1640_v43 }
 0xeac   :  { %1659 = vrot.lane.b32.xlu1 %v7589_v18, %s7019_s14 }
 0xeb0   :  { %6644 = vrot.lane.b32.xlu1 %v6643_v39, %s7020_s15 }
 0xeb5   :  { %6639 = vrot.lane.b32.xlu0 %v6638_v29, %s7020_s15 }
 0xf14   :  { %v1624_v28 = vpop.xlane.xlu0 %1623 }
 0xf18   :  { %v1621_v46 = vpop.xlane.xlu0 %1620 }
 0xf19   :  { %6760 = vrcp.f32 %v1621_v46 }
 0xf1a   :  { %6762 = vrcp.f32 %v1624_v28 }
 0xf1c   :  { %v1630_v42 = vpop.xlane.xlu0 %1629 }
 0xf20   :  { %v1627_v47 = vpop.xlane.xlu0 %1626 }
 0xf21   :  { %6764 = vrcp.f32 %v1627_v47 }
 0xf22   :  { %6766 = vrcp.f32 %v1630_v42 }
 0xf23   :  { %v6761_v38 = vpop.eup %6760 }
 0xf24   :  { %v1633_v18 = vpop.xlane.xlu0 %1632  ;;  %v1644_v40 = vmul.f32 %v6761_v38, %v6747_v62  ;;  %v6763_v3 = vpop.eup %6762 }
 0xf25   :  { %6768 = vrcp.f32 %v1633_v18  ;;  %v1646_v51 = vmul.f32 %v6763_v3, %v7632_v50 }
 0xf26   :  { %5959 = vmatprep.mubr.msk.f32.mxu0 %vm795_vm10, %v1644_v40 }
 0xf28   :  { %v1639_v60 = vpop.xlane.xlu1 %1638  ;;  %v1636_v61 = vpop.xlane.xlu0 %1635 }
 0xf29   :  { %6770 = vrcp.f32 %v1639_v60 }
 0xf2a   :  { %6772 = vrcp.f32 %v1636_v61 }
 0xf2b   :  { %v6765_v4 = vpop.eup %6764 }
 0xf2c   :  { %v1660_v41 = vpop.permute.xlu1 %1659  ;;  %v1642_v49 = vpop.xlane.xlu0 %1641  ;;  %v1648_v58 = vmul.f32 %v6765_v4, %v6751_v36 }
 0xf2d   :  { %6774 = vrcp.f32 %v1642_v49  ;;  %5957 = vmatprep.subr.msk.mxu0 %vm651_vm9, %v1660_v41  ;;  %v6767_v56 = vpop.eup %6766 }
 0xf2e   :  { %5958 = vmatpush3.msk.msra.mxu0 %vm651_vm9, %v1660_v41  ;;  %v1650_v55 = vmul.f32 %v6767_v56, %v6749_v34 }
 0xf2f   :  { %v6769_v48 = vpop.eup %6768  ;;  %5960 = vmatmul.mubr.msk.f32.vlgmr.msra.gmra.mrb[18].mxu0 %vm795_vm10, %v1646_v51  ;;  %6454 = vmatprep.subr.bf16.mxu0 %v7014_v0 }
 0xf30   :  { %5962 = vmatprep.mubr.msk.f32.mxu0 %vm795_vm10, %v1648_v58  ;;  %v1652_v62 = vmul.f32 %v6769_v48, %v6753_v27  ;;  %v6640_v34 = vpop.permute.xlu0 %6639  ;;  %v6645_v36 = vpop.permute.xlu1 %6644 }
 0xf31   :  { %v6642_v15 = vunpack.i.h.bf16 %v6640_v34  ;;  %v6641_v22 = vunpack.i.l.bf16 %v6640_v34  ;;  %v6647_v37 = vunpack.i.h.bf16 %v6645_v36  ;;  %v6646_v21 = vunpack.i.l.bf16 %v6645_v36  ;;  %v5366_v36 = vld [vmem:[%s8508_s4 + $0x68] sm:$0xff] }
 0xf33   :  { %v6771_v7 = vpop.eup %6770  ;;  %5963 = vmatmul.mubr.msk.f32.gmra.mrb[20].mxu0 %vm795_vm10, %v1650_v55  ;;  %v6449_v16 = vpack.c.bf16 %v6642_v15, %v6641_v22  ;;  %v6452_v27 = vpack.c.bf16 %v6647_v37, %v6646_v21  ;;  %v5354_v55 = vld [vmem:[%s8507_s3 + $0x48] sm:$0xff]  ;;  %v5364_v15 = vld [vmem:[%s8508_s4 + $0x58] sm:$0xff] }
 0xf34   :  { %v6773_v8 = vpop.eup %6772  ;;  %5965 = vmatprep.mubr.msk.f32.mxu0 %vm795_vm10, %v1652_v62  ;;  %v1656_v11 = vmul.f32 %v6771_v7, %v6757_v32  ;;  %v5358_v7 = vld [vmem:[%s8507_s3 + $0x68] sm:$0xff] }
 0xf35   :  { %v1654_v50 = vmul.f32 %v6773_v8, %v6755_v52  ;;  %6450 = vmatpush3.bf16.msra.mxu1 %v6449_v16  ;;  %v5360_v8 = vld [vmem:[%s8507_s3 + $0x78] sm:$0xff]  ;;  %v5365_v16 = vld [vmem:[%s8508_s4 + $0x60] sm:$0xff] }
 0xf36   :  { %6451 = vmatprep.subr.bf16.mxu1 %v7014_v0  ;;  %v6467_v37 = vpack.c.bf16 %v5366_v36, %v5365_v16 }
 0xf37   :  { %v6775_v12 = vpop.eup %6774  ;;  %5966 = vmatmul.mubr.msk.f32.gmra.mrb[22].mxu0 %vm795_vm10, %v1654_v50  ;;  %v6458_v50 = vpack.c.bf16 %v5360_v8, %v5358_v7  ;;  %v2102_v8 = vrot.slane %v7585_v25, %v7575_v57 }
 0xf38   :  { %5968 = vmatprep.mubr.msk.f32.mxu0 %vm795_vm10, %v1656_v11  ;;  %v1658_v19 = vmul.f32 %v6775_v12, %v6759_v23  ;;  %v5361_v11 = vld [vmem:[%s8508_s4 + $0x40] sm:$0xff]  ;;  %v5362_v12 = vld [vmem:[%s8508_s4 + $0x48] sm:$0xff] }
 0xf39   :  { %6453 = vmatpush3.bf16.msra.mxu1 %v6452_v27  ;;  %v6461_v34 = vpack.c.bf16 %v5362_v12, %v5361_v11  ;;  %v7771_v12 = vld [vmem:[#allocation4 + $0x10] sm:$0xff] }
 0xf3a   :  { %6460 = vmatprep.subr.bf16.mxu1 %v7014_v0 }
 0xf3b   :  { %5969 = vmatmul.mubr.msk.f32.gmra.mrb[24].mxu0 %vm795_vm10, %v1658_v19  ;;  %v5363_v19 = vld [vmem:[%s8508_s4 + $0x50] sm:$0xff] }
 0xf3c   :  { %5990 = vmatprep.mubr.msk.f32.mxu0 %vm7016_vm0, %v7015_v1  ;;  %v6464_v22 = vpack.c.bf16 %v5364_v15, %v5363_v19  ;;  %v2127_v19 = vrot.slane %v7771_v12, %v7348_v53 }
0x1002   :  { %v5961_v30 = vpop.f32.mrb[18].mxu0 }
0x1003   :  { %v1793_v52 = vmul.f32 %v5961_v30, %v7364_v63  ;;  %v1753_v32 = vpop.f32.mrb[19].mxu0 }
0x1004   :  { %v1792_v35 = vmul.f32 %v1753_v32, %v7356_v59 }
0x1006   :  { %v1800_v54 = vadd.f32 %v1793_v52, %v1792_v35  ;;  %v5964_v23 = vpop.f32.mrb[20].mxu0  ;;  %v1918_v52 = vrot.slane %v7585_v25, %v7515_v17  ;;  %v1923_v35 = vrot.slane %v7585_v25, %v7518_v33 }
0x1007   :  { %v1763_v43 = vpop.f32.mrb[21].mxu0  ;;  %v1795_v39 = vmul.f32 %v5964_v23, %v7373_v5  ;;  %v1900_v5 = vrot.slane %v7585_v25, %v7472_v31 }
0x1008   :  { %v1794_v29 = vmul.f32 %v1763_v43, %v7367_v2 }
0x100a   :  { %v1801_v28 = vadd.f32 %v1800_v54, %v1794_v29  ;;  %v5967_v46 = vpop.f32.mrb[22].mxu0  ;;  %v5367_v29 = vld [vmem:[%s8508_s4 + $0x70] sm:$0xff] }
0x100b   :  { %v1773_v42 = vpop.f32.mrb[23].mxu0  ;;  %v1797_v18 = vmul.f32 %v5967_v46, %v7381_v9  ;;  %v1928_v46 = vrot.slane %v7585_v25, %v7534_v20 }
0x100c   :  { %v1796_v47 = vmul.f32 %v1773_v42, %v7376_v6  ;;  %v1802_v38 = vadd.f32 %v1801_v28, %v1795_v39  ;;  %v5368_v39 = vld [vmem:[%s8508_s4 + $0x78] sm:$0xff] }
0x100d   :  { %v6470_v28 = vpack.c.bf16 %v5368_v39, %v5367_v29  ;;  %v7807_v39 = vld [vmem:[#allocation7 + $0x30] sm:$0xff] }
0x100e   :  { %v1803_v40 = vadd.f32 %v1802_v38, %v1796_v47  ;;  %v5970_v63 = vpop.f32.mrb[24].mxu0 }
0x100f   :  { %v1783_v60 = vpop.f32.mrb[25].mxu0  ;;  %v1799_v3 = vmul.f32 %v5970_v63, %v7389_v13 }
0x1010   :  { %v1798_v59 = vmul.f32 %v1783_v60, %v7384_v10  ;;  %v1804_v61 = vadd.f32 %v1803_v40, %v1797_v18  ;;  %v2006_v40 = vrot.slane %v7585_v25, %v7540_v26 }
0x1012   :  { %v1805_v4 = vadd.f32 %v1804_v61, %v1798_v59 }
0x1014   :  { %v1806_v2 = vadd.f32 %v1805_v4, %v1799_v3 }
0x1016   :  { %5980 = vmatmul.mubr.msk.f32.vlgmr.msra.gmra.mrb[24].mxu1 %vm577_vm8, %v1806_v2 }
0x1017   :  { %6009 = vmatprep.mubr.msk.f32.mxu1 %vm7016_vm0, %v7015_v1  ;;  %6462 = vmatpush3.bf16.msra.mxu1 %v6461_v34 }
0x1018   :  { %6463 = vmatprep.subr.bf16.mxu1 %v7014_v0 }
0x101b   :  { %6465 = vmatpush3.bf16.msra.mxu1 %v6464_v22 }
0x101c   :  { %6466 = vmatprep.subr.bf16.mxu1 %v7014_v0 }
0x101f   :  { %6468 = vmatpush3.bf16.msra.mxu1 %v6467_v37 }
0x1020   :  { %6469 = vmatprep.subr.bf16.mxu1 %v7014_v0 }
0x1023   :  { %6471 = vmatpush3.bf16.msra.mxu1 %v6470_v28 }
0x10e9   :  { %v1892_v6 = vpop.f32.mrb[24].mxu1 }
0x10ea   :  { %v1896_v9 = vadd.f32 %v1892_v6, %v7581_v24  ;;  %v5981_v41 = vpop.f32.mrb[25].mxu1  ;;  %v5356_v24 = vld [vmem:[%s8507_s3 + $0x58] sm:$0xff] }
0x10eb   :  { %v6455_v62 = vpack.c.bf16 %v5356_v24, %v5354_v55  ;;  %v7741_v41 = vld [vmem:[%s8507_s3 + $0x80] sm:$0xff]  ;;  %v2097_v24 = vrot.slane %v7585_v25, %v7572_v14  ;;  %v7781_v25 = vld [vmem:[#allocation7] sm:$0xff] }
0x10ec   :  { %v1901_v49 = vadd.f32 %v1900_v5, %v1896_v9 }
0x10ed   :  { %6456 = vmatpush3.bf16.msra.mxu0 %v6455_v62 }
0x10ee   :  { %v1902_v10 = vsel %vm1127_vm11, %v1901_v49, 0.0  ;;  %6457 = vmatprep.subr.bf16.mxu0 %v7014_v0 }
0x10ef   :  { %1903 = vadd.xlane.f32.xlu1 %v1902_v10 }
0x10f1   :  { %6459 = vmatpush3.bf16.msra.mxu0 %v6458_v50 }
0x10f2   :  { %6472 = vmatprep.subr.bf16.mxu0 %v7014_v0 }
0x117c   :  { %v1904_v51 = vpop.xlane.xlu1 %1903 }
0x117d   :  { %v1905_v13 = vmul.f32 0.03125, %v1904_v51  ;;  %v7753_v51 = vld [vmem:[%s8507_s3 + $0xa0] sm:$0xff] }
0x117f   :  { %v1906_v56 = vsub.f32 %v1901_v49, %v1905_v13  ;;  %v7746_v49 = vld [vmem:[%s8507_s3 + $0x90] sm:$0xff] }
0x1180   :  { %v6473_v10 = vpack.c.bf16 %v7746_v49, %v7741_v41  ;;  %v7758_v13 = vld [vmem:[%s8507_s3 + $0xb0] sm:$0xff] }
0x1181   :  { %v1907_v58 = vmul.f32 %v1906_v56, %v1906_v56 }
0x1183   :  { %v1908_v48 = vsel %vm1127_vm11, %v1907_v58, 0.0 }
0x1184   :  { %1909 = vadd.xlane.f32.xlu0 %v1908_v48 }
0x1211   :  { %v1910_v21 = vpop.xlane.xlu0 %1909 }
0x1212   :  { %v1911_v27 = vmul.f32 0.03125, %v1910_v21  ;;  %v7787_v21 = vld [vmem:[#allocation7 + $0x8] sm:$0xff] }
0x1214   :  { %v1912_v30 = vadd.f32 1e-05, %v1911_v27 }
0x1216   :  { %6776 = vrsqrt.f32 %v1912_v30  ;;  %v7791_v30 = vld [vmem:[#allocation7 + $0x10] sm:$0xff] }
0x1220   :  { %v6777_v32 = vpop.eup %6776 }
0x1221   :  { %v1914_v54 = vmul.f32 %v6777_v32, %v1906_v56  ;;  %v6476_v56 = vpack.c.bf16 %v7758_v13, %v7753_v51  ;;  %v7796_v32 = vld [vmem:[#allocation7 + $0x18] sm:$0xff] }
0x1223   :  { %v1919_v23 = vmul.f32 %v1918_v52, %v1914_v54  ;;  %v7799_v54 = vld [vmem:[#allocation7 + $0x20] sm:$0xff] }
0x1225   :  { %v1924_v43 = vadd.f32 %v1923_v35, %v1919_v23 }
0x1227   :  { %5991 = vmatmul.mubr.msk.f32.vlgmr.msra.gmra.mrb[26].mxu0 %vm577_vm8, %v1924_v43 }
0x1228   :  { %6020 = vmatprep.mubr.msk.f32.mxu0 %vm7016_vm0, %v7015_v1  ;;  %6474 = vmatpush3.bf16.msra.mxu0 %v6473_v10 }
0x1229   :  { %6475 = vmatprep.subr.bf16.mxu0 %v7014_v0 }
0x122c   :  { %6477 = vmatpush3.bf16.msra.mxu0 %v6476_v56 }
0x12fa   :  { %v1998_v42 = vpop.f32.mrb[26].mxu0 }
0x12fb   :  { %v1999_v47 = vadd.f32 %v1998_v42, %v1928_v46  ;;  %v5992_v38 = vpop.f32.mrb[27].mxu0  ;;  %v7812_v46 = vld [vmem:[#allocation7 + $0x38] sm:$0xff] }
0x12fc   :  { %v7818_v38 = vld [vmem:[#allocation7 + $0x48] sm:$0xff] }
0x12fd   :  { %v2002_v18 = vmax.f32 %v1999_v47, 0.0 }
0x12ff   :  { %6010 = vmatmul.mubr.msk.f32.vlgmr.msra.gmra.mrb[26].mxu1 %vm399_vm5, %v2002_v18 }
0x13d2   :  { %v2076_v63 = vpop.f32.mrb[26].mxu1 }
0x13d3   :  { %v2077_v60 = vadd.f32 %v2076_v63, %v2006_v40  ;;  %v6011_v59 = vpop.f32.mrb[27].mxu1  ;;  %v7821_v63 = vld [vmem:[#allocation7 + $0x40] sm:$0xff] }
0x13d5   :  { %v2080_v61 = vadd.f32 %v2077_v60, %v1924_v43  ;;  %v7804_v43 = vld [vmem:[#allocation7 + $0x28] sm:$0xff] }
0x13d7   :  { %v2081_v3 = vsel %vm1127_vm11, %v2080_v61, 0.0 }
0x13d8   :  { %2082 = vadd.xlane.f32.xlu0 %v2081_v3 }
0x1465   :  { %v2083_v4 = vpop.xlane.xlu0 %2082 }
0x1466   :  { %v2084_v2 = vmul.f32 0.03125, %v2083_v4  ;;  %v7825_v4 = vld [vmem:[#allocation7 + $0x58] sm:$0xff] }
0x1468   :  { %v2085_v5 = vsub.f32 %v2080_v61, %v2084_v2 }
0x146a   :  { %v2086_v6 = vmul.f32 %v2085_v5, %v2085_v5 }
0x146c   :  { %v2087_v9 = vsel %vm1127_vm11, %v2086_v6, 0.0 }
0x146d   :  { %2088 = vadd.xlane.f32.xlu1 %v2087_v9  ;;  %v7829_v9 = vld [vmem:[#allocation7 + $0x68] sm:$0xff] }
0x14fa   :  { %v2089_v58 = vpop.xlane.xlu1 %2088 }
0x14fb   :  { %v2090_v48 = vmul.f32 0.03125, %v2089_v58  ;;  %v7832_v58 = vld [vmem:[#allocation7 + $0x50] sm:$0xff] }
0x14fd   :  { %v2091_v55 = vadd.f32 1e-05, %v2090_v48 }
0x14ff   :  { %6778 = vrsqrt.f32 %v2091_v55 }
0x1509   :  { %v6779_v62 = vpop.eup %6778 }
0x150a   :  { %v2093_v7 = vmul.f32 %v6779_v62, %v2085_v5 }
0x150c   :  { %v2098_v50 = vmul.f32 %v2097_v24, %v2093_v7 }
0x150e   :  { %v7767_v11 = vadd.f32 %v2102_v8, %v2098_v50  ;;  %v7837_v8 = vld [vmem:[#allocation7 + $0x60] sm:$0xff] }
0x1510   :  { %6021 = vmatmul.mubr.msk.f32.vlgmr.msra.gmra.mrb[28].mxu0 %vm577_vm8, %v7767_v11 }
0x15e3   :  { %v2197_v34 = vpop.f32.mrb[28].mxu0 }
0x15e4   :  { %v7775_v15 = vadd.f32 %v2197_v34, %v2127_v19  ;;  %v6022_v22 = vpop.f32.mrb[29].mxu0  ;;  %v7841_v34 = vld [vmem:[#allocation7 + $0x70] sm:$0xff] }
0x15e6   :  { %v2201_v16 = vsel %vm651_vm9, %v7775_v15, 0.0  ;;  %2211 = vrot.lane.b32.xlu0 %v7775_v15, %s7018_s13 }
0x15e7   :  { %v2202_v36 = vmul.f32 %v7781_v25, %v2201_v16  ;;  %v2203_v27 = vmul.f32 %v7787_v21, %v2201_v16  ;;  %v2204_v52 = vmul.f32 %v7791_v30, %v2201_v16  ;;  %v2205_v35 = vmul.f32 %v7796_v32, %v2201_v16 }
0x15e8   :  { %v2206_v23 = vmul.f32 %v7799_v54, %v2201_v16  ;;  %v2207_v29 = vmul.f32 %v7804_v43, %v2201_v16  ;;  %v2208_v28 = vmul.f32 %v7807_v39, %v2201_v16  ;;  %v2209_v42 = vmul.f32 %v7812_v46, %v2201_v16 }
0x15e9   :  { %6025 = vmatprep.mubr.msk.f32.mxu0 %vm577_vm8, %v2202_v36  ;;  %v7845_v36 = vld [vmem:[#allocation7 + $0x78] sm:$0xff] }
0x1658   :  { %v2212_v37 = vpop.permute.xlu0 %2211 }
0x1659   :  { %6023 = vmatprep.subr.msk.mxu0 %vm577_vm8, %v2212_v37 }
0x165a   :  { %6024 = vmatpush3.xpose.msk.msra.mxu0 %vm577_vm8, %v2212_v37 }
0x165b   :  { %6478 = vmatprep.subr.bf16.mxu0 %v7014_v0 }
0x165d   :  { %6026 = vmatmul.mubr.msk.f32.vlgmr.msra.gmra.mrb[30].mxu0 %vm577_vm8, %v2203_v27 }
0x165e   :  { %6028 = vmatprep.mubr.msk.f32.mxu0 %vm577_vm8, %v2204_v52 }
0x1661   :  { %6029 = vmatmul.mubr.msk.f32.gmra.mrb[32].mxu0 %vm577_vm8, %v2205_v35 }
0x1662   :  { %6031 = vmatprep.mubr.msk.f32.mxu0 %vm577_vm8, %v2206_v23 }
0x1665   :  { %6032 = vmatmul.mubr.msk.f32.gmra.mrb[34].mxu0 %vm577_vm8, %v2207_v29 }
0x1666   :  { %6034 = vmatprep.mubr.msk.f32.mxu0 %vm577_vm8, %v2208_v28 }
0x1669   :  { %6035 = vmatmul.mubr.msk.f32.gmra.mrb[36].mxu0 %vm577_vm8, %v2209_v42 }
0x166a   :  { %6059 = vmatprep.mubr.msk.f32.mxu0 %vm7016_vm0, %v7015_v1 }
0x1730   :  { %v6027_v47 = vpop.f32.mrb[30].mxu0 }
0x1731   :  { %v2311_v18 = vadd.f32 %v7818_v38, %v6027_v47  ;;  %v2305_v40 = vpop.f32.mrb[31].mxu0 }
0x1732   :  { %v2306_v60 = vadd.f32 %v7821_v63, %v2305_v40 }
0x1733   :  { %v2347_v59 = vsel %vm795_vm10, %v2311_v18, -inf }
0x1734   :  { %2348 = vmax.xlane.f32.xlu1 %v2347_v59  ;;  %v6030_v61 = vpop.f32.mrb[32].mxu0  ;;  %v2344_v5 = vsel %vm795_vm10, %v2306_v60, -inf }
0x1735   :  { %v2315_v3 = vpop.f32.mrb[33].mxu0  ;;  %v2321_v2 = vadd.f32 %v7825_v4, %v6030_v61 }
0x1736   :  { %v2316_v48 = vadd.f32 %v7832_v58, %v2315_v3 }
0x1737   :  { %v2353_v24 = vsel %vm795_vm10, %v2321_v2, -inf }
0x1738   :  { %v6033_v6 = vpop.f32.mrb[34].mxu0  ;;  %2345 = vmax.xlane.f32.xlu1 %v2344_v5  ;;  %v2350_v19 = vsel %vm795_vm10, %v2316_v48, -inf }
0x1739   :  { %v2331_v10 = vadd.f32 %v7829_v9, %v6033_v6  ;;  %v2325_v56 = vpop.f32.mrb[35].mxu0 }
0x173a   :  { %v2326_v50 = vadd.f32 %v7837_v8, %v2325_v56 }
0x173b   :  { %v2359_v55 = vsel %vm795_vm10, %v2331_v10, -inf }
0x173c   :  { %2360 = vmax.xlane.f32.xlu0 %v2359_v55  ;;  %v6036_v62 = vpop.f32.mrb[36].mxu0  ;;  %2354 = vmax.xlane.f32.xlu1 %v2353_v24  ;;  %v2356_v16 = vsel %vm795_vm10, %v2326_v50, -inf }
0x173d   :  { %v2335_v7 = vpop.f32.mrb[37].mxu0  ;;  %v2341_v37 = vadd.f32 %v7845_v36, %v6036_v62 }
0x173e   :  { %v2336_v22 = vadd.f32 %v7841_v34, %v2335_v7 }
0x173f   :  { %v2365_v52 = vsel %vm795_vm10, %v2341_v37, -inf }
0x1740   :  { %2351 = vmax.xlane.f32.xlu1 %v2350_v19  ;;  %v2362_v27 = vsel %vm795_vm10, %v2336_v22, -inf }
0x1744   :  { %2357 = vmax.xlane.f32.xlu1 %v2356_v16 }
0x1748   :  { %2363 = vmax.xlane.f32.xlu1 %v2362_v27 }
0x174c   :  { %2366 = vmax.xlane.f32.xlu1 %v2365_v52 }
0x17c1   :  { %v2349_v35 = vpop.xlane.xlu1 %2348 }
0x17c2   :  { %v2369_v23 = vsub.f32 %v2311_v18, %v2349_v35 }
0x17c4   :  { %v2378_v29 = vmul.f32 1.442695, %v2369_v23 }
0x17c5   :  { %v2346_v28 = vpop.xlane.xlu1 %2345 }
0x17c6   :  { %6780 = vpow2.f32 %v2378_v29  ;;  %v2368_v42 = vsub.f32 %v2306_v60, %v2346_v28 }
0x17c8   :  { %v2376_v47 = vmul.f32 1.442695, %v2368_v42 }
0x17c9   :  { %v2355_v40 = vpop.xlane.xlu1 %2354  ;;  %v2361_v5 = vpop.xlane.xlu0 %2360 }
0x17ca   :  { %6782 = vpow2.f32 %v2376_v47  ;;  %v2371_v59 = vsub.f32 %v2321_v2, %v2355_v40  ;;  %v2373_v24 = vsub.f32 %v2331_v10, %v2361_v5 }
0x17cc   :  { %v2382_v61 = vmul.f32 1.442695, %v2371_v59  ;;  %v2386_v16 = vmul.f32 1.442695, %v2373_v24 }
0x17cd   :  { %v2352_v3 = vpop.xlane.xlu1 %2351 }
0x17ce   :  { %v2370_v6 = vsub.f32 %v2316_v48, %v2352_v3  ;;  %6784 = vpow2.f32 %v2382_v61 }
0x17d0   :  { %v7850_v56 = vpop.eup %6780  ;;  %v2380_v55 = vmul.f32 1.442695, %v2370_v6  ;;  %v6648_v6 = vpack.i.bf16 %v7746_v49, %v7741_v41 }
0x17d1   :  { %v2358_v62 = vpop.xlane.xlu1 %2357  ;;  %v2395_v18 = vsel %vm795_vm10, %v7850_v56, 0.0 }
0x17d2   :  { %6786 = vpow2.f32 %v2380_v55  ;;  %v2372_v7 = vsub.f32 %v2326_v50, %v2358_v62  ;;  %2396 = vadd.xlane.f32.xlu1 %v2395_v18  ;;  %v6653_v55 = vpack.i.bf16 %v7758_v13, %v7753_v51 }
0x17d4   :  { %v6783_v60 = vpop.eup %6782  ;;  %v2384_v19 = vmul.f32 1.442695, %v2372_v7 }
0x17d5   :  { %v2364_v2 = vpop.xlane.xlu1 %2363  ;;  %v2392_v27 = vsel %vm795_vm10, %v6783_v60, 0.0 }
0x17d6   :  { %6788 = vpow2.f32 %v2384_v19  ;;  %v2374_v48 = vsub.f32 %v2336_v22, %v2364_v2  ;;  %2393 = vadd.xlane.f32.xlu1 %v2392_v27 }
0x17d7   :  { %6790 = vpow2.f32 %v2386_v16 }
0x17d8   :  { %v2388_v52 = vmul.f32 1.442695, %v2374_v48  ;;  %v6785_v35 = vpop.eup %6784 }
0x17d9   :  { %v2367_v10 = vpop.xlane.xlu1 %2366  ;;  %v2401_v29 = vsel %vm795_vm10, %v6785_v35, 0.0 }
0x17da   :  { %6792 = vpow2.f32 %v2388_v52  ;;  %v2375_v23 = vsub.f32 %v2341_v37, %v2367_v10  ;;  %2402 = vadd.xlane.f32.xlu1 %v2401_v29 }
0x17dc   :  { %v6787_v50 = vpop.eup %6786  ;;  %v2390_v28 = vmul.f32 1.442695, %v2375_v23 }
0x17dd   :  { %v2398_v42 = vsel %vm795_vm10, %v6787_v50, 0.0 }
0x17de   :  { %6794 = vpow2.f32 %v2390_v28  ;;  %2399 = vadd.xlane.f32.xlu1 %v2398_v42 }
0x17e0   :  { %v6789_v47 = vpop.eup %6788 }
0x17e1   :  { %v2404_v40 = vsel %vm795_vm10, %v6789_v47, 0.0  ;;  %v6791_v22 = vpop.eup %6790 }
0x17e2   :  { %2405 = vadd.xlane.f32.xlu1 %v2404_v40  ;;  %v2407_v3 = vsel %vm795_vm10, %v6791_v22, 0.0 }
0x17e4   :  { %v6793_v59 = vpop.eup %6792 }
0x17e5   :  { %v2410_v61 = vsel %vm795_vm10, %v6793_v59, 0.0 }
0x17e6   :  { %2411 = vadd.xlane.f32.xlu0 %v2410_v61  ;;  %2408 = vadd.xlane.f32.xlu1 %v2407_v3 }
0x17e8   :  { %v6795_v37 = vpop.eup %6794 }
0x17e9   :  { %v2413_v5 = vsel %vm795_vm10, %v6795_v37, 0.0 }
0x17ea   :  { %2414 = vadd.xlane.f32.xlu1 %v2413_v5 }
0x17fb   :  { %6649 = vrot.lane.b32.xlu1 %v6648_v6, %s7020_s15 }
0x17fc   :  { %2432 = vrot.lane.b32.xlu0 %v7775_v15, %s7019_s14 }
0x17ff   :  { %6654 = vrot.lane.b32.xlu1 %v6653_v55, %s7020_s15 }
0x185f   :  { %v2397_v24 = vpop.xlane.xlu1 %2396 }
0x1863   :  { %v2394_v62 = vpop.xlane.xlu1 %2393 }
0x1864   :  { %6796 = vrcp.f32 %v2394_v62 }
0x1865   :  { %6798 = vrcp.f32 %v2397_v24 }
0x1867   :  { %v2403_v18 = vpop.xlane.xlu1 %2402 }
0x186b   :  { %v2400_v7 = vpop.xlane.xlu1 %2399 }
0x186c   :  { %6800 = vrcp.f32 %v2400_v7 }
0x186d   :  { %6802 = vrcp.f32 %v2403_v18 }
0x186e   :  { %v6797_v19 = vpop.eup %6796 }
0x186f   :  { %v2417_v15 = vmul.f32 %v6797_v19, %v6783_v60  ;;  %v2406_v16 = vpop.xlane.xlu1 %2405  ;;  %v6799_v51 = vpop.eup %6798 }
0x1870   :  { %6804 = vrcp.f32 %v2406_v16  ;;  %v2419_v27 = vmul.f32 %v6799_v51, %v7850_v56 }
0x1871   :  { %6039 = vmatprep.mubr.msk.f32.mxu1 %vm795_vm10, %v2417_v15 }
0x1873   :  { %v2412_v41 = vpop.xlane.xlu0 %2411  ;;  %v2409_v49 = vpop.xlane.xlu1 %2408 }
0x1874   :  { %6806 = vrcp.f32 %v2412_v41 }
0x1875   :  { %6808 = vrcp.f32 %v2409_v49 }
0x1876   :  { %v6801_v13 = vpop.eup %6800 }
0x1877   :  { %v2433_v2 = vpop.permute.xlu0 %2432  ;;  %v2415_v48 = vpop.xlane.xlu1 %2414  ;;  %v2421_v60 = vmul.f32 %v6801_v13, %v6787_v50 }
0x1878   :  { %6037 = vmatprep.subr.msk.mxu1 %vm651_vm9, %v2433_v2  ;;  %v6803_v52 = vpop.eup %6802  ;;  %6810 = vrcp.f32 %v2415_v48 }
0x1879   :  { %6038 = vmatpush3.msk.msra.mxu1 %vm651_vm9, %v2433_v2  ;;  %v2423_v23 = vmul.f32 %v6803_v52, %v6785_v35 }
0x187a   :  { %6040 = vmatmul.mubr.msk.f32.vlgmr.msra.gmra.mrb[28].mxu1 %vm795_vm10, %v2419_v27  ;;  %6484 = vmatprep.subr.bf16.mxu1 %v7014_v0  ;;  %v6805_v10 = vpop.eup %6804 }
0x187b   :  { %6042 = vmatprep.mubr.msk.f32.mxu1 %vm795_vm10, %v2421_v60  ;;  %v2425_v29 = vmul.f32 %v6805_v10, %v6789_v47  ;;  %v6650_v35 = vpop.permute.xlu1 %6649 }
0x187c   :  { %v6652_v47 = vunpack.i.h.bf16 %v6650_v35  ;;  %v6651_v3 = vunpack.i.l.bf16 %v6650_v35 }
0x187e   :  { %v6807_v28 = vpop.eup %6806  ;;  %6043 = vmatmul.mubr.msk.f32.gmra.mrb[30].mxu1 %vm795_vm10, %v2423_v23  ;;  %v6479_v5 = vpack.c.bf16 %v6652_v47, %v6651_v3 }
0x187f   :  { %v6809_v56 = vpop.eup %6808  ;;  %6045 = vmatprep.mubr.msk.f32.mxu1 %vm795_vm10, %v2425_v29  ;;  %v2429_v40 = vmul.f32 %v6807_v28, %v6793_v59 }
0x1880   :  { %v2427_v42 = vmul.f32 %v6809_v56, %v6791_v22  ;;  %6480 = vmatpush3.bf16.msra.mxu0 %v6479_v5  ;;  %v6655_v22 = vpop.permute.xlu1 %6654 }
0x1881   :  { %6481 = vmatprep.subr.bf16.mxu0 %v7014_v0  ;;  %v6657_v59 = vunpack.i.h.bf16 %v6655_v22  ;;  %v6656_v6 = vunpack.i.l.bf16 %v6655_v22 }
0x1882   :  { %6046 = vmatmul.mubr.msk.f32.gmra.mrb[32].mxu1 %vm795_vm10, %v2427_v42  ;;  %v6811_v50 = vpop.eup %6810 }
0x1883   :  { %6048 = vmatprep.mubr.msk.f32.mxu1 %vm795_vm10, %v2429_v40  ;;  %v2431_v61 = vmul.f32 %v6811_v50, %v6795_v37  ;;  %v6482_v55 = vpack.c.bf16 %v6657_v59, %v6656_v6  ;;  %v2673_v40 = vrot.slane %v7771_v12, %v7472_v31 }
0x1885   :  { %6483 = vmatpush3.bf16.msra.mxu0 %v6482_v55 }
0x1886   :  { %6049 = vmatmul.mubr.msk.f32.gmra.mrb[34].mxu1 %vm795_vm10, %v2431_v61  ;;  %6490 = vmatprep.subr.bf16.mxu0 %v7014_v0 }
0x1887   :  { %6070 = vmatprep.mubr.msk.f32.mxu1 %vm7016_vm0, %v7015_v1 }
0x194d   :  { %v6041_v37 = vpop.f32.mrb[28].mxu1 }
0x194e   :  { %v2566_v24 = vmul.f32 %v7787_v21, %v6041_v37  ;;  %v2526_v62 = vpop.f32.mrb[29].mxu1  ;;  %v5392_v37 = vld [vmem:[%s8507_s3 + $0x88] sm:$0xff] }
0x194f   :  { %v2565_v18 = vmul.f32 %v7781_v25, %v2526_v62  ;;  %v5396_v62 = vld [vmem:[%s8507_s3 + $0xa8] sm:$0xff] }
0x1951   :  { %v2573_v7 = vadd.f32 %v2566_v24, %v2565_v18  ;;  %v6044_v19 = vpop.f32.mrb[30].mxu1  ;;  %v5398_v18 = vld [vmem:[%s8507_s3 + $0xb8] sm:$0xff] }
0x1952   :  { %v2536_v15 = vpop.f32.mrb[31].mxu1  ;;  %v2568_v41 = vmul.f32 %v7796_v32, %v6044_v19  ;;  %v5399_v19 = vld [vmem:[%s8508_s4 + $0x80] sm:$0xff] }
0x1953   :  { %v2567_v16 = vmul.f32 %v7791_v30, %v2536_v15  ;;  %v5400_v15 = vld [vmem:[%s8508_s4 + $0x88] sm:$0xff] }
0x1955   :  { %v2574_v49 = vadd.f32 %v2573_v7, %v2567_v16  ;;  %v6047_v51 = vpop.f32.mrb[32].mxu1  ;;  %v6488_v7 = vpack.c.bf16 %v5398_v18, %v5396_v62  ;;  %v5401_v16 = vld [vmem:[%s8508_s4 + $0x90] sm:$0xff] }
0x1956   :  { %v2546_v13 = vpop.f32.mrb[33].mxu1  ;;  %v2570_v48 = vmul.f32 %v7804_v43, %v6047_v51 }
0x1957   :  { %v2569_v2 = vmul.f32 %v7799_v54, %v2546_v13  ;;  %v2575_v27 = vadd.f32 %v2574_v49, %v2568_v41  ;;  %v6491_v41 = vpack.c.bf16 %v5400_v15, %v5399_v19  ;;  %v5402_v49 = vld [vmem:[%s8508_s4 + $0x98] sm:$0xff]  ;;  %v5403_v13 = vld [vmem:[%s8508_s4 + $0xa0] sm:$0xff] }
0x1958   :  { %v6494_v51 = vpack.c.bf16 %v5402_v49, %v5401_v16  ;;  %v7959_v16 = vld [vmem:[%s8507_s3 + $0xc0] sm:$0xff] }
0x1959   :  { %v2576_v52 = vadd.f32 %v2575_v27, %v2569_v2  ;;  %v6050_v60 = vpop.f32.mrb[34].mxu1  ;;  %v5404_v2 = vld [vmem:[%s8508_s4 + $0xa8] sm:$0xff] }
0x195a   :  { %v2556_v10 = vpop.f32.mrb[35].mxu1  ;;  %v2572_v28 = vmul.f32 %v7812_v46, %v6050_v60  ;;  %v6497_v27 = vpack.c.bf16 %v5404_v2, %v5403_v13  ;;  %v7976_v13 = vld [vmem:[%s8507_s3 + $0xf0] sm:$0xff] }
0x195b   :  { %v2571_v23 = vmul.f32 %v7807_v39, %v2556_v10  ;;  %v2577_v29 = vadd.f32 %v2576_v52, %v2570_v48  ;;  %v2691_v10 = vrot.slane %v7771_v12, %v7515_v17 }
0x195d   :  { %v2578_v56 = vadd.f32 %v2577_v29, %v2571_v23  ;;  %v2696_v29 = vrot.slane %v7771_v12, %v7518_v33 }
0x195f   :  { %v2579_v42 = vadd.f32 %v2578_v56, %v2572_v28 }
0x1961   :  { %6060 = vmatmul.mubr.msk.f32.vlgmr.msra.gmra.mrb[38].mxu0 %vm577_vm8, %v2579_v42 }
0x1962   :  { %6089 = vmatprep.mubr.msk.f32.mxu0 %vm7016_vm0, %v7015_v1  ;;  %6492 = vmatpush3.bf16.msra.mxu0 %v6491_v41  ;;  %v7964_v41 = vld [vmem:[%s8507_s3 + $0xd0] sm:$0xff] }
0x1963   :  { %6493 = vmatprep.subr.bf16.mxu0 %v7014_v0  ;;  %v6503_v49 = vpack.c.bf16 %v7964_v41, %v7959_v16 }
0x1966   :  { %6495 = vmatpush3.bf16.msra.mxu0 %v6494_v51  ;;  %v7971_v51 = vld [vmem:[%s8507_s3 + $0xe0] sm:$0xff] }
0x1967   :  { %6496 = vmatprep.subr.bf16.mxu0 %v7014_v0  ;;  %v6506_v2 = vpack.c.bf16 %v7976_v13, %v7971_v51 }
0x196a   :  { %6498 = vmatpush3.bf16.msra.mxu0 %v6497_v27 }
0x196b   :  { %6499 = vmatprep.subr.bf16.mxu0 %v7014_v0 }
0x1a34   :  { %v2665_v50 = vpop.f32.mrb[38].mxu0 }
0x1a35   :  { %v2669_v61 = vadd.f32 %v2665_v50, %v7767_v11  ;;  %v6061_v35 = vpop.f32.mrb[39].mxu0  ;;  %v5394_v11 = vld [vmem:[%s8507_s3 + $0x98] sm:$0xff] }
0x1a36   :  { %v6485_v24 = vpack.c.bf16 %v5394_v11, %v5392_v37  ;;  %v5406_v50 = vld [vmem:[%s8508_s4 + $0xb8] sm:$0xff]  ;;  %v2701_v35 = vrot.slane %v7771_v12, %v7534_v20 }
0x1a37   :  { %v2674_v47 = vadd.f32 %v2673_v40, %v2669_v61  ;;  %v5405_v40 = vld [vmem:[%s8508_s4 + $0xb0] sm:$0xff] }
0x1a38   :  { %6486 = vmatpush3.bf16.msra.mxu1 %v6485_v24  ;;  %v6500_v61 = vpack.c.bf16 %v5406_v50, %v5405_v40 }
0x1a39   :  { %v2675_v3 = vsel %vm1127_vm11, %v2674_v47, 0.0  ;;  %6487 = vmatprep.subr.bf16.mxu1 %v7014_v0 }
0x1a3a   :  { %2676 = vadd.xlane.f32.xlu0 %v2675_v3  ;;  %6501 = vmatpush3.bf16.msra.mxu0 %v6500_v61 }
0x1a3c   :  { %6489 = vmatpush3.bf16.msra.mxu1 %v6488_v7 }
0x1a3d   :  { %6502 = vmatprep.subr.bf16.mxu1 %v7014_v0 }
0x1ac7   :  { %v2677_v5 = vpop.xlane.xlu0 %2676 }
0x1ac8   :  { %v2678_v22 = vmul.f32 0.03125, %v2677_v5 }
0x1aca   :  { %v2679_v59 = vsub.f32 %v2674_v47, %v2678_v22 }
0x1acc   :  { %v2680_v6 = vmul.f32 %v2679_v59, %v2679_v59 }
0x1ace   :  { %v2681_v55 = vsel %vm1127_vm11, %v2680_v6, 0.0 }
0x1acf   :  { %2682 = vadd.xlane.f32.xlu1 %v2681_v55 }
0x1b5c   :  { %v2683_v48 = vpop.xlane.xlu1 %2682 }
0x1b5d   :  { %v2684_v52 = vmul.f32 0.03125, %v2683_v48 }
0x1b5f   :  { %v2685_v60 = vadd.f32 1e-05, %v2684_v52 }
0x1b61   :  { %6812 = vrsqrt.f32 %v2685_v60  ;;  %v2870_v60 = vrot.slane %v7771_v12, %v7572_v14 }
0x1b6b   :  { %v6813_v23 = vpop.eup %6812 }
0x1b6c   :  { %v2687_v28 = vmul.f32 %v6813_v23, %v2679_v59  ;;  %v2779_v59 = vrot.slane %v7771_v12, %v7540_v26 }
0x1b6e   :  { %v2692_v56 = vmul.f32 %v2691_v10, %v2687_v28 }
0x1b70   :  { %v2697_v42 = vadd.f32 %v2696_v29, %v2692_v56  ;;  %v2875_v29 = vrot.slane %v7771_v12, %v7575_v57 }
0x1b72   :  { %6071 = vmatmul.mubr.msk.f32.vlgmr.msra.gmra.mrb[36].mxu1 %vm577_vm8, %v2697_v42 }
0x1b73   :  { %6100 = vmatprep.mubr.msk.f32.mxu1 %vm7016_vm0, %v7015_v1  ;;  %6504 = vmatpush3.bf16.msra.mxu1 %v6503_v49 }
0x1b74   :  { %6505 = vmatprep.subr.bf16.mxu1 %v7014_v0 }
0x1b77   :  { %6507 = vmatpush3.bf16.msra.mxu1 %v6506_v2 }
0x1c45   :  { %v2771_v47 = vpop.f32.mrb[36].mxu1 }
0x1c46   :  { %v2772_v3 = vadd.f32 %v2771_v47, %v2701_v35  ;;  %v6072_v5 = vpop.f32.mrb[37].mxu1 }
0x1c48   :  { %v2775_v22 = vmax.f32 %v2772_v3, 0.0 }
0x1c4a   :  { %6090 = vmatmul.mubr.msk.f32.vlgmr.msra.gmra.mrb[40].mxu0 %vm399_vm5, %v2775_v22 }
0x1d1d   :  { %v2849_v6 = vpop.f32.mrb[40].mxu0 }
0x1d1e   :  { %v2850_v55 = vadd.f32 %v2849_v6, %v2779_v59  ;;  %v6091_v37 = vpop.f32.mrb[41].mxu0 }
0x1d20   :  { %v2853_v11 = vadd.f32 %v2850_v55, %v2697_v42  ;;  %v7989_v42 = vld [vmem:[#allocation4 + $0x18] sm:$0xff] }
0x1d21   :  { %v2900_v40 = vrot.slane %v7989_v42, %v7348_v53 }
0x1d22   :  { %v2854_v24 = vsel %vm1127_vm11, %v2853_v11, 0.0 }
0x1d23   :  { %2855 = vadd.xlane.f32.xlu0 %v2854_v24 }
0x1db0   :  { %v2856_v62 = vpop.xlane.xlu0 %2855 }
0x1db1   :  { %v2857_v18 = vmul.f32 0.03125, %v2856_v62 }
0x1db3   :  { %v2858_v7 = vsub.f32 %v2853_v11, %v2857_v18 }
0x1db5   :  { %v2859_v19 = vmul.f32 %v2858_v7, %v2858_v7 }
0x1db7   :  { %v2860_v15 = vsel %vm1127_vm11, %v2859_v19, 0.0 }
0x1db8   :  { %2861 = vadd.xlane.f32.xlu0 %v2860_v15 }
0x1e45   :  { %v2862_v27 = vpop.xlane.xlu0 %2861 }
0x1e46   :  { %v2863_v48 = vmul.f32 0.03125, %v2862_v27 }
0x1e48   :  { %v2864_v52 = vadd.f32 1e-05, %v2863_v48 }
0x1e4a   :  { %6814 = vrsqrt.f32 %v2864_v52 }
0x1e54   :  { %v6815_v10 = vpop.eup %6814 }
0x1e55   :  { %v2866_v23 = vmul.f32 %v6815_v10, %v2858_v7 }
0x1e57   :  { %v2871_v28 = vmul.f32 %v2870_v60, %v2866_v23 }
0x1e59   :  { %v7985_v56 = vadd.f32 %v2875_v29, %v2871_v28 }
0x1e5b   :  { %6101 = vmatmul.mubr.msk.f32.vlgmr.msra.gmra.mrb[38].mxu1 %vm577_vm8, %v7985_v56 }
0x1f2e   :  { %v2970_v50 = vpop.f32.mrb[38].mxu1 }
0x1f2f   :  { %v7993_v61 = vadd.f32 %v2970_v50, %v2900_v40  ;;  %v6102_v35 = vpop.f32.mrb[39].mxu1 }
0x1f31   :  { %v2974_v47 = vsel %vm651_vm9, %v7993_v61, 0.0  ;;  %2984 = vrot.lane.b32.xlu1 %v7993_v61, %s7018_s13 }
0x1f32   :  { %v2975_v12 = vmul.f32 %v7781_v25, %v2974_v47  ;;  %v2976_v5 = vmul.f32 %v7787_v21, %v2974_v47  ;;  %v2977_v22 = vmul.f32 %v7791_v30, %v2974_v47  ;;  %v2978_v59 = vmul.f32 %v7796_v32, %v2974_v47 }
0x1f33   :  { %v2979_v6 = vmul.f32 %v7799_v54, %v2974_v47  ;;  %v2980_v55 = vmul.f32 %v7804_v43, %v2974_v47  ;;  %v2981_v37 = vmul.f32 %v7807_v39, %v2974_v47  ;;  %v2982_v11 = vmul.f32 %v7812_v46, %v2974_v47 }
0x1f34   :  { %6105 = vmatprep.mubr.msk.f32.mxu1 %vm577_vm8, %v2975_v12 }
0x1fa3   :  { %v2985_v3 = vpop.permute.xlu1 %2984 }
0x1fa4   :  { %6103 = vmatprep.subr.msk.mxu1 %vm577_vm8, %v2985_v3 }
0x1fa5   :  { %6104 = vmatpush3.xpose.msk.msra.mxu1 %vm577_vm8, %v2985_v3 }
0x1fa6   :  { %6508 = vmatprep.subr.bf16.mxu1 %v7014_v0 }
0x1fa8   :  { %6106 = vmatmul.mubr.msk.f32.vlgmr.msra.gmra.mrb[40].mxu1 %vm577_vm8, %v2976_v5 }
0x1fa9   :  { %6108 = vmatprep.mubr.msk.f32.mxu1 %vm577_vm8, %v2977_v22 }
0x1fac   :  { %6109 = vmatmul.mubr.msk.f32.gmra.mrb[42].mxu1 %vm577_vm8, %v2978_v59 }
0x1fad   :  { %6111 = vmatprep.mubr.msk.f32.mxu1 %vm577_vm8, %v2979_v6 }
0x1fb0   :  { %6112 = vmatmul.mubr.msk.f32.gmra.mrb[44].mxu1 %vm577_vm8, %v2980_v55 }
0x1fb1   :  { %6114 = vmatprep.mubr.msk.f32.mxu1 %vm577_vm8, %v2981_v37 }
0x1fb4   :  { %6115 = vmatmul.mubr.msk.f32.gmra.mrb[46].mxu1 %vm577_vm8, %v2982_v11 }
0x1fb5   :  { %6139 = vmatprep.mubr.msk.f32.mxu1 %vm7016_vm0, %v7015_v1 }
0x207b   :  { %v6107_v24 = vpop.f32.mrb[40].mxu1 }
0x207c   :  { %v3084_v62 = vadd.f32 %v7818_v38, %v6107_v24  ;;  %v3078_v18 = vpop.f32.mrb[41].mxu1 }
0x207d   :  { %v3079_v7 = vadd.f32 %v7821_v63, %v3078_v18 }
0x207e   :  { %v3120_v19 = vsel %vm795_vm10, %v3084_v62, -inf }
0x207f   :  { %3121 = vmax.xlane.f32.xlu0 %v3120_v19  ;;  %v6110_v15 = vpop.f32.mrb[42].mxu1  ;;  %v3117_v27 = vsel %vm795_vm10, %v3079_v7, -inf }
0x2080   :  { %v3088_v49 = vpop.f32.mrb[43].mxu1  ;;  %v3094_v2 = vadd.f32 %v7825_v4, %v6110_v15 }
0x2081   :  { %v3089_v10 = vadd.f32 %v7832_v58, %v3088_v49 }
0x2082   :  { %v3126_v38 = vsel %vm795_vm10, %v3094_v2, -inf }
0x2083   :  { %v6113_v48 = vpop.f32.mrb[44].mxu1  ;;  %3118 = vmax.xlane.f32.xlu0 %v3117_v27  ;;  %v3123_v4 = vsel %vm795_vm10, %v3089_v10, -inf }
0x2084   :  { %v3098_v52 = vpop.f32.mrb[45].mxu1  ;;  %v3104_v28 = vadd.f32 %v7829_v9, %v6113_v48 }
0x2085   :  { %v3099_v60 = vadd.f32 %v7837_v8, %v3098_v52 }
0x2086   :  { %v3132_v50 = vsel %vm795_vm10, %v3104_v28, -inf }
0x2087   :  { %v6116_v23 = vpop.f32.mrb[46].mxu1  ;;  %3127 = vmax.xlane.f32.xlu0 %v3126_v38  ;;  %v3129_v63 = vsel %vm795_vm10, %v3099_v60, -inf }
0x2088   :  { %v3108_v29 = vpop.f32.mrb[47].mxu1  ;;  %3130 = vmax.xlane.f32.xlu1 %v3129_v63  ;;  %v3114_v58 = vadd.f32 %v7845_v36, %v6116_v23 }
0x2089   :  { %v3109_v40 = vadd.f32 %v7841_v34, %v3108_v29 }
0x208a   :  { %v3138_v35 = vsel %vm795_vm10, %v3114_v58, -inf }
0x208b   :  { %3124 = vmax.xlane.f32.xlu0 %v3123_v4  ;;  %v3135_v8 = vsel %vm795_vm10, %v3109_v40, -inf }
0x208f   :  { %3133 = vmax.xlane.f32.xlu0 %v3132_v50 }
0x2093   :  { %3136 = vmax.xlane.f32.xlu0 %v3135_v8 }
0x2097   :  { %3139 = vmax.xlane.f32.xlu0 %v3138_v35 }
0x210c   :  { %v3122_v47 = vpop.xlane.xlu0 %3121 }
0x210d   :  { %v3142_v12 = vsub.f32 %v3084_v62, %v3122_v47 }
0x210f   :  { %v3151_v3 = vmul.f32 1.442695, %v3142_v12 }
0x2110   :  { %v3119_v9 = vpop.xlane.xlu0 %3118 }
0x2111   :  { %6816 = vpow2.f32 %v3151_v3  ;;  %v3141_v5 = vsub.f32 %v3079_v7, %v3119_v9  ;;  %v6658_v9 = vpack.i.bf16 %v7964_v41, %v7959_v16 }
0x2113   :  { %v3149_v22 = vmul.f32 1.442695, %v3141_v5  ;;  %v6663_v5 = vpack.i.bf16 %v7976_v13, %v7971_v51 }
0x2114   :  { %v3128_v59 = vpop.xlane.xlu0 %3127 }
0x2115   :  { %6818 = vpow2.f32 %v3149_v22  ;;  %v3144_v34 = vsub.f32 %v3094_v2, %v3128_v59  ;;  %v3131_v6 = vpop.xlane.xlu1 %3130 }
0x2116   :  { %v3145_v37 = vsub.f32 %v3099_v60, %v3131_v6 }
0x2117   :  { %v3155_v55 = vmul.f32 1.442695, %v3144_v34 }
0x2118   :  { %v3125_v36 = vpop.xlane.xlu0 %3124  ;;  %v3157_v18 = vmul.f32 1.442695, %v3145_v37 }
0x2119   :  { %6820 = vpow2.f32 %v3155_v55  ;;  %v3143_v11 = vsub.f32 %v3089_v10, %v3125_v36 }
0x211b   :  { %v8036_v24 = vpop.eup %6816  ;;  %v3153_v19 = vmul.f32 1.442695, %v3143_v11 }
0x211c   :  { %v3134_v15 = vpop.xlane.xlu0 %3133  ;;  %v3168_v62 = vsel %vm795_vm10, %v8036_v24, 0.0 }
0x211d   :  { %6822 = vpow2.f32 %v3153_v19  ;;  %v3146_v7 = vsub.f32 %v3104_v28, %v3134_v15  ;;  %3169 = vadd.xlane.f32.xlu0 %v3168_v62 }
0x211e   :  { %6824 = vpow2.f32 %v3157_v18 }
0x211f   :  { %v6819_v49 = vpop.eup %6818  ;;  %v3159_v2 = vmul.f32 1.442695, %v3146_v7 }
0x2120   :  { %v3137_v27 = vpop.xlane.xlu0 %3136  ;;  %v3165_v48 = vsel %vm795_vm10, %v6819_v49, 0.0 }
0x2121   :  { %v3147_v52 = vsub.f32 %v3109_v40, %v3137_v27  ;;  %3166 = vadd.xlane.f32.xlu0 %v3165_v48  ;;  %6826 = vpow2.f32 %v3159_v2 }
0x2123   :  { %v6821_v60 = vpop.eup %6820  ;;  %v3161_v10 = vmul.f32 1.442695, %v3147_v52 }
0x2124   :  { %v3140_v38 = vpop.xlane.xlu0 %3139  ;;  %v3174_v23 = vsel %vm795_vm10, %v6821_v60, 0.0 }
0x2125   :  { %6828 = vpow2.f32 %v3161_v10  ;;  %v3148_v63 = vsub.f32 %v3114_v58, %v3140_v38  ;;  %3175 = vadd.xlane.f32.xlu0 %v3174_v23 }
0x2127   :  { %v6823_v29 = vpop.eup %6822  ;;  %v3163_v28 = vmul.f32 1.442695, %v3148_v63 }
0x2128   :  { %v3171_v4 = vsel %vm795_vm10, %v6823_v29, 0.0  ;;  %v6825_v50 = vpop.eup %6824 }
0x2129   :  { %6830 = vpow2.f32 %v3163_v28  ;;  %3172 = vadd.xlane.f32.xlu0 %v3171_v4  ;;  %v3177_v8 = vsel %vm795_vm10, %v6825_v50, 0.0 }
0x212b   :  { %v6827_v40 = vpop.eup %6826 }
0x212c   :  { %v3180_v47 = vsel %vm795_vm10, %v6827_v40, 0.0 }
0x212d   :  { %3178 = vadd.xlane.f32.xlu0 %v3177_v8 }
0x212f   :  { %v6829_v35 = vpop.eup %6828 }
0x2130   :  { %v3183_v12 = vsel %vm795_vm10, %v6829_v35, 0.0 }
0x2131   :  { %3181 = vadd.xlane.f32.xlu0 %v3180_v47  ;;  %3184 = vadd.xlane.f32.xlu1 %v3183_v12 }
0x2133   :  { %v6831_v58 = vpop.eup %6830 }
0x2134   :  { %v3186_v3 = vsel %vm795_vm10, %v6831_v58, 0.0 }
0x2135   :  { %3187 = vadd.xlane.f32.xlu0 %v3186_v3 }
0x2142   :  { %3205 = vrot.lane.b32.xlu1 %v7993_v61, %s7019_s14 }
0x2146   :  { %6664 = vrot.lane.b32.xlu1 %v6663_v5, %s7020_s15 }
0x214b   :  { %6659 = vrot.lane.b32.xlu0 %v6658_v9, %s7020_s15 }
0x21aa   :  { %v3170_v22 = vpop.xlane.xlu0 %3169 }
0x21ae   :  { %v3167_v59 = vpop.xlane.xlu0 %3166 }
0x21af   :  { %6832 = vrcp.f32 %v3167_v59 }
0x21b0   :  { %6834 = vrcp.f32 %v3170_v22 }
0x21b2   :  { %v3176_v34 = vpop.xlane.xlu0 %3175 }
0x21b6   :  { %v3173_v6 = vpop.xlane.xlu0 %3172 }
0x21b7   :  { %6836 = vrcp.f32 %v3173_v6 }
0x21b8   :  { %6838 = vrcp.f32 %v3176_v34 }
0x21b9   :  { %v6833_v55 = vpop.eup %6832 }
0x21ba   :  { %v3179_v61 = vpop.xlane.xlu0 %3178  ;;  %v3190_v37 = vmul.f32 %v6833_v55, %v6819_v49  ;;  %v6835_v51 = vpop.eup %6834 }
0x21bb   :  { %6840 = vrcp.f32 %v3179_v61  ;;  %v3192_v18 = vmul.f32 %v6835_v51, %v8036_v24 }
0x21bc   :  { %6119 = vmatprep.mubr.msk.f32.mxu0 %vm795_vm10, %v3190_v37 }
0x21be   :  { %v3185_v16 = vpop.xlane.xlu1 %3184  ;;  %v3182_v41 = vpop.xlane.xlu0 %3181 }
0x21bf   :  { %6842 = vrcp.f32 %v3185_v16 }
0x21c0   :  { %6844 = vrcp.f32 %v3182_v41 }
0x21c1   :  { %v6837_v13 = vpop.eup %6836 }
0x21c2   :  { %v3206_v36 = vpop.permute.xlu1 %3205  ;;  %v3188_v11 = vpop.xlane.xlu0 %3187  ;;  %v3194_v15 = vmul.f32 %v6837_v13, %v6823_v29 }
0x21c3   :  { %6846 = vrcp.f32 %v3188_v11  ;;  %6117 = vmatprep.subr.msk.mxu0 %vm651_vm9, %v3206_v36  ;;  %v6839_v19 = vpop.eup %6838 }
0x21c4   :  { %6118 = vmatpush3.msk.msra.mxu0 %vm651_vm9, %v3206_v36  ;;  %v3196_v7 = vmul.f32 %v6839_v19, %v6821_v60 }
0x21c5   :  { %v6841_v62 = vpop.eup %6840  ;;  %6120 = vmatmul.mubr.msk.f32.vlgmr.msra.gmra.mrb[42].mxu0 %vm795_vm10, %v3192_v18  ;;  %6514 = vmatprep.subr.bf16.mxu0 %v7014_v0 }
0x21c6   :  { %6122 = vmatprep.mubr.msk.f32.mxu0 %vm795_vm10, %v3194_v15  ;;  %v3198_v49 = vmul.f32 %v6841_v62, %v6825_v50  ;;  %v6660_v60 = vpop.permute.xlu0 %6659  ;;  %v6665_v29 = vpop.permute.xlu1 %6664 }
0x21c7   :  { %v6662_v38 = vunpack.i.h.bf16 %v6660_v60  ;;  %v6661_v23 = vunpack.i.l.bf16 %v6660_v60  ;;  %v6667_v28 = vunpack.i.h.bf16 %v6665_v29  ;;  %v6666_v4 = vunpack.i.l.bf16 %v6665_v29 }
0x21c9   :  { %v6843_v2 = vpop.eup %6842  ;;  %6123 = vmatmul.mubr.msk.f32.gmra.mrb[44].mxu0 %vm795_vm10, %v3196_v7  ;;  %v6509_v63 = vpack.c.bf16 %v6662_v38, %v6661_v23  ;;  %v6512_v50 = vpack.c.bf16 %v6667_v28, %v6666_v4  ;;  %v5432_v7 = vld [vmem:[%s8507_s3 + $0xd8] sm:$0xff]  ;;  %v5441_v38 = vld [vmem:[%s8508_s4 + $0xe0] sm:$0xff]  ;;  %v5442_v23 = vld [vmem:[%s8508_s4 + $0xe8] sm:$0xff] }
0x21ca   :  { %v6845_v24 = vpop.eup %6844  ;;  %6125 = vmatprep.mubr.msk.f32.mxu0 %vm795_vm10, %v3198_v49  ;;  %v3202_v48 = vmul.f32 %v6843_v2, %v6829_v35 }
0x21cb   :  { %v3200_v27 = vmul.f32 %v6845_v24, %v6827_v40  ;;  %6510 = vmatpush3.bf16.msra.mxu1 %v6509_v63  ;;  %v5437_v24 = vld [vmem:[%s8508_s4 + $0xc0] sm:$0xff]  ;;  %v6527_v63 = vpack.c.bf16 %v5442_v23, %v5441_v38 }
0x21cc   :  { %6511 = vmatprep.subr.bf16.mxu1 %v7014_v0 }
0x21cd   :  { %v6847_v52 = vpop.eup %6846  ;;  %6126 = vmatmul.mubr.msk.f32.gmra.mrb[46].mxu0 %vm795_vm10, %v3200_v27  ;;  %v5438_v27 = vld [vmem:[%s8508_s4 + $0xc8] sm:$0xff] }
0x21ce   :  { %6128 = vmatprep.mubr.msk.f32.mxu0 %vm795_vm10, %v3202_v48  ;;  %v3204_v10 = vmul.f32 %v6847_v52, %v6831_v58  ;;  %v5439_v48 = vld [vmem:[%s8508_s4 + $0xd0] sm:$0xff]  ;;  %v6521_v52 = vpack.c.bf16 %v5438_v27, %v5437_v24 }
0x21cf   :  { %6513 = vmatpush3.bf16.msra.mxu1 %v6512_v50  ;;  %v3464_v50 = vrot.slane %v7989_v42, %v7515_v17 }
0x21d0   :  { %6520 = vmatprep.subr.bf16.mxu1 %v7014_v0 }
0x21d1   :  { %6129 = vmatmul.mubr.msk.f32.gmra.mrb[48].mxu0 %vm795_vm10, %v3204_v10  ;;  %v5440_v10 = vld [vmem:[%s8508_s4 + $0xd8] sm:$0xff] }
0x21d2   :  { %6150 = vmatprep.mubr.msk.f32.mxu0 %vm7016_vm0, %v7015_v1  ;;  %v6524_v60 = vpack.c.bf16 %v5440_v10, %v5439_v48 }
0x2298   :  { %v6121_v8 = vpop.f32.mrb[42].mxu0 }
0x2299   :  { %v3339_v40 = vmul.f32 %v7787_v21, %v6121_v8  ;;  %v3299_v35 = vpop.f32.mrb[43].mxu0 }
0x229a   :  { %v3338_v47 = vmul.f32 %v7781_v25, %v3299_v35 }
0x229c   :  { %v3346_v12 = vadd.f32 %v3339_v40, %v3338_v47  ;;  %v6124_v58 = vpop.f32.mrb[44].mxu0  ;;  %v3469_v40 = vrot.slane %v7989_v42, %v7518_v33  ;;  %v3659_v47 = vld [vmem:[#allocation6] sm:$0xff] }
0x229d   :  { %v3309_v3 = vpop.f32.mrb[45].mxu0  ;;  %v3341_v5 = vmul.f32 %v7796_v32, %v6124_v58  ;;  %v3446_v32 = vrot.slane %v7989_v42, %v7472_v31 }
0x229e   :  { %v3340_v9 = vmul.f32 %v7791_v30, %v3309_v3  ;;  %v3650_v3 = vld [vmem:[%s8511_s7 + $0xc5] sm:$0x1] }
0x22a0   :  { %v3347_v22 = vadd.f32 %v3346_v12, %v3340_v9  ;;  %v6127_v59 = vpop.f32.mrb[46].mxu0  ;;  %v3660_v12 = vld [vmem:[#allocation6 + $0x8] sm:$0xff] }
0x22a1   :  { %v3319_v34 = vpop.f32.mrb[47].mxu0  ;;  %v3343_v61 = vmul.f32 %v7804_v43, %v6127_v59  ;;  %v6533_v9 = vpack.c.bf16 %v3660_v12, %v3659_v47  ;;  %v3662_v59 = vld [vmem:[#allocation6 + $0x18] sm:$0xff] }
0x22a2   :  { %v3342_v6 = vmul.f32 %v7799_v54, %v3319_v34  ;;  %v3348_v55 = vadd.f32 %v3347_v22, %v3341_v5  ;;  %v3661_v22 = vld [vmem:[#allocation6 + $0x10] sm:$0xff]  ;;  %v3652_v34 = vrot.slane %v3650_v3, 7 }
0x22a3   :  { %v8171_v10 = vpack.i.bf16 %v3662_v59, %v3661_v22 }
0x22a4   :  { %v3349_v37 = vadd.f32 %v3348_v55, %v3342_v6  ;;  %v6130_v21 = vpop.f32.mrb[48].mxu0  ;;  %v6536_v6 = vpack.c.bf16 %v3662_v59, %v3661_v22  ;;  %v3657_v55 = vsel %vm128_vm1, %v3650_v3, %v3652_v34  ;;  %v3648_v3 = vrot.slane %v7989_v42, %v7575_v57 }
0x22a5   :  { %v3329_v16 = vpop.f32.mrb[49].mxu0  ;;  %v3345_v51 = vmul.f32 %v7812_v46, %v6130_v21  ;;  %v5443_v21 = vld [vmem:[%s8508_s4 + $0xf0] sm:$0xff] }
0x22a6   :  { %v3344_v25 = vmul.f32 %v7807_v39, %v3329_v16  ;;  %v3350_v41 = vadd.f32 %v3349_v37, %v3343_v61  ;;  %v5444_v16 = vld [vmem:[%s8508_s4 + $0xf8] sm:$0xff] }
0x22a8   :  { %v3351_v13 = vadd.f32 %v3350_v41, %v3344_v25  ;;  %v6530_v25 = vpack.c.bf16 %v5444_v16, %v5443_v21  ;;  %v3474_v41 = vrot.slane %v7989_v42, %v7534_v20  ;;  %v8212_v16 = vld [vmem:[#allocation7 + $0xa8] sm:$0xff] }
0x22aa   :  { %v3352_v30 = vadd.f32 %v3351_v13, %v3345_v51 }
0x22ac   :  { %6140 = vmatmul.mubr.msk.f32.vlgmr.msra.gmra.mrb[48].mxu1 %vm577_vm8, %v3352_v30 }
0x22ad   :  { %6169 = vmatprep.mubr.msk.f32.mxu1 %vm7016_vm0, %v7015_v1  ;;  %6522 = vmatpush3.bf16.msra.mxu1 %v6521_v52 }
0x22ae   :  { %6523 = vmatprep.subr.bf16.mxu1 %v7014_v0 }
0x22b1   :  { %6525 = vmatpush3.bf16.msra.mxu1 %v6524_v60 }
0x22b2   :  { %6526 = vmatprep.subr.bf16.mxu1 %v7014_v0 }
0x22b5   :  { %6528 = vmatpush3.bf16.msra.mxu1 %v6527_v63 }
0x22b6   :  { %6529 = vmatprep.subr.bf16.mxu1 %v7014_v0 }
0x22b9   :  { %6531 = vmatpush3.bf16.msra.mxu1 %v6530_v25  ;;  %v8214_v25 = vld [vmem:[#allocation7 + $0xa0] sm:$0xff] }
0x237f   :  { %v3438_v54 = vpop.f32.mrb[48].mxu1 }
0x2380   :  { %v3442_v43 = vadd.f32 %v3438_v54, %v7985_v56  ;;  %v6141_v36 = vpop.f32.mrb[49].mxu1  ;;  %v5430_v56 = vld [vmem:[%s8507_s3 + $0xc8] sm:$0xff] }
0x2381   :  { %v6515_v49 = vpack.c.bf16 %v5432_v7, %v5430_v56 }
0x2382   :  { %v3447_v11 = vadd.f32 %v3446_v32, %v3442_v43  ;;  %v8150_v32 = vld [vmem:[#allocation4 + $0x20] sm:$0xff] }
0x2383   :  { %6516 = vmatpush3.bf16.msra.mxu0 %v6515_v49  ;;  %v3668_v43 = vrot.slane %v8150_v32, %v7348_v53  ;;  %v3745_v22 = vrot.slane %v8150_v32, %v7534_v20 }
0x2384   :  { %v3448_v39 = vsel %vm1127_vm11, %v3447_v11, 0.0  ;;  %6517 = vmatprep.subr.bf16.mxu0 %v7014_v0 }
0x2385   :  { %3449 = vadd.xlane.f32.xlu1 %v3448_v39 }
0x2396   :  { %3654 = vrot.lane.b32.xlu1 %v544_v45, %s7020_s15  ;;  %v5436_v45 = vld [vmem:[%s8507_s3 + $0xf8] sm:$0xff] }
0x2397   :  { %v6518_v2 = vpack.c.bf16 %v5436_v45, %v5434_v44  ;;  %v8166_v45 = vpack.i.bf16 %v3660_v12, %v3659_v47  ;;  %v3643_v47 = vrot.slane %v7989_v42, %v7572_v14 }
0x2399   :  { %6519 = vmatpush3.bf16.msra.mxu0 %v6518_v2 }
0x239a   :  { %6532 = vmatprep.subr.bf16.mxu0 %v7014_v0 }
0x2412   :  { %v3450_v46 = vpop.xlane.xlu1 %3449 }
0x2413   :  { %v3451_v18 = vmul.f32 0.03125, %v3450_v46 }
0x2415   :  { %v3452_v19 = vsub.f32 %v3447_v11, %v3451_v18  ;;  %v8155_v11 = vld [vmem:[#allocation7 + $0x80] sm:$0xff] }
0x2416   :  { %v3655_v61 = vpop.permute.xlu1 %3654 }
0x2417   :  { %v3453_v15 = vmul.f32 %v3452_v19, %v3452_v19  ;;  %v3658_v37 = vsel %vm552_vm6, %v3657_v55, %v3655_v61  ;;  %v8186_v55 = vld [vmem:[#allocation7 + $0x88] sm:$0xff]  ;;  %v8188_v61 = vld [vmem:[#allocation7 + $0x90] sm:$0xff] }
0x2419   :  { %v3454_v62 = vsel %vm1127_vm11, %v3453_v15, 0.0  ;;  %v3552_v15 = vrot.slane %v7989_v42, %v7540_v26  ;;  %v8196_v42 = vld [vmem:[#allocation7 + $0x98] sm:$0xff] }
0x241a   :  { %3455 = vadd.xlane.f32.xlu0 %v3454_v62 }
0x24a7   :  { %v3456_v29 = vpop.xlane.xlu0 %3455 }
0x24a8   :  { %v3457_v28 = vmul.f32 0.03125, %v3456_v29 }
0x24aa   :  { %v3458_v4 = vadd.f32 1e-05, %v3457_v28 }
0x24ac   :  { %6848 = vrsqrt.f32 %v3458_v4 }
0x24b6   :  { %v6849_v8 = vpop.eup %6848 }
0x24b7   :  { %v3460_v35 = vmul.f32 %v6849_v8, %v3452_v19 }
0x24b9   :  { %v3465_v58 = vmul.f32 %v3464_v50, %v3460_v35 }
0x24bb   :  { %v3470_v5 = vadd.f32 %v3469_v40, %v3465_v58 }
0x24bd   :  { %6151 = vmatmul.mubr.msk.f32.vlgmr.msra.gmra.mrb[50].mxu0 %vm577_vm8, %v3470_v5 }
0x24be   :  { %6534 = vmatpush3.bf16.msra.mxu0 %v6533_v9  ;;  %6180 = vmatprep.mubr.msk.f32.mxu0 %vm7016_vm0, %v7015_v1 }
0x24bf   :  { %6535 = vmatprep.subr.bf16.mxu0 %v7014_v0 }
0x24c2   :  { %6537 = vmatpush3.bf16.msra.mxu0 %v6536_v6 }
0x24c3   :  { %6538 = vmatprep.subr.bf16.mxu0 %v7014_v0 }
0x24c5   :  { %6181 = vmatmul.mubr.msk.f32.vlgmr.msra.gmra.mrb[52].mxu0 %vm577_vm8, %v3658_v37 }
0x24c6   :  { %6191 = vmatprep.mubr.msk.f32.mxu0 %vm7016_vm0, %v7015_v1 }
0x2590   :  { %v3544_v51 = vpop.f32.mrb[50].mxu0 }
0x2591   :  { %v3545_v13 = vadd.f32 %v3544_v51, %v3474_v41  ;;  %v6152_v30 = vpop.f32.mrb[51].mxu0 }
0x2593   :  { %v3548_v54 = vmax.f32 %v3545_v13, 0.0 }
0x2595   :  { %6170 = vmatmul.mubr.msk.f32.vlgmr.msra.gmra.mrb[50].mxu1 %vm399_vm5, %v3548_v54 }
0x2598   :  { %v3738_v36 = vpop.f32.mrb[52].mxu0 }
0x2599   :  { %v3739_v39 = vadd.f32 %v3738_v36, %v3668_v43  ;;  %v6182_v46 = vpop.f32.mrb[53].mxu0  ;;  %v8219_v43 = vld [vmem:[#allocation7 + $0xb0] sm:$0xff] }
0x259a   :  { %v8222_v46 = vld [vmem:[#allocation7 + $0xb8] sm:$0xff] }
0x259b   :  { %v3835_v18 = vsel %vm554_vm7, %v3739_v39, 0.0 }
0x259c   :  { %v8159_v19 = vmul.f32 %v3835_v18, %v8155_v11  ;;  %v8193_v57 = vmul.f32 %v3835_v18, %v8186_v55  ;;  %v8199_v37 = vmul.f32 %v3835_v18, %v8188_v61  ;;  %v8206_v21 = vmul.f32 %v3835_v18, %v8196_v42 }
0x259e   :  { %6196 = vmatprep.mubr.msk.f32.mxu1 %vm577_vm8, %v8159_v19 }
0x2668   :  { %v3622_v62 = vpop.f32.mrb[50].mxu1 }
0x2669   :  { %v3623_v56 = vadd.f32 %v3622_v62, %v3552_v15  ;;  %v6171_v7 = vpop.f32.mrb[51].mxu1 }
0x266b   :  { %v3626_v49 = vadd.f32 %v3623_v56, %v3470_v5 }
0x266d   :  { %v3627_v44 = vsel %vm1127_vm11, %v3626_v49, 0.0 }
0x266e   :  { %3628 = vadd.xlane.f32.xlu0 %v3627_v44 }
0x2684   :  { %6669 = vrot.lane.b32.xlu0 %v8166_v45, %s7018_s13 }
0x26fb   :  { %v3629_v2 = vpop.xlane.xlu0 %3628 }
0x26fc   :  { %v3630_v24 = vmul.f32 0.03125, %v3629_v2 }
0x26fe   :  { %v3631_v27 = vsub.f32 %v3626_v49, %v3630_v24 }
0x26ff   :  { %v6670_v60 = vpop.permute.xlu0 %6669 }
0x2700   :  { %v3632_v48 = vmul.f32 %v3631_v27, %v3631_v27  ;;  %v6672_v38 = vunpack.i.h.bf16 %v6670_v60  ;;  %v6671_v23 = vunpack.i.l.bf16 %v6670_v60 }
0x2702   :  { %v3633_v52 = vsel %vm1127_vm11, %v3632_v48, 0.0  ;;  %v6539_v63 = vpack.c.bf16 %v6672_v38, %v6671_v23 }
0x2703   :  { %3634 = vadd.xlane.f32.xlu1 %v3633_v52 }
0x2704   :  { %6540 = vmatpush3.bf16.msra.mxu0 %v6539_v63 }
0x2705   :  { %6541 = vmatprep.subr.bf16.mxu0 %v7014_v0 }
0x2714   :  { %6674 = vrot.lane.b32.xlu1 %v8171_v10, %s7018_s13 }
0x2790   :  { %v3635_v29 = vpop.xlane.xlu1 %3634 }
0x2791   :  { %v3636_v28 = vmul.f32 0.03125, %v3635_v29 }
0x2793   :  { %v3637_v4 = vadd.f32 1e-05, %v3636_v28 }
0x2794   :  { %v6675_v50 = vpop.permute.xlu1 %6674 }
0x2795   :  { %6850 = vrsqrt.f32 %v3637_v4  ;;  %v6677_v8 = vunpack.i.h.bf16 %v6675_v50  ;;  %v6676_v40 = vunpack.i.l.bf16 %v6675_v50 }
0x2797   :  { %v6542_v35 = vpack.c.bf16 %v6677_v8, %v6676_v40 }
0x2799   :  { %6543 = vmatpush3.bf16.msra.mxu0 %v6542_v35 }
0x279f   :  { %v6851_v12 = vpop.eup %6850 }
0x27a0   :  { %v3639_v58 = vmul.f32 %v6851_v12, %v3631_v27 }
0x27a2   :  { %v3644_v9 = vmul.f32 %v3643_v47, %v3639_v58 }
0x27a4   :  { %v8180_v5 = vadd.f32 %v3648_v3, %v3644_v9 }
0x27a6   :  { %6192 = vmatmul.mubr.msk.f32.vlgmr.msra.gmra.mrb[54].mxu0 %vm577_vm8, %v8180_v5 }
0x2879   :  { %v3831_v59 = vpop.f32.mrb[54].mxu0 }
0x287a   :  { %v3832_v34 = vadd.f32 %v3831_v59, %v3745_v22  ;;  %v6193_v6 = vpop.f32.mrb[55].mxu0 }
0x287c   :  { %6194 = vmatprep.subr.msk.mxu1 %vm577_vm8, %v3832_v34 }
0x287d   :  { %6195 = vmatpush3.xpose.msk.msra.mxu1 %vm577_vm8, %v3832_v34 }
0x287e   :  { %6544 = vmatprep.subr.bf16.mxu1 %v7014_v0 }
0x2880   :  { %6197 = vmatmul.mubr.msk.f32.vlgmr.msra.gmra.mrb[52].mxu1 %vm577_vm8, %v8193_v57 }
0x2881   :  { %6199 = vmatprep.mubr.msk.f32.mxu1 %vm577_vm8, %v8199_v37 }
0x2884   :  { %6200 = vmatmul.mubr.msk.f32.gmra.mrb[54].mxu1 %vm577_vm8, %v8206_v21 }
0x2885   :  { %6218 = vmatprep.mubr.msk.f32.mxu1 %vm7016_vm0, %v7015_v1 }
0x2953   :  { %v6198_v41 = vpop.f32.mrb[52].mxu1 }
0x2954   :  { %v3927_v51 = vadd.f32 %v6198_v41, %v8212_v16  ;;  %v3921_v13 = vpop.f32.mrb[53].mxu1 }
0x2955   :  { %v3922_v30 = vadd.f32 %v3921_v13, %v8214_v25 }
0x2956   :  { %v3943_v54 = vsel %vm795_vm10, %v3927_v51, -inf }
0x2957   :  { %3944 = vmax.xlane.f32.xlu1 %v3943_v54  ;;  %v6201_v36 = vpop.f32.mrb[54].mxu1  ;;  %v3940_v39 = vsel %vm795_vm10, %v3922_v30, -inf }
0x2958   :  { %v3931_v18 = vpop.f32.mrb[55].mxu1  ;;  %3941 = vmax.xlane.f32.xlu0 %v3940_v39  ;;  %v3937_v62 = vadd.f32 %v6201_v36, %v8222_v46 }
0x2959   :  { %v3932_v15 = vadd.f32 %v3931_v18, %v8219_v43 }
0x295a   :  { %v3949_v7 = vsel %vm795_vm10, %v3937_v62, -inf }
0x295b   :  { %v3946_v56 = vsel %vm795_vm10, %v3932_v15, -inf }
0x295c   :  { %3947 = vmax.xlane.f32.xlu0 %v3946_v56 }
0x2960   :  { %3950 = vmax.xlane.f32.xlu0 %v3949_v7 }
0x29e4   :  { %v3945_v49 = vpop.xlane.xlu1 %3944 }
0x29e5   :  { %v3953_v44 = vsub.f32 %v3927_v51, %v3945_v49  ;;  %v3942_v2 = vpop.xlane.xlu0 %3941 }
0x29e6   :  { %v3952_v24 = vsub.f32 %v3922_v30, %v3942_v2 }
0x29e7   :  { %v3958_v27 = vmul.f32 1.442695, %v3953_v44 }
0x29e8   :  { %v3956_v48 = vmul.f32 1.442695, %v3952_v24 }
0x29e9   :  { %6852 = vpow2.f32 %v3958_v27  ;;  %v3948_v52 = vpop.xlane.xlu0 %3947 }
0x29ea   :  { %6854 = vpow2.f32 %v3956_v48  ;;  %v3954_v60 = vsub.f32 %v3932_v15, %v3948_v52 }
0x29ec   :  { %v3960_v38 = vmul.f32 1.442695, %v3954_v60 }
0x29ed   :  { %v3951_v23 = vpop.xlane.xlu0 %3950 }
0x29ee   :  { %6856 = vpow2.f32 %v3960_v38  ;;  %v3955_v63 = vsub.f32 %v3937_v62, %v3951_v23 }
0x29f0   :  { %v3962_v29 = vmul.f32 1.442695, %v3955_v63 }
0x29f2   :  { %6858 = vpow2.f32 %v3962_v29 }
0x29f3   :  { %v6853_v28 = vpop.eup %6852 }
0x29f4   :  { %v6855_v4 = vpop.eup %6854  ;;  %v3967_v50 = vsel %vm795_vm10, %v6853_v28, 0.0 }
0x29f5   :  { %3968 = vadd.xlane.f32.xlu0 %v3967_v50  ;;  %v3964_v8 = vsel %vm795_vm10, %v6855_v4, 0.0 }
0x29f6   :  { %3965 = vadd.xlane.f32.xlu1 %v3964_v8 }
0x29f8   :  { %v6857_v40 = vpop.eup %6856 }
0x29f9   :  { %v3970_v35 = vsel %vm795_vm10, %v6857_v40, 0.0 }
0x29fa   :  { %3971 = vadd.xlane.f32.xlu1 %v3970_v35 }
0x29fc   :  { %v6859_v47 = vpop.eup %6858 }
0x29fd   :  { %v3973_v12 = vsel %vm795_vm10, %v6859_v47, 0.0 }
0x29fe   :  { %3974 = vadd.xlane.f32.xlu0 %v3973_v12 }
0x2a0b   :  { %3984 = vrot.lane.b32.xlu1 %v3832_v34, %s7018_s13 }
0x2a0f   :  { %6684 = vrot.lane.b32.xlu1 %v8171_v10, %s7020_s15 }
0x2a82   :  { %v3969_v58 = vpop.xlane.xlu0 %3968 }
0x2a83   :  { %6860 = vrcp.f32 %v3969_v58  ;;  %v3966_v3 = vpop.xlane.xlu1 %3965 }
0x2a84   :  { %6862 = vrcp.f32 %v3966_v3  ;;  %v4109_v3 = vrot.slane %v8150_v32, %v7540_v26 }
0x2a87   :  { %v3972_v9 = vpop.xlane.xlu1 %3971 }
0x2a88   :  { %6864 = vrcp.f32 %v3972_v9  ;;  %v4114_v9 = vrot.slane %v8150_v32, %v7515_v17 }
0x2a8b   :  { %v3985_v22 = vpop.permute.xlu1 %3984  ;;  %v3975_v59 = vpop.xlane.xlu0 %3974 }
0x2a8c   :  { %6866 = vrcp.f32 %v3975_v59  ;;  %6202 = vmatprep.subr.msk.mxu0 %vm651_vm9, %v3985_v22 }
0x2a8d   :  { %v6861_v6 = vpop.eup %6860  ;;  %6203 = vmatpush3.msk.msra.mxu0 %vm651_vm9, %v3985_v22 }
0x2a8e   :  { %v6863_v41 = vpop.eup %6862  ;;  %6550 = vmatprep.subr.bf16.mxu0 %v7014_v0  ;;  %v3979_v13 = vmul.f32 %v6861_v6, %v6853_v28 }
0x2a8f   :  { %v3977_v51 = vmul.f32 %v6863_v41, %v6855_v4  ;;  %v6685_v4 = vpop.permute.xlu1 %6684  ;;  %v4119_v41 = vrot.slane %v8150_v32, %v7472_v31 }
0x2a90   :  { %v6686_v10 = vunpack.i.l.bf16 %v6685_v4 }
0x2a91   :  { %6204 = vmatprep.mubr.msk.f32.mxu0 %vm795_vm10, %v3977_v51 }
0x2a92   :  { %v6865_v34 = vpop.eup %6864  ;;  %6205 = vmatmul.mubr.msk.f32.vlgmr.msra.gmra.mrb[56].mxu0 %vm795_vm10, %v3979_v13 }
0x2a93   :  { %v3981_v30 = vmul.f32 %v6865_v34, %v6857_v40  ;;  %v6687_v40 = vunpack.i.h.bf16 %v6685_v4 }
0x2a95   :  { %6207 = vmatprep.mubr.msk.f32.mxu0 %vm795_vm10, %v3981_v30  ;;  %v6548_v58 = vpack.c.bf16 %v6687_v40, %v6686_v10  ;;  %v4228_v40 = vrot.slane %v8150_v32, %v7572_v14 }
0x2a96   :  { %v6867_v54 = vpop.eup %6866 }
0x2a97   :  { %v3983_v36 = vmul.f32 %v6867_v54, %v6859_v47 }
0x2a99   :  { %6208 = vmatmul.mubr.msk.f32.gmra.mrb[58].mxu0 %vm795_vm10, %v3983_v36 }
0x2a9a   :  { %6229 = vmatprep.mubr.msk.f32.mxu0 %vm7016_vm0, %v7015_v1 }
0x2b65   :  { %v6206_v39 = vpop.f32.mrb[56].mxu0 }
0x2b66   :  { %v4072_v18 = vadd.f32 %v6206_v39, %v8193_v57  ;;  %v4066_v15 = vpop.f32.mrb[57].mxu0  ;;  %v4231_v39 = vld [vmem:[#allocation6 + $0x20] sm:$0xff] }
0x2b67   :  { %v4067_v62 = vadd.f32 %v4066_v15, %v8159_v19 }
0x2b68   :  { %v4086_v56 = vmul.f32 %v4072_v18, %v8186_v55  ;;  %v4232_v18 = vld [vmem:[#allocation6 + $0x28] sm:$0xff] }
0x2b69   :  { %v4085_v7 = vmul.f32 %v4067_v62, %v8155_v11  ;;  %v8268_v15 = vpack.i.bf16 %v4232_v18, %v4231_v39 }
0x2b6b   :  { %v4089_v49 = vadd.f32 %v4086_v56, %v4085_v7 }
0x2b6c   :  { %v6209_v44 = vpop.f32.mrb[58].mxu0 }
0x2b6d   :  { %v4076_v2 = vpop.f32.mrb[59].mxu0  ;;  %v4082_v24 = vadd.f32 %v6209_v44, %v8206_v21 }
0x2b6e   :  { %v4077_v27 = vadd.f32 %v4076_v2, %v8199_v37 }
0x2b6f   :  { %v4088_v52 = vmul.f32 %v4082_v24, %v8196_v42  ;;  %v4233_v24 = vld [vmem:[#allocation6 + $0x30] sm:$0xff] }
0x2b70   :  { %v4087_v48 = vmul.f32 %v4077_v27, %v8188_v61  ;;  %v4234_v27 = vld [vmem:[#allocation6 + $0x38] sm:$0xff] }
0x2b72   :  { %v4090_v60 = vadd.f32 %v4089_v49, %v4087_v48 }
0x2b74   :  { %v4091_v57 = vadd.f32 %v4090_v60, %v4088_v52 }
0x2b76   :  { %v4093_v19 = vsel %vm4092_vm12, %v4091_v57, 0.0 }
0x2b77   :  { %4094 = vadd.xlane.f32.xlu0 %v4093_v19  ;;  %v6551_v19 = vpack.c.bf16 %v4232_v18, %v4231_v39 }
0x2b79   :  { %6552 = vmatpush3.bf16.msra.mxu0 %v6551_v19 }
0x2b7a   :  { %6553 = vmatprep.subr.bf16.mxu0 %v7014_v0 }
0x2c04   :  { %v4095_v38 = vpop.xlane.xlu0 %4094 }
0x2c05   :  { %v4096_v23 = vmul.f32 0.03125, %v4095_v38  ;;  %v6554_v38 = vpack.c.bf16 %v4234_v27, %v4233_v24 }
0x2c07   :  { %v4097_v63 = vsub.f32 %v4091_v57, %v4096_v23  ;;  %v8273_v57 = vpack.i.bf16 %v4234_v27, %v4233_v24  ;;  %6555 = vmatpush3.bf16.msra.mxu0 %v6554_v38 }
0x2c09   :  { %v4098_v29 = vmul.f32 %v4097_v63, %v4097_v63 }
0x2c0b   :  { %v4099_v21 = vsel %vm4092_vm12, %v4098_v29, 0.0 }
0x2c0c   :  { %4100 = vadd.xlane.f32.xlu0 %v4099_v21 }
0x2c22   :  { %6679 = vrot.lane.b32.xlu0 %v8166_v45, %s7020_s15 }
0x2c99   :  { %v4101_v37 = vpop.xlane.xlu0 %4100 }
0x2c9a   :  { %v4102_v28 = vmul.f32 0.03125, %v4101_v37 }
0x2c9c   :  { %v4103_v50 = vadd.f32 1e-05, %v4102_v28 }
0x2c9d   :  { %v6680_v8 = vpop.permute.xlu0 %6679 }
0x2c9e   :  { %6868 = vrsqrt.f32 %v4103_v50  ;;  %v6682_v35 = vunpack.i.h.bf16 %v6680_v8  ;;  %v6681_v47 = vunpack.i.l.bf16 %v6680_v8  ;;  %v4223_v50 = vrot.slane %v8150_v32, %v7518_v33 }
0x2ca0   :  { %v6545_v12 = vpack.c.bf16 %v6682_v35, %v6681_v47 }
0x2ca2   :  { %6546 = vmatpush3.bf16.msra.mxu1 %v6545_v12  ;;  %v8286_v12 = vld [vmem:[#allocation4 + $0x28] sm:$0xff] }
0x2ca3   :  { %6547 = vmatprep.subr.bf16.mxu1 %v7014_v0  ;;  %v4240_v32 = vrot.slane %v8286_v12, %v7348_v53 }
0x2ca6   :  { %6549 = vmatpush3.bf16.msra.mxu1 %v6548_v58  ;;  %v4317_v58 = vrot.slane %v8286_v12, %v7534_v20 }
0x2ca7   :  { %6556 = vmatprep.subr.bf16.mxu1 %v7014_v0 }
0x2ca8   :  { %v6869_v45 = vpop.eup %6868 }
0x2ca9   :  { %v4105_v22 = vmul.f32 %v6869_v45, %v4097_v63 }
0x2cab   :  { %v4110_v59 = vmul.f32 %v4109_v3, %v4105_v22 }
0x2cad   :  { %v4115_v6 = vadd.f32 %v4114_v9, %v4110_v59 }
0x2caf   :  { %6219 = vmatmul.mubr.msk.f32.vlgmr.msra.gmra.mrb[56].mxu1 %vm577_vm8, %v4115_v6 }
0x2cb0   :  { %6240 = vmatprep.mubr.msk.f32.mxu1 %vm7016_vm0, %v7015_v1 }
0x2d82   :  { %v4201_v51 = vpop.f32.mrb[56].mxu1 }
0x2d83   :  { %v4202_v13 = vadd.f32 %v4201_v51, %v4119_v41  ;;  %v6220_v34 = vpop.f32.mrb[57].mxu1 }
0x2d85   :  { %v4205_v30 = vmax.f32 %v4202_v13, 0.0 }
0x2d87   :  { %v4206_v54 = vadd.f32 %v4205_v30, %v4115_v6 }
0x2d89   :  { %v4207_v36 = vsel %vm4092_vm12, %v4206_v54, 0.0 }
0x2d8a   :  { %4208 = vadd.xlane.f32.xlu1 %v4207_v36 }
0x2d9b   :  { %6689 = vrot.lane.b32.xlu1 %v8268_v15, %s7018_s13 }
0x2e17   :  { %v4209_v62 = vpop.xlane.xlu1 %4208 }
0x2e18   :  { %v4210_v56 = vmul.f32 0.03125, %v4209_v62 }
0x2e1a   :  { %v4211_v7 = vsub.f32 %v4206_v54, %v4210_v56 }
0x2e1b   :  { %v6690_v2 = vpop.permute.xlu1 %6689 }
0x2e1c   :  { %v4212_v49 = vmul.f32 %v4211_v7, %v4211_v7  ;;  %v6692_v48 = vunpack.i.h.bf16 %v6690_v2  ;;  %v6691_v52 = vunpack.i.l.bf16 %v6690_v2 }
0x2e1e   :  { %v4213_v44 = vsel %vm4092_vm12, %v4212_v49, 0.0  ;;  %v6557_v60 = vpack.c.bf16 %v6692_v48, %v6691_v52 }
0x2e1f   :  { %4214 = vadd.xlane.f32.xlu0 %v4213_v44 }
0x2e20   :  { %6558 = vmatpush3.bf16.msra.mxu1 %v6557_v60 }
0x2e21   :  { %6559 = vmatprep.subr.bf16.mxu1 %v7014_v0 }
0x2e35   :  { %6694 = vrot.lane.b32.xlu0 %v8273_v57, %s7018_s13 }
0x2eac   :  { %v4215_v23 = vpop.xlane.xlu0 %4214 }
0x2ead   :  { %v4216_v63 = vmul.f32 0.03125, %v4215_v23 }
0x2eaf   :  { %v4217_v29 = vadd.f32 1e-05, %v4216_v63 }
0x2eb0   :  { %v6695_v21 = vpop.permute.xlu0 %6694 }
0x2eb1   :  { %6870 = vrsqrt.f32 %v4217_v29  ;;  %v6697_v37 = vunpack.i.h.bf16 %v6695_v21  ;;  %v6696_v28 = vunpack.i.l.bf16 %v6695_v21 }
0x2eb3   :  { %v6560_v4 = vpack.c.bf16 %v6697_v37, %v6696_v28 }
0x2eb5   :  { %6561 = vmatpush3.bf16.msra.mxu1 %v6560_v4 }
0x2eb8   :  { %6241 = vmatmul.mubr.msk.f32.vlgmr.msra.gmra.mrb[58].mxu1 %vm577_vm8, %v8180_v5 }
0x2ebb   :  { %v6871_v8 = vpop.eup %6870 }
0x2ebc   :  { %v4219_v35 = vmul.f32 %v6871_v8, %v4211_v7 }
0x2ebe   :  { %v4224_v47 = vmul.f32 %v4223_v50, %v4219_v35 }
0x2ec0   :  { %v4229_v10 = vadd.f32 %v4228_v40, %v4224_v47 }
0x2ec2   :  { %6230 = vmatmul.mubr.msk.f32.vlgmr.msra.gmra.mrb[60].mxu0 %vm577_vm8, %v4229_v10 }
0x2f8b   :  { %v4400_v3 = vpop.f32.mrb[58].mxu1 }
0x2f8c   :  { %v4401_v45 = vadd.f32 %v4400_v3, %v4317_v58  ;;  %v6242_v5 = vpop.f32.mrb[59].mxu1 }
0x2f8e   :  { %6243 = vmatprep.subr.msk.mxu0 %vm577_vm8, %v4401_v45 }
0x2f8f   :  { %6244 = vmatpush3.xpose.msk.msra.mxu0 %vm577_vm8, %v4401_v45 }
0x2f90   :  { %6562 = vmatprep.subr.bf16.mxu0 %v7014_v0 }
0x2f95   :  { %v4310_v9 = vpop.f32.mrb[60].mxu0 }
0x2f96   :  { %v4311_v22 = vadd.f32 %v4310_v9, %v4240_v32  ;;  %v6231_v59 = vpop.f32.mrb[61].mxu0 }
0x2f98   :  { %v4404_v6 = vsel %vm554_vm7, %v4311_v22, 0.0 }
0x2f99   :  { %v8297_v41 = vmul.f32 %v4404_v6, %v8155_v11  ;;  %v8300_v20 = vmul.f32 %v4404_v6, %v8186_v55  ;;  %v8303_v51 = vmul.f32 %v4404_v6, %v8188_v61  ;;  %v8312_v53 = vmul.f32 %v4404_v6, %v8196_v42 }
0x2f9b   :  { %6245 = vmatprep.mubr.msk.f32.mxu0 %vm577_vm8, %v8297_v41 }
0x2f9c   :  { %6246 = vmatmul.mubr.msk.f32.vlgmr.msra.gmra.mrb[62].mxu0 %vm577_vm8, %v8300_v20 }
0x2f9d   :  { %6248 = vmatprep.mubr.msk.f32.mxu0 %vm577_vm8, %v8303_v51 }
0x2fa0   :  { %6249 = vmatmul.mubr.msk.f32.gmra.mrb[64].mxu0 %vm577_vm8, %v8312_v53 }
0x2fa1   :  { %6267 = vmatprep.mubr.msk.f32.mxu0 %vm7016_vm0, %v7015_v1 }
0x306f   :  { %v6247_v13 = vpop.f32.mrb[62].mxu0 }
0x3070   :  { %v4496_v34 = vadd.f32 %v6247_v13, %v8212_v16  ;;  %v4490_v30 = vpop.f32.mrb[63].mxu0 }
0x3071   :  { %v4491_v54 = vadd.f32 %v4490_v30, %v8214_v25 }
0x3072   :  { %v4512_v36 = vsel %vm795_vm10, %v4496_v34, -inf }
0x3073   :  { %4513 = vmax.xlane.f32.xlu0 %v4512_v36  ;;  %v6250_v39 = vpop.f32.mrb[64].mxu0  ;;  %v4509_v18 = vsel %vm795_vm10, %v4491_v54, -inf }
0x3074   :  { %v4500_v62 = vpop.f32.mrb[65].mxu0  ;;  %4510 = vmax.xlane.f32.xlu1 %v4509_v18  ;;  %v4506_v7 = vadd.f32 %v6250_v39, %v8222_v46 }
0x3075   :  { %v4501_v56 = vadd.f32 %v4500_v62, %v8219_v43 }
0x3076   :  { %v4518_v16 = vsel %vm795_vm10, %v4506_v7, -inf }
0x3077   :  { %v4515_v49 = vsel %vm795_vm10, %v4501_v56, -inf }
0x3078   :  { %4516 = vmax.xlane.f32.xlu1 %v4515_v49 }
0x307c   :  { %4519 = vmax.xlane.f32.xlu1 %v4518_v16 }
0x3100   :  { %v4514_v44 = vpop.xlane.xlu0 %4513 }
0x3101   :  { %v4522_v25 = vsub.f32 %v4496_v34, %v4514_v44  ;;  %v4511_v2 = vpop.xlane.xlu1 %4510 }
0x3102   :  { %v4521_v24 = vsub.f32 %v4491_v54, %v4511_v2 }
0x3103   :  { %v4527_v27 = vmul.f32 1.442695, %v4522_v25 }
0x3104   :  { %v4525_v48 = vmul.f32 1.442695, %v4521_v24 }
0x3105   :  { %6872 = vpow2.f32 %v4527_v27  ;;  %v4517_v52 = vpop.xlane.xlu1 %4516 }
0x3106   :  { %6874 = vpow2.f32 %v4525_v48  ;;  %v4523_v60 = vsub.f32 %v4501_v56, %v4517_v52 }
0x3108   :  { %v4529_v19 = vmul.f32 1.442695, %v4523_v60 }
0x3109   :  { %v4520_v43 = vpop.xlane.xlu1 %4519 }
0x310a   :  { %6876 = vpow2.f32 %v4529_v19  ;;  %v4524_v46 = vsub.f32 %v4506_v7, %v4520_v43 }
0x310c   :  { %v4531_v38 = vmul.f32 1.442695, %v4524_v46  ;;  %v4677_v46 = vrot.slane %v8286_v12, %v7540_v26 }
0x310e   :  { %6878 = vpow2.f32 %v4531_v38  ;;  %v4682_v38 = vrot.slane %v8286_v12, %v7515_v17 }
0x310f   :  { %v6873_v23 = vpop.eup %6872 }
0x3110   :  { %v6875_v63 = vpop.eup %6874  ;;  %v4536_v29 = vsel %vm795_vm10, %v6873_v23, 0.0 }
0x3111   :  { %4537 = vadd.xlane.f32.xlu1 %v4536_v29  ;;  %v4533_v21 = vsel %vm795_vm10, %v6875_v63, 0.0 }
0x3112   :  { %4534 = vadd.xlane.f32.xlu0 %v4533_v21  ;;  %v4687_v21 = vrot.slane %v8286_v12, %v7472_v31  ;;  %v4805_v31 = vld [vmem:[%s8511_s7 + $0x8] sm:$0xff] }
0x3114   :  { %v6877_v37 = vpop.eup %6876 }
0x3115   :  { %v4539_v28 = vsel %vm795_vm10, %v6877_v37, 0.0 }
0x3116   :  { %4540 = vadd.xlane.f32.xlu0 %v4539_v28 }
0x3118   :  { %v6879_v4 = vpop.eup %6878 }
0x3119   :  { %v4542_v50 = vsel %vm795_vm10, %v6879_v4, 0.0 }
0x311a   :  { %4543 = vadd.xlane.f32.xlu1 %v4542_v50 }
0x312c   :  { %4553 = vrot.lane.b32.xlu0 %v4401_v45, %s7018_s13 }
0x3130   :  { %6704 = vrot.lane.b32.xlu0 %v8273_v57, %s7020_s15 }
0x319e   :  { %v4538_v8 = vpop.xlane.xlu1 %4537 }
0x319f   :  { %6880 = vrcp.f32 %v4538_v8  ;;  %v4535_v40 = vpop.xlane.xlu0 %4534 }
0x31a0   :  { %6882 = vrcp.f32 %v4535_v40 }
0x31a3   :  { %v4541_v35 = vpop.xlane.xlu0 %4540 }
0x31a4   :  { %6884 = vrcp.f32 %v4541_v35 }
0x31a7   :  { %v4554_v47 = vpop.permute.xlu0 %4553  ;;  %v4544_v10 = vpop.xlane.xlu1 %4543 }
0x31a8   :  { %6886 = vrcp.f32 %v4544_v10  ;;  %6251 = vmatprep.subr.msk.mxu1 %vm651_vm9, %v4554_v47 }
0x31a9   :  { %v6881_v58 = vpop.eup %6880  ;;  %6252 = vmatpush3.msk.msra.mxu1 %vm651_vm9, %v4554_v47 }
0x31aa   :  { %v6883_v3 = vpop.eup %6882  ;;  %6568 = vmatprep.subr.bf16.mxu1 %v7014_v0  ;;  %v4548_v32 = vmul.f32 %v6881_v58, %v6873_v23  ;;  %v4804_v58 = vld [vmem:[%s8511_s7] sm:$0xff] }
0x31ab   :  { %v4546_v5 = vmul.f32 %v6883_v3, %v6875_v63  ;;  %v4806_v3 = vld [vmem:[%s8511_s7 + $0x10] sm:$0xff] }
0x31ad   :  { %6253 = vmatprep.mubr.msk.f32.mxu1 %vm795_vm10, %v4546_v5  ;;  %v6569_v5 = vpack.c.bf16 %v4805_v31, %v4804_v58  ;;  %v5499_v58 = vld [vmem:[%s8511_s7 + $0xc3] ss:$0 sm:$0xff] }
0x31ae   :  { %v6885_v45 = vpop.eup %6884  ;;  %6254 = vmatmul.mubr.msk.f32.vlgmr.msra.gmra.mrb[60].mxu1 %vm795_vm10, %v4548_v32  ;;  %v4807_v32 = vld [vmem:[%s8511_s7 + $0x18] sm:$0xff] }
0x31af   :  { %v4550_v9 = vmul.f32 %v6885_v45, %v6877_v37  ;;  %6570 = vmatpush3.bf16.msra.mxu1 %v6569_v5  ;;  %v6572_v45 = vpack.c.bf16 %v4807_v32, %v4806_v3 }
0x31b0   :  { %6571 = vmatprep.subr.bf16.mxu1 %v7014_v0 }
0x31b1   :  { %6256 = vmatprep.mubr.msk.f32.mxu1 %vm795_vm10, %v4550_v9  ;;  %v4808_v9 = vld [vmem:[%s8511_s7 + $0x20] sm:$0xff] }
0x31b2   :  { %v6887_v22 = vpop.eup %6886 }
0x31b3   :  { %v4552_v59 = vmul.f32 %v6887_v22, %v6879_v4  ;;  %v4809_v22 = vld [vmem:[%s8511_s7 + $0x28] sm:$0xff]  ;;  %6573 = vmatpush3.bf16.msra.mxu1 %v6572_v45 }
0x31b4   :  { %6574 = vmatprep.subr.bf16.mxu1 %v7014_v0  ;;  %v4989_v45 = vld [vmem:[%s8506_s2 + $0x168] sm:$0xff] }
0x31b5   :  { %6257 = vmatmul.mubr.msk.f32.gmra.mrb[62].mxu1 %vm795_vm10, %v4552_v59  ;;  %v6575_v59 = vpack.c.bf16 %v4809_v22, %v4808_v9  ;;  %v4990_v22 = vld [vmem:[%s8506_s2 + $0x170] sm:$0xff] }
0x31b6   :  { %6286 = vmatprep.mubr.msk.f32.mxu1 %vm7016_vm0, %v7015_v1 }
0x31b7   :  { %6576 = vmatpush3.bf16.msra.mxu1 %v6575_v59  ;;  %v4991_v59 = vld [vmem:[%s8506_s2 + $0x178] sm:$0xff] }
0x31b8   :  { %6577 = vmatprep.subr.bf16.mxu1 %v7014_v0 }
0x3281   :  { %v6255_v6 = vpop.f32.mrb[60].mxu1 }
0x3282   :  { %v4641_v13 = vadd.f32 %v6255_v6, %v8300_v20  ;;  %v4635_v34 = vpop.f32.mrb[61].mxu1  ;;  %v4810_v6 = vld [vmem:[%s8511_s7 + $0x30] sm:$0xff] }
0x3283   :  { %v4636_v30 = vadd.f32 %v4635_v34, %v8297_v41 }
0x3284   :  { %v4655_v54 = vmul.f32 %v4641_v13, %v8186_v55  ;;  %v4811_v13 = vld [vmem:[%s8511_s7 + $0x38] sm:$0xff] }
0x3285   :  { %v4654_v36 = vmul.f32 %v4636_v30, %v8155_v11  ;;  %v6578_v34 = vpack.c.bf16 %v4811_v13, %v4810_v6  ;;  %v6608_v6 = vpack.c.bf16 %v4991_v59, %v4990_v22  ;;  %v5501_v13 = vld [vmem:[%s8511_s7 + $0xc4] ss:$0 sm:$0xff] }
0x3287   :  { %v4658_v39 = vadd.f32 %v4655_v54, %v4654_v36  ;;  %6579 = vmatpush3.bf16.msra.mxu1 %v6578_v34 }
0x3288   :  { %v6258_v18 = vpop.f32.mrb[62].mxu1  ;;  %6592 = vmatprep.subr.bf16.mxu1 %v7014_v0 }
0x3289   :  { %v4645_v62 = vpop.f32.mrb[63].mxu1  ;;  %v4651_v56 = vadd.f32 %v6258_v18, %v8312_v53  ;;  %v4813_v18 = vld [vmem:[%s8511_s7 + $0x48] sm:$0xff] }
0x328a   :  { %v4646_v7 = vadd.f32 %v4645_v62, %v8303_v51  ;;  %v6705_v51 = vpop.permute.xlu0 %6704 }
0x328b   :  { %v4657_v16 = vmul.f32 %v4651_v56, %v8196_v42  ;;  %v6707_v48 = vunpack.i.h.bf16 %v6705_v51  ;;  %v6706_v57 = vunpack.i.l.bf16 %v6705_v51  ;;  %v4791_v56 = vrot.slane %v8286_v12, %v7518_v33  ;;  %v4814_v33 = vld [vmem:[%s8511_s7 + $0x50] sm:$0xff] }
0x328c   :  { %v4656_v49 = vmul.f32 %v4646_v7, %v8188_v61 }
0x328d   :  { %v6566_v43 = vpack.c.bf16 %v6707_v48, %v6706_v57  ;;  %v4975_v48 = vld [vmem:[%s8511_s7 + $0x70] sm:$0xff]  ;;  %v4977_v57 = vld [vmem:[%s8511_s7 + $0x80] sm:$0xff] }
0x328e   :  { %v4659_v44 = vadd.f32 %v4658_v39, %v4656_v49  ;;  %v4812_v39 = vld [vmem:[%s8511_s7 + $0x40] sm:$0xff] }
0x328f   :  { %v6581_v62 = vpack.c.bf16 %v4813_v18, %v4812_v39 }
0x3290   :  { %v4660_v20 = vadd.f32 %v4659_v44, %v4657_v16  ;;  %v4796_v16 = vrot.slane %v8286_v12, %v7572_v14  ;;  %v4815_v14 = vld [vmem:[%s8511_s7 + $0x58] sm:$0xff] }
0x3291   :  { %v6584_v12 = vpack.c.bf16 %v4815_v14, %v4814_v33 }
0x3292   :  { %v4661_v25 = vsel %vm4092_vm12, %v4660_v20, 0.0 }
0x3293   :  { %4662 = vadd.xlane.f32.xlu1 %v4661_v25 }
0x3320   :  { %v4663_v11 = vpop.xlane.xlu1 %4662 }
0x3321   :  { %v4664_v55 = vmul.f32 0.03125, %v4663_v11 }
0x3323   :  { %v4665_v41 = vsub.f32 %v4660_v20, %v4664_v55 }
0x3325   :  { %v4666_v2 = vmul.f32 %v4665_v41, %v4665_v41 }
0x3327   :  { %v4667_v53 = vsel %vm4092_vm12, %v4666_v2, 0.0  ;;  %v4973_v2 = vld [vmem:[%s8511_s7 + $0x60] sm:$0xff] }
0x3328   :  { %4668 = vadd.xlane.f32.xlu1 %v4667_v53  ;;  %v4974_v53 = vld [vmem:[%s8511_s7 + $0x68] sm:$0xff] }
0x3339   :  { %6699 = vrot.lane.b32.xlu1 %v8268_v15, %s7020_s15 }
0x33b5   :  { %v4669_v61 = vpop.xlane.xlu1 %4668 }
0x33b6   :  { %v4670_v42 = vmul.f32 0.03125, %v4669_v61 }
0x33b8   :  { %v4671_v24 = vadd.f32 1e-05, %v4670_v42 }
0x33b9   :  { %v6700_v27 = vpop.permute.xlu1 %6699 }
0x33ba   :  { %6888 = vrsqrt.f32 %v4671_v24  ;;  %v6702_v52 = vunpack.i.h.bf16 %v6700_v27  ;;  %v6701_v60 = vunpack.i.l.bf16 %v6700_v27  ;;  %v6587_v24 = vpack.c.bf16 %v4974_v53, %v4973_v2 }
0x33bc   :  { %v6563_v19 = vpack.c.bf16 %v6702_v52, %v6701_v60  ;;  %v4976_v52 = vld [vmem:[%s8511_s7 + $0x78] sm:$0xff] }
0x33bd   :  { %v6590_v60 = vpack.c.bf16 %v4976_v52, %v4975_v48 }
0x33be   :  { %6564 = vmatpush3.bf16.msra.mxu0 %v6563_v19  ;;  %v4978_v19 = vld [vmem:[%s8511_s7 + $0x88] sm:$0xff] }
0x33bf   :  { %6565 = vmatprep.subr.bf16.mxu0 %v7014_v0 }
0x33c2   :  { %6567 = vmatpush3.bf16.msra.mxu0 %v6566_v43  ;;  %v6593_v43 = vpack.c.bf16 %v4978_v19, %v4977_v57 }
0x33c3   :  { %6580 = vmatprep.subr.bf16.mxu0 %v7014_v0 }
0x33c4   :  { %v6889_v15 = vpop.eup %6888 }
0x33c5   :  { %v4673_v23 = vmul.f32 %v6889_v15, %v4665_v41  ;;  %v5493_v41 = vld [vmem:[%s8511_s7 + $0xc0] ss:$0 sm:$0xff] }
0x33c7   :  { %v4678_v63 = vmul.f32 %v4677_v46, %v4673_v23  ;;  %v5495_v46 = vld [vmem:[%s8511_s7 + $0xc1] ss:$0 sm:$0xff] }
0x33c9   :  { %v4683_v29 = vadd.f32 %v4682_v38, %v4678_v63  ;;  %v4979_v63 = vld [vmem:[%s8511_s7 + $0x90] sm:$0xff] }
0x33cb   :  { %6268 = vmatmul.mubr.msk.f32.vlgmr.msra.gmra.mrb[66].mxu0 %vm577_vm8, %v4683_v29 }
0x33cc   :  { %6297 = vmatprep.mubr.msk.f32.mxu0 %vm7016_vm0, %v7015_v1  ;;  %6582 = vmatpush3.bf16.msra.mxu0 %v6581_v62 }
0x33cd   :  { %6583 = vmatprep.subr.bf16.mxu0 %v7014_v0 }
0x33d0   :  { %6585 = vmatpush3.bf16.msra.mxu0 %v6584_v12 }
0x33d1   :  { %6586 = vmatprep.subr.bf16.mxu0 %v7014_v0 }
0x349e   :  { %v4769_v37 = vpop.f32.mrb[66].mxu0 }
0x349f   :  { %v4770_v28 = vadd.f32 %v4769_v37, %v4687_v21  ;;  %v6269_v26 = vpop.f32.mrb[67].mxu0  ;;  %v4981_v37 = vld [vmem:[%s8511_s7 + $0xa0] sm:$0xff] }
0x34a1   :  { %v4773_v4 = vmax.f32 %v4770_v28, 0.0  ;;  %v4982_v28 = vld [vmem:[%s8511_s7 + $0xa8] sm:$0xff] }
0x34a2   :  { %v6599_v26 = vpack.c.bf16 %v4982_v28, %v4981_v37 }
0x34a3   :  { %v4774_v50 = vadd.f32 %v4773_v4, %v4683_v29  ;;  %v4980_v29 = vld [vmem:[%s8511_s7 + $0x98] sm:$0xff]  ;;  %v5497_v4 = vld [vmem:[%s8511_s7 + $0xc2] ss:$0 sm:$0xff] }
0x34a4   :  { %v6596_v21 = vpack.c.bf16 %v4980_v29, %v4979_v63 }
0x34a5   :  { %v4775_v8 = vsel %vm4092_vm12, %v4774_v50, 0.0 }
0x34a6   :  { %4776 = vadd.xlane.f32.xlu0 %v4775_v8 }
0x3533   :  { %v4777_v17 = vpop.xlane.xlu0 %4776 }
0x3534   :  { %v4778_v40 = vmul.f32 0.03125, %v4777_v17 }
0x3536   :  { %v4779_v35 = vsub.f32 %v4774_v50, %v4778_v40 }
0x3538   :  { %v4780_v47 = vmul.f32 %v4779_v35, %v4779_v35 }
0x353a   :  { %v4781_v10 = vsel %vm4092_vm12, %v4780_v47, 0.0  ;;  %v4984_v47 = vld [vmem:[%s8511_s7 + $0xb8] sm:$0xff] }
0x353b   :  { %4782 = vadd.xlane.f32.xlu1 %v4781_v10 }
0x35c8   :  { %v4783_v30 = vpop.xlane.xlu1 %4782 }
0x35c9   :  { %v4784_v54 = vmul.f32 0.03125, %v4783_v30 }
0x35cb   :  { %v4785_v36 = vadd.f32 1e-05, %v4784_v54 }
0x35cd   :  { %6890 = vrsqrt.f32 %v4785_v36 }
0x35d7   :  { %v6891_v7 = vpop.eup %6890 }
0x35d8   :  { %v4787_v49 = vmul.f32 %v6891_v7, %v4779_v35  ;;  %v4983_v35 = vld [vmem:[%s8511_s7 + $0xb0] sm:$0xff] }
0x35d9   :  { %v6602_v10 = vpack.c.bf16 %v4984_v47, %v4983_v35 }
0x35da   :  { %v4792_v44 = vmul.f32 %v4791_v56, %v4787_v49 }
0x35dc   :  { %v4797_v20 = vadd.f32 %v4796_v16, %v4792_v44 }
0x35de   :  { %v4799_v25 = vrot.slane %v4797_v20, 2 }
0x35e0   :  { %4800 = vrot.lane.b32.xlu0 %v4799_v25, %s7020_s15 }
0x3652   :  { %v4801_v11 = vpop.permute.xlu0 %4800 }
0x3653   :  { %v4803_v55 = vsel %vm577_vm8, %v4797_v20, %v4801_v11 }
0x3654   :  { %6287 = vmatmul.mubr.msk.f32.vlgmr.msra.gmra.mrb[64].mxu1 %vm399_vm5, %v4803_v55 }
0x3655   :  { %6319 = vmatprep.mubr.msk.f32.mxu1 %vm7016_vm0, %v7015_v1  ;;  %6594 = vmatpush3.bf16.msra.mxu1 %v6593_v43 }
0x3656   :  { %6595 = vmatprep.subr.bf16.mxu1 %v7014_v0 }
0x3659   :  { %6597 = vmatpush3.bf16.msra.mxu1 %v6596_v21 }
0x365a   :  { %6604 = vmatprep.subr.bf16.mxu1 %v7014_v0 }
0x3727   :  { %v4891_v61 = vpop.f32.mrb[64].mxu1 }
0x3728   :  { %v4892_v42 = vadd.f32 %v5493_v41, %v4891_v61  ;;  %v6288_v51 = vpop.f32.mrb[65].mxu1 }
0x372a   :  { %v4895_v27 = vmax.f32 %v4892_v42, 0.0 }
0x372c   :  { %6298 = vmatmul.mubr.msk.f32.vlgmr.msra.gmra.mrb[68].mxu0 %vm577_vm8, %v4895_v27 }
0x372d   :  { %6588 = vmatpush3.bf16.msra.mxu0 %v6587_v24  ;;  %6308 = vmatprep.mubr.msk.f32.mxu0 %vm7016_vm0, %v7015_v1 }
0x372e   :  { %6589 = vmatprep.subr.bf16.mxu0 %v7014_v0 }
0x3731   :  { %6591 = vmatpush3.bf16.msra.mxu0 %v6590_v60 }
0x3732   :  { %6598 = vmatprep.subr.bf16.mxu0 %v7014_v0 }
0x37ff   :  { %v4969_v15 = vpop.f32.mrb[68].mxu0 }
0x3800   :  { %v4970_v38 = vadd.f32 %v5495_v46, %v4969_v15  ;;  %v6299_v23 = vpop.f32.mrb[69].mxu0 }
0x3802   :  { %6309 = vmatmul.mubr.msk.f32.vlgmr.msra.gmra.mrb[70].mxu0 %vm577_vm8, %v4970_v38 }
0x3803   :  { %6330 = vmatprep.mubr.msk.f32.mxu0 %vm7016_vm0, %v7015_v1  ;;  %6600 = vmatpush3.bf16.msra.mxu0 %v6599_v26 }
0x3804   :  { %6601 = vmatprep.subr.bf16.mxu0 %v7014_v0 }
0x3807   :  { %6603 = vmatpush3.bf16.msra.mxu0 %v6602_v10 }
0x38d5   :  { %v5066_v50 = vpop.f32.mrb[70].mxu0 }
0x38d6   :  { %v5067_v8 = vadd.f32 %v5497_v4, %v5066_v50  ;;  %v6310_v17 = vpop.f32.mrb[71].mxu0 }
0x38d8   :  { %v5070_v40 = vmax.f32 %v5067_v8, 0.0 }
0x38da   :  { %6320 = vmatmul.mubr.msk.f32.vlgmr.msra.gmra.mrb[66].mxu1 %vm577_vm8, %v5070_v40 }
0x38db   :  { %6341 = vmatprep.mubr.msk.f32.mxu1 %vm7016_vm0, %v7015_v1  ;;  %v4988_v1 = vld [vmem:[%s8506_s2 + $0x160] sm:$0xff] }
0x38dc   :  { %v6605_v9 = vpack.c.bf16 %v4989_v45, %v4988_v1 }
0x38de   :  { %6606 = vmatpush3.bf16.msra.mxu1 %v6605_v9 }
0x38df   :  { %6607 = vmatprep.subr.bf16.mxu1 %v7014_v0  ;;  %v5503_v0 = vld [vmem:[%s8506_s2 + $0x180] ss:$0 sm:$0xff] }
0x38e2   :  { %6609 = vmatpush3.bf16.msra.mxu1 %v6608_v6 }
0x39ad   :  { %v5144_v31 = vpop.f32.mrb[66].mxu1 }
0x39ae   :  { %v5145_v3 = vadd.f32 %v5499_v58, %v5144_v31  ;;  %v6321_v5 = vpop.f32.mrb[67].mxu1 }
0x39b0   :  { %v5148_v32 = vmax.f32 %v5145_v3, 0.0 }
0x39b2   :  { %6331 = vmatmul.mubr.msk.f32.vlgmr.msra.gmra.mrb[72].mxu0 %vm577_vm8, %v5148_v32 }
0x3a85   :  { %v5222_v34 = vpop.f32.mrb[72].mxu0 }
0x3a86   :  { %v5223_v30 = vadd.f32 %v5501_v13, %v5222_v34  ;;  %v6332_v54 = vpop.f32.mrb[73].mxu0 }
0x3a88   :  { %v5226_v36 = vmax.f32 %v5223_v30, 0.0 }
0x3a8a   :  { %v5227_v39 = vadd.f32 %v5226_v36, %v5070_v40 }
0x3a8c   :  { %6342 = vmatmul.mubr.msk.f32.vlgmr.msra.gmra.mrb[68].mxu1 %vm577_vm8, %v5227_v39 }
0x3b5f   :  { %v5301_v18 = vpop.f32.mrb[68].mxu1 }
0x3b60   :  { %v5302_v62 = vadd.f32 %v5503_v0, %v5301_v18  ;;  %v6343_v56 = vpop.f32.mrb[69].mxu1 }
0x3b62   :  { %v5306_v7 = vand.u32 2147483647, %v5302_v62  ;;  %v5305_v11 = vmax.f32 %v5302_v62, 0.0 }
0x3b64   :  { %v5307_v49 = vsub.f32 0.0, %v5306_v7 }
0x3b66   :  { %v5308_v16 = vmul.f32 1.442695, %v5307_v49 }
0x3b68   :  { %6892 = vpow2.f32 %v5308_v16 }
0x3b72   :  { %v6893_v44 = vpop.eup %6892 }
0x3b73   :  { %v5310_v20 = vadd.f32 1.0, %v6893_v44 }
0x3b75   :  { %6894 = vlog2.f32 %v5310_v20 }
0x3b7f   :  { %v6895_v25 = vpop.eup %6894 }
0x3b80   :  { %v5312_v55 = vmul.f32 0.6931472, %v6895_v25 }
0x3b82   :  { %v5313_v33 = vadd.f32 %v5312_v55, %v5305_v11 }
0x3b84   :  { %v5314_v14 = vadd.f32 1.001, %v5313_v33 }
0x3b86   :  { %5315 = vst [vmem:[%s8513_s9] sm:$0x3] %v5314_v14 }
0x3b87   :  { %5320 = vsyncpa [#allocation3], 1 }
0x3b88   :  { %5321 = vsyncpa [#allocation5], 1 }
0x3b89   :  { %5322 = vsyncpa [#allocation8], 1 }

</bundles_post_ra>
